<compile_context>
chip_gen: v6e
topology: v6e:2x2x1
jax: 0.10.0
libtpu: 0.0.40
codegen_flags: <defaults>
</compile_context>

<pallas_src>
import functools

import jax
import jax.numpy as jnp
from jax.experimental import pallas as pl
from jax.experimental.pallas import tpu as pltpu
from jax.scipy.linalg import block_diag

LN_EPS = 1e-5  # nn.LayerNorm default


# ----------------------------------------------------------------------------
# Fused Pallas kernel: all MaskBlocks (stacked) + top MLP, per batch tile.
# ----------------------------------------------------------------------------
def fused_masknet_kernel(*refs, n_blocks, n_mlp_layers):
    (x_ref,
     ln1g_ref, ln1b_ref,               # concatenated LN1 gamma/beta (1, n*D)
     mgw1_ref, mgb1_ref,               # stacked mask-gen L1 (D, n*A), (1, n*A)
     mgw2_ref, mgb2_ref,               # block-diag mask-gen L2 (n*A, n*D), (1, n*D)
     ffnw1_ref, ffnb1_ref,             # block-diag FFN L1 (n*D, n*H), (1, n*H)
     ln2g_ref, ln2b_ref,               # per-block LN2 gamma/beta (1, n*H)
     ffnw2_ref, ffnb2_ref,             # block-diag FFN L2 (n*H, n*D), (1, n*D)
     segm_ref) = refs[:14]             # block segment-mean matrix (n*H, n*H), f32
    mlp_refs = refs[14:14 + 2 * n_mlp_layers]
    out_ref = refs[14 + 2 * n_mlp_layers]

    def mxu(a, w_ref):
        # Cast the activation to the weight's dtype (f32 or bf16); accumulate in f32.
        return jnp.dot(a.astype(w_ref.dtype), w_ref[...],
                       preferred_element_type=jnp.float32)

    x = x_ref[...].astype(jnp.float32)                        # (bm, D)

    # --- ln_emb: LayerNorm(input) per block.  Stats are shared (same input for
    # all blocks); gamma/beta are applied per block on the VPU after a lane
    # replication (XLU concat) — no MXU push, and gamma stays f32.
    mu = jnp.mean(x, axis=-1, keepdims=True)
    var = jnp.mean((x - mu) * (x - mu), axis=-1, keepdims=True)
    xhat = (x - mu) * jax.lax.rsqrt(var + LN_EPS)
    xhat_rep = jnp.concatenate([xhat] * n_blocks, axis=-1)    # (bm, n*D)
    ln_cat = xhat_rep * ln1g_ref[...] + ln1b_ref[...]         # (bm, n*D)

    # --- mask generator: Linear -> ReLU -> Linear, all blocks stacked.
    h1 = jnp.maximum(mxu(x, mgw1_ref) + mgb1_ref[...], 0.0)   # (bm, n*A)
    w_cat = mxu(h1, mgw2_ref) + mgb2_ref[...]                 # (bm, n*D)

    # --- elementwise gate
    v = ln_cat * w_cat                                        # (bm, n*D)

    # --- FFN: Linear -> LayerNorm(per block) -> ReLU -> Linear, stacked.
    h2 = mxu(v, ffnw1_ref) + ffnb1_ref[...]                   # (bm, n*H)
    # E[x^2]-form LN stats: both segment-mean matmul LHS are ready back-to-back,
    # so the two MXU pushes pipeline (no MXU->VPU->MXU dependency).  f32 stats.
    m_b = mxu(h2, segm_ref)                                   # per-block mean (bcast)
    e2_b = mxu(h2 * h2, segm_ref)                             # per-block E[x^2]
    v_b = jnp.maximum(e2_b - m_b * m_b, 0.0)                  # clamp cancellation
    h2n = (h2 - m_b) * jax.lax.rsqrt(v_b + LN_EPS) * ln2g_ref[...] + ln2b_ref[...]
    h2a = jnp.maximum(h2n, 0.0)
    hidden = mxu(h2a, ffnw2_ref) + ffnb2_ref[...]             # (bm, n*D) == concat of blocks

    # --- top MLP (Linear + ReLU per layer), fully VMEM-resident.
    t = hidden
    for li in range(n_mlp_layers):
        w_ref = mlp_refs[2 * li]
        b_ref = mlp_refs[2 * li + 1]
        t = jnp.maximum(mxu(t, w_ref) + b_ref[...], 0.0)

    out_ref[...] = t.astype(out_ref.dtype)


# ----------------------------------------------------------------------------
# Batch-tile chooser: biggest tile (<= target) that divides B, is sublane
# aligned, and keeps >= 2 (preferably an even number of) grid steps for v7x.
# ----------------------------------------------------------------------------
def _choose_bm(B, target=512):
    best = None
    for cand in range(min(target, B), 7, -1):
        if B % cand or cand % 8:
            continue
        steps = B // cand
        if steps >= 2:
            if best is None:
                best = cand
            if steps % 2 == 0:
                return cand                 # even step count: balances 2 TCs
    return best if best is not None else B  # tiny B: single full-batch tile


# ----------------------------------------------------------------------------
# Wrapper
# ----------------------------------------------------------------------------
def masknet_forward(feature_emb, packed, *, bm=None, out_dtype=None,
                    pad_out_lanes=True, single_buffer_weights=True):
    """Parallel-mode MaskNet forward. feature_emb: (B, D) -> (B, top_mlp[-1])."""
    B, D = feature_emb.shape
    if bm is None:
        bm = _choose_bm(B)
    bm = min(bm, B)
    # TODO(synk): no masked tail path — B must be a multiple of the batch tile.
    assert B % bm == 0, "batch must be a multiple of the batch tile"

    n_blocks = packed["n_blocks"]
    mlp_list = list(packed["mlp"])
    n_mlp = len(mlp_list)
    out_dim = mlp_list[-1][0].shape[1]
    out_dtype = feature_emb.dtype if out_dtype is None else out_dtype

    # Lane-dense output store: zero-pad the last MLP layer's output columns to a
    # multiple of 128 so the HBM writeback uses unmasked vst; slice back below.
    lane_pad = (-out_dim) % 128 if pad_out_lanes else 0
    if lane_pad:
        w_last, b_last = mlp_list[-1]
        w_last = jnp.pad(w_last, ((0, 0), (0, lane_pad)))
        b_last = jnp.pad(b_last, ((0, 0), (0, lane_pad)))
        mlp_list[-1] = (w_last, b_last)
    padded_out = out_dim + lane_pad

    weight_order = ["ln1_g", "ln1_b", "mg_w1", "mg_b1", "mg_w2", "mg_b2",
                    "ffn_w1", "ffn_b1", "ln2_g", "ln2_b", "ffn_w2", "ffn_b2",
                    "seg_mean"]
    w_args = [packed[k] for k in weight_order]
    for w, b in mlp_list:
        w_args += [w, b]

    kernel = functools.partial(fused_masknet_kernel,
                               n_blocks=n_blocks, n_mlp_layers=n_mlp)

    def build(use_single_buffer):
        def full_spec(shape):
            # grid-invariant weight: constant index_map -> DMA'd only once.
            if use_single_buffer:
                return pl.BlockSpec(shape, lambda i: (0, 0),
                                    pipeline_mode=pl.Buffered(1))
            return pl.BlockSpec(shape, lambda i: (0, 0))

        in_specs = [pl.BlockSpec((bm, D), lambda i: (i, 0))] + \
                   [full_spec(w.shape) for w in w_args]

        return pl.pallas_call(
            kernel,
            out_shape=jax.ShapeDtypeStruct((B, padded_out), out_dtype),
            grid_spec=pltpu.PrefetchScalarGridSpec(
                num_scalar_prefetch=0,
                grid=(B // bm,),
                in_specs=in_specs,
                out_specs=pl.BlockSpec((bm, padded_out), lambda i: (i, 0)),
            ),
            compiler_params=pltpu.CompilerParams(
                dimension_semantics=("parallel",)),
        )

    try:
        out = build(single_buffer_weights)(feature_emb, *w_args)
    except Exception:
        if not single_buffer_weights:
            raise
        # Fallback: default double-buffered weight specs (pure VMEM headroom loss).
        out = build(False)(feature_emb, *w_args)

    if lane_pad:
        out = out[:, :out_dim]
    return out


# ----------------------------------------------------------------------------
# Parameter init (deterministic, synthetic) and host-side packing
# ----------------------------------------------------------------------------
def init_mask_block_params(key, input_dim, mask_input_dim, aggregation_dim, hidden_dim):
    ks = jax.random.split(key, 12)
    s = 0.05
    return {
        # ln_emb (random gamma/beta to exercise the per-block scale)
        "ln1_w": 1.0 + s * jax.random.normal(ks[0], (1, input_dim), jnp.float32),
        "ln1_b": s * jax.random.normal(ks[1], (1, input_dim), jnp.float32),
        # mask_generator: Linear(mask_input_dim -> agg), ReLU, Linear(agg -> input_dim)
        "mg_w1": s * jax.random.normal(ks[2], (mask_input_dim, aggregation_dim), jnp.float32),
        "mg_b1": s * jax.random.normal(ks[3], (1, aggregation_dim), jnp.float32),
        "mg_w2": s * jax.random.normal(ks[4], (aggregation_dim, input_dim), jnp.float32),
        "mg_b2": s * jax.random.normal(ks[5], (1, input_dim), jnp.float32),
        # ffn: Linear(input_dim -> hidden), LN(hidden), ReLU, Linear(hidden -> input_dim)
        "ffn_w1": s * jax.random.normal(ks[6], (input_dim, hidden_dim), jnp.float32),
        "ffn_b1": s * jax.random.normal(ks[7], (1, hidden_dim), jnp.float32),
        "ln2_w": 1.0 + s * jax.random.normal(ks[8], (1, hidden_dim), jnp.float32),
        "ln2_b": s * jax.random.normal(ks[9], (1, hidden_dim), jnp.float32),
        "ffn_w2": s * jax.random.normal(ks[10], (hidden_dim, input_dim), jnp.float32),
        "ffn_b2": s * jax.random.normal(ks[11], (1, input_dim), jnp.float32),
    }


def init_mlp_params(key, in_features, hidden_units):
    layers = []
    d = in_features
    for h in hidden_units:
        k1, k2, key = jax.random.split(key, 3)
        layers.append({
            "w": 0.05 * jax.random.normal(k1, (d, h), jnp.float32),
            "b": 0.05 * jax.random.normal(k2, (1, h), jnp.float32),
        })
        d = h
    return layers


def pack_parallel_params(block_params, mlp_params):
    """Stack per-block weights so all blocks run as wide, lane-dense matmuls."""
    n = len(block_params)
    H = block_params[0]["ffn_w1"].shape[1]

    def cat(name):
        return jnp.concatenate([p[name] for p in block_params], axis=-1)

    return {
        "n_blocks": n,
        # LN1 gamma/beta concatenated; applied on the VPU in-kernel (no fold matmul).
        "ln1_g": cat("ln1_w"),                                       # (1, n*D)
        "ln1_b": cat("ln1_b"),
        "mg_w1": cat("mg_w1"),                                       # (D, n*A)
        "mg_b1": cat("mg_b1"),
        "mg_w2": block_diag(*[p["mg_w2"] for p in block_params]),    # (n*A, n*D)
        "mg_b2": cat("mg_b2"),
        "ffn_w1": block_diag(*[p["ffn_w1"] for p in block_params]),  # (n*D, n*H)
        "ffn_b1": cat("ffn_b1"),
        "ln2_g": cat("ln2_w"),
        "ln2_b": cat("ln2_b"),
        "ffn_w2": block_diag(*[p["ffn_w2"] for p in block_params]),  # (n*H, n*D)
        "ffn_b2": cat("ffn_b2"),
        # per-block segment-mean matrix for the inner LayerNorm stats (kept f32)
        "seg_mean": block_diag(*([jnp.full((H, H), 1.0 / H, jnp.float32)] * n)),
        "mlp": [(l["w"], l["b"]) for l in mlp_params],
    }


def downcast_matmul_weights(packed, dtype):
    """bf16 dot operands for v6e/v7x; LN vectors, biases, seg_mean and MXU
    accumulation stay f32 (tighter parity with the torch module)."""
    out = dict(packed)
    for k in ("mg_w1", "mg_w2", "ffn_w1", "ffn_w2"):
        out[k] = packed[k].astype(dtype)
    out["mlp"] = [(w.astype(dtype), b) for (w, b) in packed["mlp"]]
    return out


# ----------------------------------------------------------------------------
# Pure-JAX reference (unpacked, matches the torch module structure)
# ----------------------------------------------------------------------------
def _ref_ln(x, g, b):
    mu = jnp.mean(x, -1, keepdims=True)
    var = jnp.mean((x - mu) ** 2, -1, keepdims=True)
    return (x - mu) * jax.lax.rsqrt(var + LN_EPS) * g + b


def _ref_mask_block(inp, mask, p):
    ln = _ref_ln(inp, p["ln1_w"], p["ln1_b"])
    h = jnp.maximum(mask @ p["mg_w1"] + p["mg_b1"], 0.0)
    w = h @ p["mg_w2"] + p["mg_b2"]
    v = ln * w
    h2 = v @ p["ffn_w1"] + p["ffn_b1"]
    h2 = jnp.maximum(_ref_ln(h2, p["ln2_w"], p["ln2_b"]), 0.0)
    return h2 @ p["ffn_w2"] + p["ffn_b2"]


def _ref_forward(x, blocks, mlp):
    hidden = jnp.concatenate([_ref_mask_block(x, x, p) for p in blocks], -1)
    for layer in mlp:
        hidden = jnp.maximum(hidden @ layer["w"] + layer["b"], 0.0)
    return hidden


# ----------------------------------------------------------------------------
if __name__ == "__main__":
    # Small config consistent with MaskNetModule (parallel mode), chosen so the
    # stacked hidden width is lane-dense (n_blocks * feature_dim == 128).
    B = 256
    feature_dim = 64
    n_mask_blocks = 2
    reduction_ratio = 0.5
    aggregation_dim = int(feature_dim * reduction_ratio)   # 32
    hidden_dim = 64                                        # MaskBlock FFN hidden
    top_mlp_hidden = [128, 64]

    key = jax.random.PRNGKey(0)
    k_x, k_blocks, k_mlp = jax.random.split(key, 3)

    feature_emb = jax.random.normal(k_x, (B, feature_dim), jnp.float32)

    block_keys = jax.random.split(k_blocks, n_mask_blocks)
    block_params = [
        init_mask_block_params(bk, feature_dim, feature_dim, aggregation_dim, hidden_dim)
        for bk in block_keys
    ]
    top_mlp_params = init_mlp_params(k_mlp, feature_dim * n_mask_blocks, top_mlp_hidden)

    packed = pack_parallel_params(block_params, top_mlp_params)
    ref = _ref_forward(feature_emb, block_params, top_mlp_params)

    # f32 path (tight correctness check); bm auto-chosen (128 here -> 2 parallel steps).
    out = jax.block_until_ready(masknet_forward(feature_emb, packed))
    assert out.shape == (B, top_mlp_hidden[-1])
    assert jnp.allclose(out, ref, atol=1e-3, rtol=1e-3), "f32 Pallas result mismatch"

    # bf16 dot-operand path (recommended on v6e/v7x) — looser tolerance.
    packed_bf16 = downcast_matmul_weights(packed, jnp.bfloat16)
    out_bf16 = jax.block_until_ready(masknet_forward(feature_emb, packed_bf16))
    assert out_bf16.shape == (B, top_mlp_hidden[-1])
    assert jnp.allclose(out_bf16, ref, atol=5e-2, rtol=5e-2), "bf16 Pallas result mismatch"

    print("KERNEL_OK")
</pallas_src>

<mosaic_0001>
module attributes {stable_mosaic.version = 11 : i64} {
  func.func @fused_masknet_kernel(%arg0: i32, %arg1: memref<128x64xf32, #tpu.memory_space<vmem>>, %arg2: memref<1x128xf32, #tpu.memory_space<vmem>>, %arg3: memref<1x128xf32, #tpu.memory_space<vmem>>, %arg4: memref<64x64xf32, #tpu.memory_space<vmem>>, %arg5: memref<1x64xf32, #tpu.memory_space<vmem>>, %arg6: memref<64x128xf32, #tpu.memory_space<vmem>>, %arg7: memref<1x128xf32, #tpu.memory_space<vmem>>, %arg8: memref<128x128xf32, #tpu.memory_space<vmem>>, %arg9: memref<1x128xf32, #tpu.memory_space<vmem>>, %arg10: memref<1x128xf32, #tpu.memory_space<vmem>>, %arg11: memref<1x128xf32, #tpu.memory_space<vmem>>, %arg12: memref<128x128xf32, #tpu.memory_space<vmem>>, %arg13: memref<1x128xf32, #tpu.memory_space<vmem>>, %arg14: memref<128x128xf32, #tpu.memory_space<vmem>>, %arg15: memref<128x128xf32, #tpu.memory_space<vmem>>, %arg16: memref<1x128xf32, #tpu.memory_space<vmem>>, %arg17: memref<128x128xf32, #tpu.memory_space<vmem>>, %arg18: memref<1x128xf32, #tpu.memory_space<vmem>>, %arg19: memref<128x128xf32, #tpu.memory_space<vmem>>) attributes {dimension_semantics = [#tpu.dimension_semantics<parallel>], iteration_bounds = array<i64: 2>, scalar_prefetch = 0 : i64, scratch_operands = 0 : i64, tpu.core_type = #tpu.core_type<tc>, window_params = [{transform_indices = @transform_0, window_bounds = array<i64: 128, 64>}, {pipeline_mode = #tpu.pipeline_mode<synchronous>, transform_indices = @transform_1, window_bounds = array<i64: 1, 128>}, {pipeline_mode = #tpu.pipeline_mode<synchronous>, transform_indices = @transform_2, window_bounds = array<i64: 1, 128>}, {pipeline_mode = #tpu.pipeline_mode<synchronous>, transform_indices = @transform_3, window_bounds = array<i64: 64, 64>}, {pipeline_mode = #tpu.pipeline_mode<synchronous>, transform_indices = @transform_4, window_bounds = array<i64: 1, 64>}, {pipeline_mode = #tpu.pipeline_mode<synchronous>, transform_indices = @transform_5, window_bounds = array<i64: 64, 128>}, {pipeline_mode = #tpu.pipeline_mode<synchronous>, transform_indices = @transform_6, window_bounds = array<i64: 1, 128>}, {pipeline_mode = #tpu.pipeline_mode<synchronous>, transform_indices = @transform_7, window_bounds = array<i64: 128, 128>}, {pipeline_mode = #tpu.pipeline_mode<synchronous>, transform_indices = @transform_8, window_bounds = array<i64: 1, 128>}, {pipeline_mode = #tpu.pipeline_mode<synchronous>, transform_indices = @transform_9, window_bounds = array<i64: 1, 128>}, {pipeline_mode = #tpu.pipeline_mode<synchronous>, transform_indices = @transform_10, window_bounds = array<i64: 1, 128>}, {pipeline_mode = #tpu.pipeline_mode<synchronous>, transform_indices = @transform_11, window_bounds = array<i64: 128, 128>}, {pipeline_mode = #tpu.pipeline_mode<synchronous>, transform_indices = @transform_12, window_bounds = array<i64: 1, 128>}, {pipeline_mode = #tpu.pipeline_mode<synchronous>, transform_indices = @transform_13, window_bounds = array<i64: 128, 128>}, {pipeline_mode = #tpu.pipeline_mode<synchronous>, transform_indices = @transform_14, window_bounds = array<i64: 128, 128>}, {pipeline_mode = #tpu.pipeline_mode<synchronous>, transform_indices = @transform_15, window_bounds = array<i64: 1, 128>}, {pipeline_mode = #tpu.pipeline_mode<synchronous>, transform_indices = @transform_16, window_bounds = array<i64: 128, 128>}, {pipeline_mode = #tpu.pipeline_mode<synchronous>, transform_indices = @transform_17, window_bounds = array<i64: 1, 128>}, {transform_indices = @transform_18, window_bounds = array<i64: 128, 128>}]} {
    %c0 = arith.constant 0 : index
    %c0_0 = arith.constant 0 : index
    %0 = vector.load %arg1[%c0, %c0_0] : memref<128x64xf32, #tpu.memory_space<vmem>>, vector<128x64xf32>
    %cst = arith.constant dense<0.000000e+00> : vector<128xf32>
    %1 = vector.multi_reduction <add>, %0, %cst [1] : vector<128x64xf32> to vector<128xf32>
    %2 = vector.shape_cast %1 : vector<128xf32> to vector<128x1xf32>
    %cst_1 = arith.constant 6.400000e+01 : f32
    %3 = vector.broadcast %cst_1 : f32 to vector<128x1xf32>
    %4 = arith.divf %2, %3 : vector<128x1xf32>
    %5 = vector.broadcast %4 : vector<128x1xf32> to vector<128x64xf32>
    %6 = arith.subf %0, %5 : vector<128x64xf32>
    %7 = vector.broadcast %4 : vector<128x1xf32> to vector<128x64xf32>
    %8 = arith.subf %0, %7 : vector<128x64xf32>
    %9 = arith.mulf %6, %8 : vector<128x64xf32>
    %cst_2 = arith.constant dense<0.000000e+00> : vector<128xf32>
    %10 = vector.multi_reduction <add>, %9, %cst_2 [1] : vector<128x64xf32> to vector<128xf32>
    %11 = vector.shape_cast %10 : vector<128xf32> to vector<128x1xf32>
    %cst_3 = arith.constant 6.400000e+01 : f32
    %12 = vector.broadcast %cst_3 : f32 to vector<128x1xf32>
    %13 = arith.divf %11, %12 : vector<128x1xf32>
    %14 = vector.broadcast %4 : vector<128x1xf32> to vector<128x64xf32>
    %15 = arith.subf %0, %14 : vector<128x64xf32>
    %cst_4 = arith.constant 9.99999974E-6 : f32
    %16 = vector.broadcast %cst_4 : f32 to vector<128x1xf32>
    %17 = arith.addf %13, %16 : vector<128x1xf32>
    %18 = math.rsqrt %17 : vector<128x1xf32>
    %19 = vector.broadcast %18 : vector<128x1xf32> to vector<128x64xf32>
    %20 = arith.mulf %15, %19 : vector<128x64xf32>
    %21 = tpu.concatenate %20, %20 in 1 : vector<128x64xf32>, vector<128x64xf32> -> vector<128x128xf32>
    %c0_5 = arith.constant 0 : index
    %c0_6 = arith.constant 0 : index
    %22 = vector.load %arg2[%c0_5, %c0_6] : memref<1x128xf32, #tpu.memory_space<vmem>>, vector<1x128xf32>
    %23 = vector.broadcast %22 : vector<1x128xf32> to vector<128x128xf32>
    %24 = arith.mulf %21, %23 : vector<128x128xf32>
    %c0_7 = arith.constant 0 : index
    %c0_8 = arith.constant 0 : index
    %25 = vector.load %arg3[%c0_7, %c0_8] : memref<1x128xf32, #tpu.memory_space<vmem>>, vector<1x128xf32>
    %26 = vector.broadcast %25 : vector<1x128xf32> to vector<128x128xf32>
    %27 = arith.addf %24, %26 : vector<128x128xf32>
    %c0_9 = arith.constant 0 : index
    %c0_10 = arith.constant 0 : index
    %28 = vector.load %arg4[%c0_9, %c0_10] : memref<64x64xf32, #tpu.memory_space<vmem>>, vector<64x64xf32>
    %cst_11 = arith.constant dense<0.000000e+00> : vector<128x64xf32>
    %29 = tpu.matmul %0, %28, %cst_11 {dimension_numbers = #tpu.dot_dimension_numbers<[1], [0], [0], [1], [0, 0, 1, 1], [], []>} : vector<128x64xf32>, vector<64x64xf32>, vector<128x64xf32> -> vector<128x64xf32>
    %c0_12 = arith.constant 0 : index
    %c0_13 = arith.constant 0 : index
    %30 = vector.load %arg5[%c0_12, %c0_13] : memref<1x64xf32, #tpu.memory_space<vmem>>, vector<1x64xf32>
    %31 = vector.broadcast %30 : vector<1x64xf32> to vector<128x64xf32>
    %32 = arith.addf %29, %31 : vector<128x64xf32>
    %cst_14 = arith.constant 0.000000e+00 : f32
    %33 = vector.broadcast %cst_14 : f32 to vector<128x64xf32>
    %34 = arith.maximumf %32, %33 : vector<128x64xf32>
    %c0_15 = arith.constant 0 : index
    %c0_16 = arith.constant 0 : index
    %35 = vector.load %arg6[%c0_15, %c0_16] : memref<64x128xf32, #tpu.memory_space<vmem>>, vector<64x128xf32>
    %cst_17 = arith.constant dense<0.000000e+00> : vector<128x128xf32>
    %36 = tpu.matmul %34, %35, %cst_17 {dimension_numbers = #tpu.dot_dimension_numbers<[1], [0], [0], [1], [0, 0, 1, 1], [], []>} : vector<128x64xf32>, vector<64x128xf32>, vector<128x128xf32> -> vector<128x128xf32>
    %c0_18 = arith.constant 0 : index
    %c0_19 = arith.constant 0 : index
    %37 = vector.load %arg7[%c0_18, %c0_19] : memref<1x128xf32, #tpu.memory_space<vmem>>, vector<1x128xf32>
    %38 = vector.broadcast %37 : vector<1x128xf32> to vector<128x128xf32>
    %39 = arith.addf %36, %38 : vector<128x128xf32>
    %40 = arith.mulf %27, %39 : vector<128x128xf32>
    %c0_20 = arith.constant 0 : index
    %c0_21 = arith.constant 0 : index
    %41 = vector.load %arg8[%c0_20, %c0_21] : memref<128x128xf32, #tpu.memory_space<vmem>>, vector<128x128xf32>
    %cst_22 = arith.constant dense<0.000000e+00> : vector<128x128xf32>
    %42 = tpu.matmul %40, %41, %cst_22 {dimension_numbers = #tpu.dot_dimension_numbers<[1], [0], [0], [1], [0, 0, 1, 1], [], []>} : vector<128x128xf32>, vector<128x128xf32>, vector<128x128xf32> -> vector<128x128xf32>
    %c0_23 = arith.constant 0 : index
    %c0_24 = arith.constant 0 : index
    %43 = vector.load %arg9[%c0_23, %c0_24] : memref<1x128xf32, #tpu.memory_space<vmem>>, vector<1x128xf32>
    %44 = vector.broadcast %43 : vector<1x128xf32> to vector<128x128xf32>
    %45 = arith.addf %42, %44 : vector<128x128xf32>
    %c0_25 = arith.constant 0 : index
    %c0_26 = arith.constant 0 : index
    %46 = vector.load %arg14[%c0_25, %c0_26] : memref<128x128xf32, #tpu.memory_space<vmem>>, vector<128x128xf32>
    %cst_27 = arith.constant dense<0.000000e+00> : vector<128x128xf32>
    %47 = tpu.matmul %45, %46, %cst_27 {dimension_numbers = #tpu.dot_dimension_numbers<[1], [0], [0], [1], [0, 0, 1, 1], [], []>} : vector<128x128xf32>, vector<128x128xf32>, vector<128x128xf32> -> vector<128x128xf32>
    %48 = arith.mulf %45, %45 : vector<128x128xf32>
    %c0_28 = arith.constant 0 : index
    %c0_29 = arith.constant 0 : index
    %49 = vector.load %arg14[%c0_28, %c0_29] : memref<128x128xf32, #tpu.memory_space<vmem>>, vector<128x128xf32>
    %cst_30 = arith.constant dense<0.000000e+00> : vector<128x128xf32>
    %50 = tpu.matmul %48, %49, %cst_30 {dimension_numbers = #tpu.dot_dimension_numbers<[1], [0], [0], [1], [0, 0, 1, 1], [], []>} : vector<128x128xf32>, vector<128x128xf32>, vector<128x128xf32> -> vector<128x128xf32>
    %51 = arith.mulf %47, %47 : vector<128x128xf32>
    %52 = arith.subf %50, %51 : vector<128x128xf32>
    %cst_31 = arith.constant 0.000000e+00 : f32
    %53 = vector.broadcast %cst_31 : f32 to vector<128x128xf32>
    %54 = arith.maximumf %52, %53 : vector<128x128xf32>
    %55 = arith.subf %45, %47 : vector<128x128xf32>
    %cst_32 = arith.constant 9.99999974E-6 : f32
    %56 = vector.broadcast %cst_32 : f32 to vector<128x128xf32>
    %57 = arith.addf %54, %56 : vector<128x128xf32>
    %58 = math.rsqrt %57 : vector<128x128xf32>
    %59 = arith.mulf %55, %58 : vector<128x128xf32>
    %c0_33 = arith.constant 0 : index
    %c0_34 = arith.constant 0 : index
    %60 = vector.load %arg10[%c0_33, %c0_34] : memref<1x128xf32, #tpu.memory_space<vmem>>, vector<1x128xf32>
    %61 = vector.broadcast %60 : vector<1x128xf32> to vector<128x128xf32>
    %62 = arith.mulf %59, %61 : vector<128x128xf32>
    %c0_35 = arith.constant 0 : index
    %c0_36 = arith.constant 0 : index
    %63 = vector.load %arg11[%c0_35, %c0_36] : memref<1x128xf32, #tpu.memory_space<vmem>>, vector<1x128xf32>
    %64 = vector.broadcast %63 : vector<1x128xf32> to vector<128x128xf32>
    %65 = arith.addf %62, %64 : vector<128x128xf32>
    %cst_37 = arith.constant 0.000000e+00 : f32
    %66 = vector.broadcast %cst_37 : f32 to vector<128x128xf32>
    %67 = arith.maximumf %65, %66 : vector<128x128xf32>
    %c0_38 = arith.constant 0 : index
    %c0_39 = arith.constant 0 : index
    %68 = vector.load %arg12[%c0_38, %c0_39] : memref<128x128xf32, #tpu.memory_space<vmem>>, vector<128x128xf32>
    %cst_40 = arith.constant dense<0.000000e+00> : vector<128x128xf32>
    %69 = tpu.matmul %67, %68, %cst_40 {dimension_numbers = #tpu.dot_dimension_numbers<[1], [0], [0], [1], [0, 0, 1, 1], [], []>} : vector<128x128xf32>, vector<128x128xf32>, vector<128x128xf32> -> vector<128x128xf32>
    %c0_41 = arith.constant 0 : index
    %c0_42 = arith.constant 0 : index
    %70 = vector.load %arg13[%c0_41, %c0_42] : memref<1x128xf32, #tpu.memory_space<vmem>>, vector<1x128xf32>
    %71 = vector.broadcast %70 : vector<1x128xf32> to vector<128x128xf32>
    %72 = arith.addf %69, %71 : vector<128x128xf32>
    %c0_43 = arith.constant 0 : index
    %c0_44 = arith.constant 0 : index
    %73 = vector.load %arg15[%c0_43, %c0_44] : memref<128x128xf32, #tpu.memory_space<vmem>>, vector<128x128xf32>
    %cst_45 = arith.constant dense<0.000000e+00> : vector<128x128xf32>
    %74 = tpu.matmul %72, %73, %cst_45 {dimension_numbers = #tpu.dot_dimension_numbers<[1], [0], [0], [1], [0, 0, 1, 1], [], []>} : vector<128x128xf32>, vector<128x128xf32>, vector<128x128xf32> -> vector<128x128xf32>
    %c0_46 = arith.constant 0 : index
    %c0_47 = arith.constant 0 : index
    %75 = vector.load %arg16[%c0_46, %c0_47] : memref<1x128xf32, #tpu.memory_space<vmem>>, vector<1x128xf32>
    %76 = vector.broadcast %75 : vector<1x128xf32> to vector<128x128xf32>
    %77 = arith.addf %74, %76 : vector<128x128xf32>
    %cst_48 = arith.constant 0.000000e+00 : f32
    %78 = vector.broadcast %cst_48 : f32 to vector<128x128xf32>
    %79 = arith.maximumf %77, %78 : vector<128x128xf32>
    %c0_49 = arith.constant 0 : index
    %c0_50 = arith.constant 0 : index
    %80 = vector.load %arg17[%c0_49, %c0_50] : memref<128x128xf32, #tpu.memory_space<vmem>>, vector<128x128xf32>
    %cst_51 = arith.constant dense<0.000000e+00> : vector<128x128xf32>
    %81 = tpu.matmul %79, %80, %cst_51 {dimension_numbers = #tpu.dot_dimension_numbers<[1], [0], [0], [1], [0, 0, 1, 1], [], []>} : vector<128x128xf32>, vector<128x128xf32>, vector<128x128xf32> -> vector<128x128xf32>
    %c0_52 = arith.constant 0 : index
    %c0_53 = arith.constant 0 : index
    %82 = vector.load %arg18[%c0_52, %c0_53] : memref<1x128xf32, #tpu.memory_space<vmem>>, vector<1x128xf32>
    %83 = vector.broadcast %82 : vector<1x128xf32> to vector<128x128xf32>
    %84 = arith.addf %81, %83 : vector<128x128xf32>
    %cst_54 = arith.constant 0.000000e+00 : f32
    %85 = vector.broadcast %cst_54 : f32 to vector<128x128xf32>
    %86 = arith.maximumf %84, %85 : vector<128x128xf32>
    %c0_55 = arith.constant 0 : index
    %c0_56 = arith.constant 0 : index
    %87 = vector.load %arg19[%c0_55, %c0_56] : memref<128x128xf32, #tpu.memory_space<vmem>>, vector<128x128xf32>
    tpu.vector_store %arg19[%c0_55, %c0_56], %86 {strides = array<i32>} : memref<128x128xf32, #tpu.memory_space<vmem>>, vector<128x128xf32>,
    return
  }
  func.func @transform_0(%arg0: i32) -> (i32, i32) {
    %c0_i32 = arith.constant 0 : i32
    %c0_i32_0 = arith.constant 0 : i32
    return %arg0, %c0_i32 : i32, i32
  }
  func.func @transform_1(%arg0: i32) -> (i32, i32) {
    %c0_i32 = arith.constant 0 : i32
    %c0_i32_0 = arith.constant 0 : i32
    %c0_i32_1 = arith.constant 0 : i32
    return %c0_i32, %c0_i32_0 : i32, i32
  }
  func.func @transform_2(%arg0: i32) -> (i32, i32) {
    %c0_i32 = arith.constant 0 : i32
    %c0_i32_0 = arith.constant 0 : i32
    %c0_i32_1 = arith.constant 0 : i32
    return %c0_i32, %c0_i32_0 : i32, i32
  }
  func.func @transform_3(%arg0: i32) -> (i32, i32) {
    %c0_i32 = arith.constant 0 : i32
    %c0_i32_0 = arith.constant 0 : i32
    %c0_i32_1 = arith.constant 0 : i32
    return %c0_i32, %c0_i32_0 : i32, i32
  }
  func.func @transform_4(%arg0: i32) -> (i32, i32) {
    %c0_i32 = arith.constant 0 : i32
    %c0_i32_0 = arith.constant 0 : i32
    %c0_i32_1 = arith.constant 0 : i32
    return %c0_i32, %c0_i32_0 : i32, i32
  }
  func.func @transform_5(%arg0: i32) -> (i32, i32) {
    %c0_i32 = arith.constant 0 : i32
    %c0_i32_0 = arith.constant 0 : i32
    %c0_i32_1 = arith.constant 0 : i32
    return %c0_i32, %c0_i32_0 : i32, i32
  }
  func.func @transform_6(%arg0: i32) -> (i32, i32) {
    %c0_i32 = arith.constant 0 : i32
    %c0_i32_0 = arith.constant 0 : i32
    %c0_i32_1 = arith.constant 0 : i32
    return %c0_i32, %c0_i32_0 : i32, i32
  }
  func.func @transform_7(%arg0: i32) -> (i32, i32) {
    %c0_i32 = arith.constant 0 : i32
    %c0_i32_0 = arith.constant 0 : i32
    %c0_i32_1 = arith.constant 0 : i32
    return %c0_i32, %c0_i32_0 : i32, i32
  }
  func.func @transform_8(%arg0: i32) -> (i32, i32) {
    %c0_i32 = arith.constant 0 : i32
    %c0_i32_0 = arith.constant 0 : i32
    %c0_i32_1 = arith.constant 0 : i32
    return %c0_i32, %c0_i32_0 : i32, i32
  }
  func.func @transform_9(%arg0: i32) -> (i32, i32) {
    %c0_i32 = arith.constant 0 : i32
    %c0_i32_0 = arith.constant 0 : i32
    %c0_i32_1 = arith.constant 0 : i32
    return %c0_i32, %c0_i32_0 : i32, i32
  }
  func.func @transform_10(%arg0: i32) -> (i32, i32) {
    %c0_i32 = arith.constant 0 : i32
    %c0_i32_0 = arith.constant 0 : i32
    %c0_i32_1 = arith.constant 0 : i32
    return %c0_i32, %c0_i32_0 : i32, i32
  }
  func.func @transform_11(%arg0: i32) -> (i32, i32) {
    %c0_i32 = arith.constant 0 : i32
    %c0_i32_0 = arith.constant 0 : i32
    %c0_i32_1 = arith.constant 0 : i32
    return %c0_i32, %c0_i32_0 : i32, i32
  }
  func.func @transform_12(%arg0: i32) -> (i32, i32) {
    %c0_i32 = arith.constant 0 : i32
    %c0_i32_0 = arith.constant 0 : i32
    %c0_i32_1 = arith.constant 0 : i32
    return %c0_i32, %c0_i32_0 : i32, i32
  }
  func.func @transform_13(%arg0: i32) -> (i32, i32) {
    %c0_i32 = arith.constant 0 : i32
    %c0_i32_0 = arith.constant 0 : i32
    %c0_i32_1 = arith.constant 0 : i32
    return %c0_i32, %c0_i32_0 : i32, i32
  }
  func.func @transform_14(%arg0: i32) -> (i32, i32) {
    %c0_i32 = arith.constant 0 : i32
    %c0_i32_0 = arith.constant 0 : i32
    %c0_i32_1 = arith.constant 0 : i32
    return %c0_i32, %c0_i32_0 : i32, i32
  }
  func.func @transform_15(%arg0: i32) -> (i32, i32) {
    %c0_i32 = arith.constant 0 : i32
    %c0_i32_0 = arith.constant 0 : i32
    %c0_i32_1 = arith.constant 0 : i32
    return %c0_i32, %c0_i32_0 : i32, i32
  }
  func.func @transform_16(%arg0: i32) -> (i32, i32) {
    %c0_i32 = arith.constant 0 : i32
    %c0_i32_0 = arith.constant 0 : i32
    %c0_i32_1 = arith.constant 0 : i32
    return %c0_i32, %c0_i32_0 : i32, i32
  }
  func.func @transform_17(%arg0: i32) -> (i32, i32) {
    %c0_i32 = arith.constant 0 : i32
    %c0_i32_0 = arith.constant 0 : i32
    %c0_i32_1 = arith.constant 0 : i32
    return %c0_i32, %c0_i32_0 : i32, i32
  }
  func.func @transform_18(%arg0: i32) -> (i32, i32) {
    %c0_i32 = arith.constant 0 : i32
    %c0_i32_0 = arith.constant 0 : i32
    return %arg0, %c0_i32 : i32, i32
  }
}

module attributes {stable_mosaic.version = 11 : i64} {
  func.func @fused_masknet_kernel(%arg0: i32, %arg1: memref<128x64xf32, #tpu.memory_space<vmem>>, %arg2: memref<1x128xf32, #tpu.memory_space<vmem>>, %arg3: memref<1x128xf32, #tpu.memory_space<vmem>>, %arg4: memref<64x64xf32, #tpu.memory_space<vmem>>, %arg5: memref<1x64xf32, #tpu.memory_space<vmem>>, %arg6: memref<64x128xf32, #tpu.memory_space<vmem>>, %arg7: memref<1x128xf32, #tpu.memory_space<vmem>>, %arg8: memref<128x128xf32, #tpu.memory_space<vmem>>, %arg9: memref<1x128xf32, #tpu.memory_space<vmem>>, %arg10: memref<1x128xf32, #tpu.memory_space<vmem>>, %arg11: memref<1x128xf32, #tpu.memory_space<vmem>>, %arg12: memref<128x128xf32, #tpu.memory_space<vmem>>, %arg13: memref<1x128xf32, #tpu.memory_space<vmem>>, %arg14: memref<128x128xf32, #tpu.memory_space<vmem>>, %arg15: memref<128x128xf32, #tpu.memory_space<vmem>>, %arg16: memref<1x128xf32, #tpu.memory_space<vmem>>, %arg17: memref<128x128xf32, #tpu.memory_space<vmem>>, %arg18: memref<1x128xf32, #tpu.memory_space<vmem>>, %arg19: memref<128x128xf32, #tpu.memory_space<vmem>>) attributes {dimension_semantics = [#tpu.dimension_semantics<parallel>], iteration_bounds = array<i64: 2>, scalar_prefetch = 0 : i64, scratch_operands = 0 : i64, tpu.core_type = #tpu.core_type<tc>, window_params = [{transform_indices = @transform_0, window_bounds = array<i64: 128, 64>}, {pipeline_mode = #tpu.pipeline_mode<synchronous>, transform_indices = @transform_1, window_bounds = array<i64: 1, 128>}, {pipeline_mode = #tpu.pipeline_mode<synchronous>, transform_indices = @transform_2, window_bounds = array<i64: 1, 128>}, {pipeline_mode = #tpu.pipeline_mode<synchronous>, transform_indices = @transform_3, window_bounds = array<i64: 64, 64>}, {pipeline_mode = #tpu.pipeline_mode<synchronous>, transform_indices = @transform_4, window_bounds = array<i64: 1, 64>}, {pipeline_mode = #tpu.pipeline_mode<synchronous>, transform_indices = @transform_5, window_bounds = array<i64: 64, 128>}, {pipeline_mode = #tpu.pipeline_mode<synchronous>, transform_indices = @transform_6, window_bounds = array<i64: 1, 128>}, {pipeline_mode = #tpu.pipeline_mode<synchronous>, transform_indices = @transform_7, window_bounds = array<i64: 128, 128>}, {pipeline_mode = #tpu.pipeline_mode<synchronous>, transform_indices = @transform_8, window_bounds = array<i64: 1, 128>}, {pipeline_mode = #tpu.pipeline_mode<synchronous>, transform_indices = @transform_9, window_bounds = array<i64: 1, 128>}, {pipeline_mode = #tpu.pipeline_mode<synchronous>, transform_indices = @transform_10, window_bounds = array<i64: 1, 128>}, {pipeline_mode = #tpu.pipeline_mode<synchronous>, transform_indices = @transform_11, window_bounds = array<i64: 128, 128>}, {pipeline_mode = #tpu.pipeline_mode<synchronous>, transform_indices = @transform_12, window_bounds = array<i64: 1, 128>}, {pipeline_mode = #tpu.pipeline_mode<synchronous>, transform_indices = @transform_13, window_bounds = array<i64: 128, 128>}, {pipeline_mode = #tpu.pipeline_mode<synchronous>, transform_indices = @transform_14, window_bounds = array<i64: 128, 128>}, {pipeline_mode = #tpu.pipeline_mode<synchronous>, transform_indices = @transform_15, window_bounds = array<i64: 1, 128>}, {pipeline_mode = #tpu.pipeline_mode<synchronous>, transform_indices = @transform_16, window_bounds = array<i64: 128, 128>}, {pipeline_mode = #tpu.pipeline_mode<synchronous>, transform_indices = @transform_17, window_bounds = array<i64: 1, 128>}, {transform_indices = @transform_18, window_bounds = array<i64: 128, 128>}]} {
    %c0 = arith.constant 0 : index
    %c0_0 = arith.constant 0 : index
    %0 = vector.load %arg1[%c0, %c0_0] : memref<128x64xf32, #tpu.memory_space<vmem>>, vector<128x64xf32>
    %cst = arith.constant dense<0.000000e+00> : vector<128xf32>
    %1 = vector.multi_reduction <add>, %0, %cst [1] : vector<128x64xf32> to vector<128xf32>
    %2 = vector.shape_cast %1 : vector<128xf32> to vector<128x1xf32>
    %cst_1 = arith.constant 6.400000e+01 : f32
    %3 = vector.broadcast %cst_1 : f32 to vector<128x1xf32>
    %4 = arith.divf %2, %3 : vector<128x1xf32>
    %5 = vector.broadcast %4 : vector<128x1xf32> to vector<128x64xf32>
    %6 = arith.subf %0, %5 : vector<128x64xf32>
    %7 = vector.broadcast %4 : vector<128x1xf32> to vector<128x64xf32>
    %8 = arith.subf %0, %7 : vector<128x64xf32>
    %9 = arith.mulf %6, %8 : vector<128x64xf32>
    %cst_2 = arith.constant dense<0.000000e+00> : vector<128xf32>
    %10 = vector.multi_reduction <add>, %9, %cst_2 [1] : vector<128x64xf32> to vector<128xf32>
    %11 = vector.shape_cast %10 : vector<128xf32> to vector<128x1xf32>
    %cst_3 = arith.constant 6.400000e+01 : f32
    %12 = vector.broadcast %cst_3 : f32 to vector<128x1xf32>
    %13 = arith.divf %11, %12 : vector<128x1xf32>
    %14 = vector.broadcast %4 : vector<128x1xf32> to vector<128x64xf32>
    %15 = arith.subf %0, %14 : vector<128x64xf32>
    %cst_4 = arith.constant 9.99999974E-6 : f32
    %16 = vector.broadcast %cst_4 : f32 to vector<128x1xf32>
    %17 = arith.addf %13, %16 : vector<128x1xf32>
    %18 = math.rsqrt %17 : vector<128x1xf32>
    %19 = vector.broadcast %18 : vector<128x1xf32> to vector<128x64xf32>
    %20 = arith.mulf %15, %19 : vector<128x64xf32>
    %21 = tpu.concatenate %20, %20 in 1 : vector<128x64xf32>, vector<128x64xf32> -> vector<128x128xf32>
    %c0_5 = arith.constant 0 : index
    %c0_6 = arith.constant 0 : index
    %22 = vector.load %arg2[%c0_5, %c0_6] : memref<1x128xf32, #tpu.memory_space<vmem>>, vector<1x128xf32>
    %23 = vector.broadcast %22 : vector<1x128xf32> to vector<128x128xf32>
    %24 = arith.mulf %21, %23 : vector<128x128xf32>
    %c0_7 = arith.constant 0 : index
    %c0_8 = arith.constant 0 : index
    %25 = vector.load %arg3[%c0_7, %c0_8] : memref<1x128xf32, #tpu.memory_space<vmem>>, vector<1x128xf32>
    %26 = vector.broadcast %25 : vector<1x128xf32> to vector<128x128xf32>
    %27 = arith.addf %24, %26 : vector<128x128xf32>
    %c0_9 = arith.constant 0 : index
    %c0_10 = arith.constant 0 : index
    %28 = vector.load %arg4[%c0_9, %c0_10] : memref<64x64xf32, #tpu.memory_space<vmem>>, vector<64x64xf32>
    %cst_11 = arith.constant dense<0.000000e+00> : vector<128x64xf32>
    %29 = tpu.matmul %0, %28, %cst_11 {dimension_numbers = #tpu.dot_dimension_numbers<[1], [0], [0], [1], [0, 0, 1, 1], [], []>} : vector<128x64xf32>, vector<64x64xf32>, vector<128x64xf32> -> vector<128x64xf32>
    %c0_12 = arith.constant 0 : index
    %c0_13 = arith.constant 0 : index
    %30 = vector.load %arg5[%c0_12, %c0_13] : memref<1x64xf32, #tpu.memory_space<vmem>>, vector<1x64xf32>
    %31 = vector.broadcast %30 : vector<1x64xf32> to vector<128x64xf32>
    %32 = arith.addf %29, %31 : vector<128x64xf32>
    %cst_14 = arith.constant 0.000000e+00 : f32
    %33 = vector.broadcast %cst_14 : f32 to vector<128x64xf32>
    %34 = arith.maximumf %32, %33 : vector<128x64xf32>
    %c0_15 = arith.constant 0 : index
    %c0_16 = arith.constant 0 : index
    %35 = vector.load %arg6[%c0_15, %c0_16] : memref<64x128xf32, #tpu.memory_space<vmem>>, vector<64x128xf32>
    %cst_17 = arith.constant dense<0.000000e+00> : vector<128x128xf32>
    %36 = tpu.matmul %34, %35, %cst_17 {dimension_numbers = #tpu.dot_dimension_numbers<[1], [0], [0], [1], [0, 0, 1, 1], [], []>} : vector<128x64xf32>, vector<64x128xf32>, vector<128x128xf32> -> vector<128x128xf32>
    %c0_18 = arith.constant 0 : index
    %c0_19 = arith.constant 0 : index
    %37 = vector.load %arg7[%c0_18, %c0_19] : memref<1x128xf32, #tpu.memory_space<vmem>>, vector<1x128xf32>
    %38 = vector.broadcast %37 : vector<1x128xf32> to vector<128x128xf32>
    %39 = arith.addf %36, %38 : vector<128x128xf32>
    %40 = arith.mulf %27, %39 : vector<128x128xf32>
    %c0_20 = arith.constant 0 : index
    %c0_21 = arith.constant 0 : index
    %41 = vector.load %arg8[%c0_20, %c0_21] : memref<128x128xf32, #tpu.memory_space<vmem>>, vector<128x128xf32>
    %cst_22 = arith.constant dense<0.000000e+00> : vector<128x128xf32>
    %42 = tpu.matmul %40, %41, %cst_22 {dimension_numbers = #tpu.dot_dimension_numbers<[1], [0], [0], [1], [0, 0, 1, 1], [], []>} : vector<128x128xf32>, vector<128x128xf32>, vector<128x128xf32> -> vector<128x128xf32>
    %c0_23 = arith.constant 0 : index
    %c0_24 = arith.constant 0 : index
    %43 = vector.load %arg9[%c0_23, %c0_24] : memref<1x128xf32, #tpu.memory_space<vmem>>, vector<1x128xf32>
    %44 = vector.broadcast %43 : vector<1x128xf32> to vector<128x128xf32>
    %45 = arith.addf %42, %44 : vector<128x128xf32>
    %c0_25 = arith.constant 0 : index
    %c0_26 = arith.constant 0 : index
    %46 = vector.load %arg14[%c0_25, %c0_26] : memref<128x128xf32, #tpu.memory_space<vmem>>, vector<128x128xf32>
    %cst_27 = arith.constant dense<0.000000e+00> : vector<128x128xf32>
    %47 = tpu.matmul %45, %46, %cst_27 {dimension_numbers = #tpu.dot_dimension_numbers<[1], [0], [0], [1], [0, 0, 1, 1], [], []>} : vector<128x128xf32>, vector<128x128xf32>, vector<128x128xf32> -> vector<128x128xf32>
    %48 = arith.mulf %45, %45 : vector<128x128xf32>
    %c0_28 = arith.constant 0 : index
    %c0_29 = arith.constant 0 : index
    %49 = vector.load %arg14[%c0_28, %c0_29] : memref<128x128xf32, #tpu.memory_space<vmem>>, vector<128x128xf32>
    %cst_30 = arith.constant dense<0.000000e+00> : vector<128x128xf32>
    %50 = tpu.matmul %48, %49, %cst_30 {dimension_numbers = #tpu.dot_dimension_numbers<[1], [0], [0], [1], [0, 0, 1, 1], [], []>} : vector<128x128xf32>, vector<128x128xf32>, vector<128x128xf32> -> vector<128x128xf32>
    %51 = arith.mulf %47, %47 : vector<128x128xf32>
    %52 = arith.subf %50, %51 : vector<128x128xf32>
    %cst_31 = arith.constant 0.000000e+00 : f32
    %53 = vector.broadcast %cst_31 : f32 to vector<128x128xf32>
    %54 = arith.maximumf %52, %53 : vector<128x128xf32>
    %55 = arith.subf %45, %47 : vector<128x128xf32>
    %cst_32 = arith.constant 9.99999974E-6 : f32
    %56 = vector.broadcast %cst_32 : f32 to vector<128x128xf32>
    %57 = arith.addf %54, %56 : vector<128x128xf32>
    %58 = math.rsqrt %57 : vector<128x128xf32>
    %59 = arith.mulf %55, %58 : vector<128x128xf32>
    %c0_33 = arith.constant 0 : index
    %c0_34 = arith.constant 0 : index
    %60 = vector.load %arg10[%c0_33, %c0_34] : memref<1x128xf32, #tpu.memory_space<vmem>>, vector<1x128xf32>
    %61 = vector.broadcast %60 : vector<1x128xf32> to vector<128x128xf32>
    %62 = arith.mulf %59, %61 : vector<128x128xf32>
    %c0_35 = arith.constant 0 : index
    %c0_36 = arith.constant 0 : index
    %63 = vector.load %arg11[%c0_35, %c0_36] : memref<1x128xf32, #tpu.memory_space<vmem>>, vector<1x128xf32>
    %64 = vector.broadcast %63 : vector<1x128xf32> to vector<128x128xf32>
    %65 = arith.addf %62, %64 : vector<128x128xf32>
    %cst_37 = arith.constant 0.000000e+00 : f32
    %66 = vector.broadcast %cst_37 : f32 to vector<128x128xf32>
    %67 = arith.maximumf %65, %66 : vector<128x128xf32>
    %c0_38 = arith.constant 0 : index
    %c0_39 = arith.constant 0 : index
    %68 = vector.load %arg12[%c0_38, %c0_39] : memref<128x128xf32, #tpu.memory_space<vmem>>, vector<128x128xf32>
    %cst_40 = arith.constant dense<0.000000e+00> : vector<128x128xf32>
    %69 = tpu.matmul %67, %68, %cst_40 {dimension_numbers = #tpu.dot_dimension_numbers<[1], [0], [0], [1], [0, 0, 1, 1], [], []>} : vector<128x128xf32>, vector<128x128xf32>, vector<128x128xf32> -> vector<128x128xf32>
    %c0_41 = arith.constant 0 : index
    %c0_42 = arith.constant 0 : index
    %70 = vector.load %arg13[%c0_41, %c0_42] : memref<1x128xf32, #tpu.memory_space<vmem>>, vector<1x128xf32>
    %71 = vector.broadcast %70 : vector<1x128xf32> to vector<128x128xf32>
    %72 = arith.addf %69, %71 : vector<128x128xf32>
    %c0_43 = arith.constant 0 : index
    %c0_44 = arith.constant 0 : index
    %73 = vector.load %arg15[%c0_43, %c0_44] : memref<128x128xf32, #tpu.memory_space<vmem>>, vector<128x128xf32>
    %cst_45 = arith.constant dense<0.000000e+00> : vector<128x128xf32>
    %74 = tpu.matmul %72, %73, %cst_45 {dimension_numbers = #tpu.dot_dimension_numbers<[1], [0], [0], [1], [0, 0, 1, 1], [], []>} : vector<128x128xf32>, vector<128x128xf32>, vector<128x128xf32> -> vector<128x128xf32>
    %c0_46 = arith.constant 0 : index
    %c0_47 = arith.constant 0 : index
    %75 = vector.load %arg16[%c0_46, %c0_47] : memref<1x128xf32, #tpu.memory_space<vmem>>, vector<1x128xf32>
    %76 = vector.broadcast %75 : vector<1x128xf32> to vector<128x128xf32>
    %77 = arith.addf %74, %76 : vector<128x128xf32>
    %cst_48 = arith.constant 0.000000e+00 : f32
    %78 = vector.broadcast %cst_48 : f32 to vector<128x128xf32>
    %79 = arith.maximumf %77, %78 : vector<128x128xf32>
    %c0_49 = arith.constant 0 : index
    %c0_50 = arith.constant 0 : index
    %80 = vector.load %arg17[%c0_49, %c0_50] : memref<128x128xf32, #tpu.memory_space<vmem>>, vector<128x128xf32>
    %cst_51 = arith.constant dense<0.000000e+00> : vector<128x128xf32>
    %81 = tpu.matmul %79, %80, %cst_51 {dimension_numbers = #tpu.dot_dimension_numbers<[1], [0], [0], [1], [0, 0, 1, 1], [], []>} : vector<128x128xf32>, vector<128x128xf32>, vector<128x128xf32> -> vector<128x128xf32>
    %c0_52 = arith.constant 0 : index
    %c0_53 = arith.constant 0 : index
    %82 = vector.load %arg18[%c0_52, %c0_53] : memref<1x128xf32, #tpu.memory_space<vmem>>, vector<1x128xf32>
    %83 = vector.broadcast %82 : vector<1x128xf32> to vector<128x128xf32>
    %84 = arith.addf %81, %83 : vector<128x128xf32>
    %cst_54 = arith.constant 0.000000e+00 : f32
    %85 = vector.broadcast %cst_54 : f32 to vector<128x128xf32>
    %86 = arith.maximumf %84, %85 : vector<128x128xf32>
    %c0_55 = arith.constant 0 : index
    %c0_56 = arith.constant 0 : index
    %87 = vector.load %arg19[%c0_55, %c0_56] : memref<128x128xf32, #tpu.memory_space<vmem>>, vector<128x128xf32>
    tpu.vector_store %arg19[%c0_55, %c0_56], %86 {strides = array<i32>} : memref<128x128xf32, #tpu.memory_space<vmem>>, vector<128x128xf32>,
    return
  }
  func.func @transform_0(%arg0: i32) -> (i32, i32) {
    %c0_i32 = arith.constant 0 : i32
    %c0_i32_0 = arith.constant 0 : i32
    return %arg0, %c0_i32 : i32, i32
  }
  func.func @transform_1(%arg0: i32) -> (i32, i32) {
    %c0_i32 = arith.constant 0 : i32
    %c0_i32_0 = arith.constant 0 : i32
    %c0_i32_1 = arith.constant 0 : i32
    return %c0_i32, %c0_i32_0 : i32, i32
  }
  func.func @transform_2(%arg0: i32) -> (i32, i32) {
    %c0_i32 = arith.constant 0 : i32
    %c0_i32_0 = arith.constant 0 : i32
    %c0_i32_1 = arith.constant 0 : i32
    return %c0_i32, %c0_i32_0 : i32, i32
  }
  func.func @transform_3(%arg0: i32) -> (i32, i32) {
    %c0_i32 = arith.constant 0 : i32
    %c0_i32_0 = arith.constant 0 : i32
    %c0_i32_1 = arith.constant 0 : i32
    return %c0_i32, %c0_i32_0 : i32, i32
  }
  func.func @transform_4(%arg0: i32) -> (i32, i32) {
    %c0_i32 = arith.constant 0 : i32
    %c0_i32_0 = arith.constant 0 : i32
    %c0_i32_1 = arith.constant 0 : i32
    return %c0_i32, %c0_i32_0 : i32, i32
  }
  func.func @transform_5(%arg0: i32) -> (i32, i32) {
    %c0_i32 = arith.constant 0 : i32
    %c0_i32_0 = arith.constant 0 : i32
    %c0_i32_1 = arith.constant 0 : i32
    return %c0_i32, %c0_i32_0 : i32, i32
  }
  func.func @transform_6(%arg0: i32) -> (i32, i32) {
    %c0_i32 = arith.constant 0 : i32
    %c0_i32_0 = arith.constant 0 : i32
    %c0_i32_1 = arith.constant 0 : i32
    return %c0_i32, %c0_i32_0 : i32, i32
  }
  func.func @transform_7(%arg0: i32) -> (i32, i32) {
    %c0_i32 = arith.constant 0 : i32
    %c0_i32_0 = arith.constant 0 : i32
    %c0_i32_1 = arith.constant 0 : i32
    return %c0_i32, %c0_i32_0 : i32, i32
  }
  func.func @transform_8(%arg0: i32) -> (i32, i32) {
    %c0_i32 = arith.constant 0 : i32
    %c0_i32_0 = arith.constant 0 : i32
    %c0_i32_1 = arith.constant 0 : i32
    return %c0_i32, %c0_i32_0 : i32, i32
  }
  func.func @transform_9(%arg0: i32) -> (i32, i32) {
    %c0_i32 = arith.constant 0 : i32
    %c0_i32_0 = arith.constant 0 : i32
    %c0_i32_1 = arith.constant 0 : i32
    return %c0_i32, %c0_i32_0 : i32, i32
  }
  func.func @transform_10(%arg0: i32) -> (i32, i32) {
    %c0_i32 = arith.constant 0 : i32
    %c0_i32_0 = arith.constant 0 : i32
    %c0_i32_1 = arith.constant 0 : i32
    return %c0_i32, %c0_i32_0 : i32, i32
  }
  func.func @transform_11(%arg0: i32) -> (i32, i32) {
    %c0_i32 = arith.constant 0 : i32
    %c0_i32_0 = arith.constant 0 : i32
    %c0_i32_1 = arith.constant 0 : i32
    return %c0_i32, %c0_i32_0 : i32, i32
  }
  func.func @transform_12(%arg0: i32) -> (i32, i32) {
    %c0_i32 = arith.constant 0 : i32
    %c0_i32_0 = arith.constant 0 : i32
    %c0_i32_1 = arith.constant 0 : i32
    return %c0_i32, %c0_i32_0 : i32, i32
  }
  func.func @transform_13(%arg0: i32) -> (i32, i32) {
    %c0_i32 = arith.constant 0 : i32
    %c0_i32_0 = arith.constant 0 : i32
    %c0_i32_1 = arith.constant 0 : i32
    return %c0_i32, %c0_i32_0 : i32, i32
  }
  func.func @transform_14(%arg0: i32) -> (i32, i32) {
    %c0_i32 = arith.constant 0 : i32
    %c0_i32_0 = arith.constant 0 : i32
    %c0_i32_1 = arith.constant 0 : i32
    return %c0_i32, %c0_i32_0 : i32, i32
  }
  func.func @transform_15(%arg0: i32) -> (i32, i32) {
    %c0_i32 = arith.constant 0 : i32
    %c0_i32_0 = arith.constant 0 : i32
    %c0_i32_1 = arith.constant 0 : i32
    return %c0_i32, %c0_i32_0 : i32, i32
  }
  func.func @transform_16(%arg0: i32) -> (i32, i32) {
    %c0_i32 = arith.constant 0 : i32
    %c0_i32_0 = arith.constant 0 : i32
    %c0_i32_1 = arith.constant 0 : i32
    return %c0_i32, %c0_i32_0 : i32, i32
  }
  func.func @transform_17(%arg0: i32) -> (i32, i32) {
    %c0_i32 = arith.constant 0 : i32
    %c0_i32_0 = arith.constant 0 : i32
    %c0_i32_1 = arith.constant 0 : i32
    return %c0_i32, %c0_i32_0 : i32, i32
  }
  func.func @transform_18(%arg0: i32) -> (i32, i32) {
    %c0_i32 = arith.constant 0 : i32
    %c0_i32_0 = arith.constant 0 : i32
    return %arg0, %c0_i32 : i32, i32
  }
}

</mosaic_0001>

<bundles_post_ra>
// kernel: tpu_custom_call.1
= control target key start
LH: loop header
LB: loop body
LE: loop exit
PB: predicated region body
PF: predicated region fallthrough
CT: control target
= control target key end

     0   :  { %s5176_s0 = inlined_call_operand.vmem [shape: f32[256,64], index: 0, kind: input, shape index: {}]   ;;  %s5177_s1 = inlined_call_operand.hbm [shape: f32[1,128], index: 1, kind: input, shape index: {}]   ;;  %s5178_s2 = inlined_call_operand.hbm [shape: f32[1,128], index: 2, kind: input, shape index: {}]   ;;  %s5179_s3 = inlined_call_operand.hbm [shape: f32[64,64], index: 3, kind: input, shape index: {}]   ;;  %s5180_s4 = inlined_call_operand.vmem [shape: f32[1,64], index: 4, kind: input, shape index: {}]   ;;  %s5181_s5 = inlined_call_operand.hbm [shape: f32[64,128], index: 5, kind: input, shape index: {}]   ;;  %s5182_s6 = inlined_call_operand.vmem [shape: f32[1,128], index: 6, kind: input, shape index: {}]   ;;  %s5183_s7 = inlined_call_operand.vmem [shape: f32[128,128], index: 7, kind: input, shape index: {}]   ;;  %s5184_s8 = inlined_call_operand.vmem [shape: f32[1,128], index: 8, kind: input, shape index: {}]   ;;  %s5185_s9 = inlined_call_operand.vmem [shape: f32[1,128], index: 9, kind: input, shape index: {}]   ;;  %s5186_s10 = inlined_call_operand.vmem [shape: f32[1,128], index: 10, kind: input, shape index: {}]   ;;  %s5187_s11 = inlined_call_operand.vmem [shape: f32[128,128], index: 11, kind: input, shape index: {}]   ;;  %s5188_s12 = inlined_call_operand.vmem [shape: f32[1,128], index: 12, kind: input, shape index: {}]   ;;  %s5189_s13 = inlined_call_operand.vmem [shape: f32[128,128], index: 13, kind: input, shape index: {}]   ;;  %s5190_s14 = inlined_call_operand.hbm [shape: f32[128,128], index: 14, kind: input, shape index: {}]   ;;  %s5191_s15 = inlined_call_operand.vmem [shape: f32[1,128], index: 15, kind: input, shape index: {}]   ;;  %s5192_s16 = inlined_call_operand.hbm [shape: f32[128,128], index: 16, kind: input, shape index: {}]   ;;  %s5193_s17 = inlined_call_operand.vmem [shape: f32[1,128], index: 17, kind: input, shape index: {}]   ;;  %s5194_s18 = inlined_call_operand.hbm [shape: f32[256,128], index: 18, kind: output, shape index: {}]  }
   0x1   :  { %5209 = sst [smem:[#allocation26_spill]] %s5176_s0 }
   0x2   :  { %5210 = sst [smem:[#allocation27_spill]] %s5177_s1 }
   0x3   :  { %5211 = sst [smem:[#allocation28_spill]] %s5178_s2 }
   0x4   :  { %5212 = sst [smem:[#allocation29_spill]] %s5194_s18 }
   0x5   :  { %23 = vsyncpa [#allocation3], 0 }
   0x6   :  { %24 = vsyncpa [#allocation6], 0 }
   0x7   :  { %25 = vsyncpa [#allocation9], 0 }
   0x8   :  { %26 = vsyncpa [#allocation12], 0 }
   0x9   :  { %27 = vsyncpa [#allocation4], 0 }
   0xa   :  { %29 = vsyncpa [#allocation4 + $0x1], 0  ;;  %s4046_s27 = smov 0   ;;  %s4048_s28 = smov 0  }
   0xb   :  { %s4050_s29 = smov 0   ;;  %s4052_s30 = smov 0  }
   0xc LB: > { %5213 = sst [smem:[#allocation19_spill]] %s3925_s27  ;;  %s4067_s0 = sadd.s32 4294967295, %s3937_s30   ;;  %s3937_s30 = sphi %s4052_s30, %s5243_s30   ;;  %s3933_s29 = sphi %s4050_s29, %s5245_s29   ;;  %s3929_s28 = sphi %s4048_s28, %s5247_s28   ;;  %s3925_s27 = sphi %s4046_s27, %s5246_s27  }
   0xd   : > { %5214 = sst [smem:[#allocation20_spill]] %s3933_s29  ;;  %s2813_s19 = sadd.s32 4294967294, %s3937_s30  }
   0xe   : > { %5215 = sst [smem:[#allocation21_spill]] %s3937_s30  ;;  %s4071_s1 = sadd.s32 1, %s3937_s30  }
   0xf   : > { %5216 = sst [smem:[#allocation22_spill]] %s4071_s1  ;;  %s425_s20 = sadd.s32 1, %s3933_s29 }
  0x10   : > { %s422_s21 = ssub.s32 %s3937_s30, %s4071_s1  ;;  %p435_p0 = scmp.ne.s32.totalorder %s3933_s29, %s3929_s28 }
  0x11   : > { %p423_p1 = scmp.eq.s32.totalorder %s422_s21, 0  ;;  %p436_p2 = scmp.eq.s32.totalorder %s4067_s0, 1 }
  0x12   : > { %p441_p3 = scmp.ne.s32.totalorder %s3929_s28, %s3925_s27  ;;  %p442_p4 = scmp.eq.s32.totalorder %s2813_s19, 1 }
  0x13   : > { %s4082_s22 = scalar_select %p423_p1, %s3933_s29, %s425_s20  }
  0x14   : > { %p4084_p5 = por %p436_p2, %p435_p0  ;;  %p4088_p6 = por %p442_p4, %p441_p3 }
  0x15   : > { %5217 = sst [smem:[#allocation23_spill]] %s4082_s22  ;;  %p2814_p7 = scmp.ge.s32.totalorder %s3937_s30, 1 }
  0x16   : > { %s5218_s2 = scalar_select %p4084_p5, 1, 0 }
  0x17   : > { %s5220_s23 = scalar_select %p4088_p6, 1, 0 }
  0x18   : > { %5219 = sst [smem:[#allocation24_spill]] %s5218_s2  ;;  %p449_p8 = scmp.lt.s32.totalorder %s3937_s30, 3 }
  0x19   : > { %5221 = sst [smem:[#allocation25_spill]] %s5220_s23  ;;  %p5201_p9 = scmp.eq.s32.totalorder %s4067_s0, 0 }
  0x1a   : > { %p4095_p10 = pnand %p2814_p7, %p449_p8  ;;  %s3939_s25 = smov [#allocation5]  }
  0x1b   : > { %s473_s26 = sshll.u32 %s3939_s25, 4  ;;  %s3940_s20 = smov [#allocation8]   ;;  %s474_s26 = int_to_ptr.vmem [resolvable:$true] %s473_s26 }
  0x1c   : > { %p3562_p11 = pneg %p4095_p10  ;;  %s499_s21 = sshll.u32 %s3940_s20, 4  ;;  %s4107_s21 = int_to_ptr.vmem [resolvable:$true] %s499_s21 }
  0x1d   : > { %s3941_s22 = smov [#allocation2]   ;;  %s3716_s25 = scalar_lea.vmem %s474_s26, 16 }
  0x1e   : > { %p4103_p12 = pnand %p5201_p9, %p3562_p11  ;;  %s462_s29 = sshll.u32 %s3941_s22, 4  ;;  %s463_s29 = int_to_ptr.vmem [resolvable:$true] %s462_s29 }
  0x1f   : > { %p3717_p0 = scmp.ne.s32.totalorder %s474_s26, %s3716_s25  ;;  %s3723_s23 = scalar_lea.vmem %s474_s26, 32 }
  0x20   : > { %p4111_p13 = pneg %p4103_p12  ;;  %p3724_p3 = scmp.lt.s32.totalorder %s474_s26, %s474_s26 }
  0x21   : > { %p3725_p4 = scmp.lt.s32.totalorder %s3723_s23, %s3716_s25 }
  0x22   : > { %p3719_p1 = pnand %p3717_p0, %p4111_p13 }
  0x23   : > { %p3726_p7 = por %p3725_p4, %p3724_p3 }
  0x24   : > { %p3720_p2 = pneg %p3719_p1 }
  0x26   : > { %p3727_p8 = pnand %p3726_p7, %p3720_p2 }
  0x28   : > { %3730 = shalt.err (!%p3727_p8)
}
  0x29   : > { %s5225_s27 = sld [smem:[#allocation28_spill]]  ;;  %s3742_s30 = scalar_lea.vmem %s4107_s21, 1024 }
  0x2a   : > { %p3743_p11 = scmp.ne.s32.totalorder %s4107_s21, %s3742_s30  ;;  %p3750_p9 = scmp.lt.s32.totalorder %s4107_s21, %s4107_s21 }
  0x2b   : > { %p3751_p3 = scmp.lt.s32.totalorder %s3742_s30, %s3742_s30 }
  0x2c   : > { %p3745_p0 = pnand %p3743_p11, %p4111_p13 }
  0x2d   : > { %p3752_p2 = por %p3751_p3, %p3750_p9 }
  0x2e   : > { %p3746_p1 = pneg %p3745_p0 }
  0x2f   : > { %3568 = dma.hbm_to_vmem [thread:$0]  (!%p4103_p12), %s5225_s27, 16, %s474_s26, [#allocation6]  }
  0x30   : > { %p3753_p4 = pnand %p3752_p2, %p3746_p1 }
  0x32   : > { %3756 = shalt.err (!%p3753_p4)
}
  0x33   : > { %s5205_s23 = smov 128   ;;  %s5207_s25 = smov 8  }
  0x34   : > { %3574 = dma.hbm_to_vmem [thread:$0]  (!%p4103_p12), %s5181_s5, 1024, %s4107_s21, [#allocation9], %s5205_s23, %s5205_s23, %s5207_s25  }
  0x35   : > { %s3768_s22 = scalar_lea.vmem %s463_s29, 16  ;;  %s3775_s30 = scalar_lea.vmem %s463_s29, 32 }
  0x36   : > { %p3769_p7 = scmp.ne.s32.totalorder %s463_s29, %s3768_s22  ;;  %p3776_p11 = scmp.lt.s32.totalorder %s463_s29, %s463_s29 }
  0x37   : > { %p3777_p0 = scmp.lt.s32.totalorder %s3775_s30, %s3768_s22 }
  0x38   : > { %p3771_p9 = pnand %p3769_p7, %p4111_p13 }
  0x39   : > { %p3778_p1 = por %p3777_p0, %p3776_p11 }
  0x3a   : > { %p3772_p8 = pneg %p3771_p9 }
  0x3c   : > { %p3779_p3 = pnand %p3778_p1, %p3772_p8 }
  0x3e   : > { %3782 = shalt.err (!%p3779_p3)
}
  0x3f   : > { %s5226_s2 = sld [smem:[#allocation27_spill]]  ;;  %s3944_s21 = smov [#allocation7]  }
  0x40   : > { %s483_s27 = sshll.u32 %s3944_s21, 4  ;;  %s3945_s26 = smov [#allocation10]   ;;  %s484_s27 = int_to_ptr.vmem [resolvable:$true] %s483_s27 }
  0x41   : > { %s536_s23 = sshll.u32 %s3945_s26, 4  ;;  %s3794_s25 = scalar_lea.vmem %s484_s27, 1024  ;;  %s537_s23 = int_to_ptr.vmem [resolvable:$true] %s536_s23 }
  0x42   : > { %p3795_p2 = scmp.ne.s32.totalorder %s484_s27, %s3794_s25  ;;  %p3802_p9 = scmp.lt.s32.totalorder %s484_s27, %s484_s27 }
  0x43   : > { %p3803_p8 = scmp.lt.s32.totalorder %s3794_s25, %s3794_s25 }
  0x44   : > { %p3797_p4 = pnand %p3795_p2, %p4111_p13 }
  0x45   : > { %3565 = dma.hbm_to_vmem [thread:$0]  (!%p4103_p12), %s5226_s2, 16, %s463_s29, [#allocation3]  }
  0x46   : > { %p3798_p7 = pneg %p3797_p4  ;;  %p3804_p11 = por %p3803_p8, %p3802_p9 }
  0x48   : > { %p3805_p0 = pnand %p3804_p11, %p3798_p7 }
  0x4a   : > { %3808 = shalt.err (!%p3805_p0)
}
  0x4b   : > { %s5227_s18 = smov 8   ;;  %s5228_s22 = smov 128  }
  0x4c   : > { %3571 = dma.hbm_to_vmem [thread:$0]  (!%p4103_p12), %s5179_s3, 1024, %s484_s27, [#allocation6], %s5228_s22, %s5228_s22, %s5227_s18  }
  0x4d   : > { %s3820_s30 = scalar_lea.vmem %s537_s23, 2048  ;;  %p3828_p4 = scmp.lt.s32.totalorder %s537_s23, %s537_s23 }
  0x4e   : > { %p3821_p1 = scmp.ne.s32.totalorder %s537_s23, %s3820_s30  ;;  %p3829_p9 = scmp.lt.s32.totalorder %s3820_s30, %s3820_s30 }
  0x50   : > { %p3823_p3 = pnand %p3821_p1, %p4111_p13  ;;  %p3830_p7 = por %p3829_p9, %p3828_p4 }
  0x52   : > { %p3824_p2 = pneg %p3823_p3 }
  0x54   : > { %p3831_p8 = pnand %p3830_p7, %p3824_p2 }
  0x56   : > { %3834 = shalt.err (!%p3831_p8)
}
  0x57   : > { %3577 = dma.hbm_to_vmem [thread:$0]  (!%p4103_p12), %s5190_s14, 2048, %s537_s23, [#allocation9], %s5228_s22, %s5228_s22, %s5227_s18  }
  0x58   : > { %s3946_s21 = smov [#allocation11]  }
  0x59   : > { %s552_s27 = sshll.u32 %s3946_s21, 4  ;;  %s553_s27 = int_to_ptr.vmem [resolvable:$true] %s552_s27 }
  0x5a   : > { %s3846_s26 = scalar_lea.vmem %s553_s27, 2048  ;;  %p3854_p3 = scmp.lt.s32.totalorder %s553_s27, %s553_s27 }
  0x5b   : > { %p3847_p11 = scmp.ne.s32.totalorder %s553_s27, %s3846_s26  ;;  %p3855_p2 = scmp.lt.s32.totalorder %s3846_s26, %s3846_s26 }
  0x5d   : > { %p3849_p0 = pnand %p3847_p11, %p4111_p13  ;;  %p3856_p4 = por %p3855_p2, %p3854_p3 }
  0x5f   : > { %p3850_p1 = pneg %p3849_p0 }
  0x61   : > { %p3857_p9 = pnand %p3856_p4, %p3850_p1 }
  0x63   : > { %3860 = shalt.err (!%p3857_p9)
}
  0x64   : > { %3580 = dma.hbm_to_vmem [thread:$0]  (!%p4103_p12), %s5192_s16, 2048, %s553_s27, [#allocation12], %s5228_s22, %s5228_s22, %s5227_s18  }
  0x65   : > { %580 = sbr.rel (%p4095_p10) target bundleno = 1624 (0x658), region = 92  ;;  %p5229_p13 = scmp.eq.s32.totalorder (!%p4095_p10), %s4067_s0, 0 }
  0x6a   : > { %3904 = dma.done.wait (%p5229_p13), [#allocation3], 16   ;;  %p5230_p7 = pmov %p5229_p13 }
  0x6c   : > { %3906 = vsyncadd (%p5230_p7), [#allocation3], 4294967280  ;;  %p5231_p8 = pmov %p5230_p7 }
  0x6d   : > { %p5232_p11 = pmov %p5230_p7 }
  0x6e   : > { %3908 = dma.done.wait (%p5231_p8), [#allocation6], 1040  }
  0x6f   : > { %3910 = vsyncadd (%p5232_p11), [#allocation6], 4294966256  ;;  %p5233_p0 = pmov %p5230_p7 }
  0x71   : > { %3912 = dma.done.wait (%p5233_p0), [#allocation9], 3072   ;;  %p5234_p12 = pmov %p5233_p0 }
  0x72   : > { %p5235_p10 = pmov %p5233_p0 }
  0x73   : > { %3914 = vsyncadd (%p5234_p12), [#allocation9], 4294964224 }
  0x74   : > { %3916 = dma.done.wait (%p5235_p10), [#allocation12], 2048   ;;  %p5236_p1 = pmov %p5233_p0 }
  0x75   : > { %s2830_s1 = sshll.u32 %s4067_s0, 4  ;;  %vm677_vm0 = vcmask 523264   ;;  %s5237_s22 = sld [smem:[#allocation26_spill]]  ;;  %v1020_v6 = vld [vmem:[#allocation7 + $0x38] sm:$0xff]  ;;  %v1019_v7 = vld [vmem:[#allocation7 + $0x30] sm:$0xff]  ;;  %v1018_v12 = vld [vmem:[#allocation7 + $0x28] sm:$0xff] }
  0x76   : > { %3918 = vsyncadd (%p5236_p1), [#allocation12], 4294965248  ;;  %p655_p3 = scmp.lt.s32.totalorder %s2830_s1, 31  ;;  %3120 = vmatprep.subr.mxu0 %v1020_v6  ;;  %v1017_v16 = vld [vmem:[#allocation7 + $0x20] sm:$0xff]  ;;  %v1016_v18 = vld [vmem:[#allocation7 + $0x18] sm:$0xff]  ;;  %s3947_s29 = smov 64  }
  0x77   : > { %3121 = vmatpush3.msra.mxu0 %v1020_v6  ;;  %v1015_v23 = vld [vmem:[#allocation7 + $0x10] sm:$0xff]  ;;  %v1014_v27 = vld [vmem:[#allocation7 + $0x8] sm:$0xff]  ;;  %v1013_v29 = vld [vmem:[#allocation7] sm:$0xff]  ;;  %s2879_s26 = sshll.u32 %s4067_s0, 11 }
  0x78   : > { %s5249_s1 = smov (!%p655_p3, %s2830_s1), 31  ;;  %3122 = vmatprep.subr.mxu0 %v1019_v7  ;;  %v1244_v40 = vld [vmem:[#allocation8 + $0x38] sm:$0xff]  ;;  %v1243_v41 = vld [vmem:[#allocation8 + $0x30] sm:$0xff]  ;;  %v1242_v42 = vld [vmem:[#allocation8 + $0x28] sm:$0xff] }
  0x79   : > { %s2831_s24 = sshll.u32 %s5249_s1, 3  ;;  %3123 = vmatpush3.msra.mxu0 %v1019_v7  ;;  %3160 = vmatprep.subr.mxu1 %v1244_v40  ;;  %v1241_v43 = vld [vmem:[#allocation8 + $0x20] sm:$0xff]  ;;  %v1240_v44 = vld [vmem:[#allocation8 + $0x18] sm:$0xff]  ;;  %v1239_v45 = vld [vmem:[#allocation8 + $0x10] sm:$0xff] }
  0x7a   : > { %3124 = vmatprep.subr.mxu0 %v1018_v12  ;;  %3161 = vmatpush3.msra.mxu1 %v1244_v40  ;;  %v1238_v46 = vld [vmem:[#allocation8 + $0x8] sm:$0xff]  ;;  %v1237_v47 = vld [vmem:[#allocation8] sm:$0xff] }
  0x7b   : > { %s4196_s2 = scalar_lea.vmem %s5237_s22, %s2831_s24  ;;  %3125 = vmatpush3.msra.mxu0 %v1018_v12  ;;  %3162 = vmatprep.subr.mxu1 %v1243_v41  ;;  %s5239_s24 = sld [smem:[#allocation29_spill]] }
  0x7c   : > { %v4199_v0 = vld [vmem:[%s4196_s2] sm:$0xff]  ;;  %v4202_v1 = vld [vmem:[%s4196_s2 + $0x10] sm:$0xff]  ;;  %v4205_v2 = vld [vmem:[%s4196_s2 + $0x8] sm:$0xff]  ;;  %3126 = vmatprep.subr.mxu0 %v1017_v16  ;;  %3163 = vmatpush3.msra.mxu1 %v1243_v41  ;;  %s3948_s22 = smov [#allocation13]  }
  0x7d   : > { %v678_v3 = vsel %vm677_vm0, %v4199_v0, 0.0  ;;  %v684_v4 = vsel %vm677_vm0, %v4202_v1, 0.0  ;;  %v4212_v5 = vld [vmem:[%s4196_s2 + $0x18] sm:$0xff]  ;;  %3136 = vmatprep.mubr.msk.f32.mxu0 %vm677_vm0, %v4199_v0  ;;  %v681_v8 = vsel %vm677_vm0, %v4205_v2, 0.0  ;;  %v4221_v10 = vld [vmem:[%s4196_s2 + $0x20] sm:$0xff]  ;;  %v4224_v11 = vld [vmem:[%s4196_s2 + $0x28] sm:$0xff]  ;;  %3127 = vmatpush3.msra.mxu0 %v1017_v16 }
  0x7e   : > { %679 = vadd.xlane.f32.xlu0 %v678_v3  ;;  %685 = vadd.xlane.f32.xlu1 %v684_v4  ;;  %v687_v9 = vsel %vm677_vm0, %v4212_v5, 0.0  ;;  %v690_v13 = vsel %vm677_vm0, %v4221_v10, 0.0  ;;  %v693_v14 = vsel %vm677_vm0, %v4224_v11, 0.0  ;;  %v4231_v15 = vld [vmem:[%s4196_s2 + $0x30] sm:$0xff]  ;;  %v4234_v17 = vld [vmem:[%s4196_s2 + $0x38] sm:$0xff]  ;;  %v4241_v21 = vld [vmem:[%s4196_s2 + $0x40] sm:$0xff] }
  0x7f   : > { %v696_v19 = vsel %vm677_vm0, %v4231_v15, 0.0  ;;  %v699_v20 = vsel %vm677_vm0, %v4234_v17, 0.0  ;;  %v4244_v22 = vld [vmem:[%s4196_s2 + $0x48] sm:$0xff]  ;;  %3128 = vmatprep.subr.mxu0 %v1016_v18  ;;  %v702_v24 = vsel %vm677_vm0, %v4241_v21, 0.0  ;;  %v4251_v26 = vld [vmem:[%s4196_s2 + $0x50] sm:$0xff]  ;;  %v4254_v28 = vld [vmem:[%s4196_s2 + $0x58] sm:$0xff]  ;;  %3164 = vmatprep.subr.mxu1 %v1242_v42 }
  0x80   : > { %3129 = vmatpush3.msra.mxu0 %v1016_v18  ;;  %v705_v25 = vsel %vm677_vm0, %v4244_v22, 0.0  ;;  %v708_v30 = vsel %vm677_vm0, %v4251_v26, 0.0  ;;  %v711_v31 = vsel %vm677_vm0, %v4254_v28, 0.0  ;;  %v4261_v32 = vld [vmem:[%s4196_s2 + $0x60] sm:$0xff]  ;;  %v4264_v33 = vld [vmem:[%s4196_s2 + $0x68] sm:$0xff]  ;;  %v4273_v36 = vld [vmem:[%s4196_s2 + $0x70] sm:$0xff]  ;;  %3165 = vmatpush3.msra.mxu1 %v1242_v42 }
  0x81   : > { %3130 = vmatprep.subr.mxu0 %v1015_v23  ;;  %v714_v34 = vsel %vm677_vm0, %v4261_v32, 0.0  ;;  %v717_v35 = vsel %vm677_vm0, %v4264_v33, 0.0  ;;  %v4276_v37 = vld [vmem:[%s4196_s2 + $0x78] sm:$0xff]  ;;  %v720_v38 = vsel %vm677_vm0, %v4273_v36, 0.0  ;;  %3166 = vmatprep.subr.mxu1 %v1241_v43  ;;  %s651_s2 = sand.u32 1, %s3929_s28   ;;  %s5128_s19 = scalar_lea.hbm %s5239_s24, %s2879_s26 }
  0x82   : > { %682 = vadd.xlane.f32.xlu0 %v681_v8  ;;  %688 = vadd.xlane.f32.xlu1 %v687_v9  ;;  %v723_v39 = vsel %vm677_vm0, %v4276_v37, 0.0  ;;  %s2829_s20 = sshll.u32 %s651_s2, 7  ;;  %s5136_s0 = scalar_lea.sflag [#allocation4], %s651_s2 }
  0x83   : > { %3131 = vmatpush3.msra.mxu0 %v1015_v23  ;;  %3167 = vmatpush3.msra.mxu1 %v1241_v43  ;;  %s5093_s21 = scalar_lea.vmem [#allocation13], %s2829_s20  ;;  %s3865_s30 = sshll.u32 %s3948_s22, 4  ;;  %s3866_s30 = int_to_ptr.vmem [resolvable:$false] %s3865_s30 }
  0x84   : > { %3132 = vmatprep.subr.mxu0 %v1014_v27  ;;  %3168 = vmatprep.subr.mxu1 %v1240_v44  ;;  %s3867_s25 = scalar_lea.vmem %s3866_s30, 4096 }
  0x85   : > { %3133 = vmatpush3.msra.mxu0 %v1014_v27  ;;  %3169 = vmatpush3.msra.mxu1 %v1240_v44 }
  0x86   : > { %691 = vadd.xlane.f32.xlu0 %v690_v13  ;;  %694 = vadd.xlane.f32.xlu1 %v693_v14 }
  0x87   : > { %3134 = vmatprep.subr.mxu0 %v1013_v29  ;;  %3170 = vmatprep.subr.mxu1 %v1239_v45 }
  0x88   : > { %3135 = vmatpush3.msra.mxu0 %v1013_v29  ;;  %3171 = vmatpush3.msra.mxu1 %v1239_v45 }
  0x89   : > { %3137 = vmatmul.mubr.msk.f32.vlgmr.msra.gmra.mxu0 %vm677_vm0, %v4205_v2  ;;  %3172 = vmatprep.subr.mxu1 %v1238_v46 }
  0x8a   : > { %697 = vadd.xlane.f32.xlu0 %v696_v19  ;;  %700 = vadd.xlane.f32.xlu1 %v699_v20 }
  0x8b   : > { %3139 = vmatprep.mubr.msk.f32.mxu0 %vm677_vm0, %v4202_v1  ;;  %3173 = vmatpush3.msra.mxu1 %v1238_v46 }
  0x8c   : > { %3174 = vmatprep.subr.mxu1 %v1237_v47 }
  0x8d   : > { %3140 = vmatmul.mubr.msk.f32.gmra.mxu0 %vm677_vm0, %v4212_v5  ;;  %3175 = vmatpush3.msra.mxu1 %v1237_v47 }
  0x8e   : > { %703 = vadd.xlane.f32.xlu0 %v702_v24  ;;  %706 = vadd.xlane.f32.xlu1 %v705_v25 }
  0x8f   : > { %3142 = vmatprep.mubr.msk.f32.mxu0 %vm677_vm0, %v4221_v10 }
  0x91   : > { %3143 = vmatmul.mubr.msk.f32.gmra.mxu0 %vm677_vm0, %v4224_v11 }
  0x92   : > { %709 = vadd.xlane.f32.xlu0 %v708_v30  ;;  %712 = vadd.xlane.f32.xlu1 %v711_v31 }
  0x93   : > { %3145 = vmatprep.mubr.msk.f32.mxu0 %vm677_vm0, %v4231_v15 }
  0x95   : > { %3146 = vmatmul.mubr.msk.f32.gmra.mxu0 %vm677_vm0, %v4234_v17 }
  0x96   : > { %715 = vadd.xlane.f32.xlu0 %v714_v34  ;;  %718 = vadd.xlane.f32.xlu1 %v717_v35 }
  0x97   : > { %3148 = vmatprep.mubr.msk.f32.mxu0 %vm677_vm0, %v4241_v21 }
  0x99   : > { %3149 = vmatmul.mubr.msk.f32.gmra.mxu0 %vm677_vm0, %v4244_v22 }
  0x9a   : > { %721 = vadd.xlane.f32.xlu0 %v720_v38  ;;  %724 = vadd.xlane.f32.xlu1 %v723_v39 }
  0x9b   : > { %3151 = vmatprep.mubr.msk.f32.mxu0 %vm677_vm0, %v4251_v26 }
  0x9d   : > { %3152 = vmatmul.mubr.msk.f32.gmra.mxu0 %vm677_vm0, %v4254_v28 }
  0x9e   : > { %3154 = vmatprep.mubr.msk.f32.mxu0 %vm677_vm0, %v4261_v32 }
  0xa1   : > { %3155 = vmatmul.mubr.msk.f32.gmra.mxu0 %vm677_vm0, %v4264_v33 }
  0xa2   : > { %3157 = vmatprep.mubr.msk.f32.mxu0 %vm677_vm0, %v4273_v36 }
  0xa5   : > { %3158 = vmatmul.mubr.msk.f32.gmra.mxu0 %vm677_vm0, %v4276_v37 }
 0x107   : > { %v680_v48 = vpop.xlane.xlu0 %679  ;;  %v686_v49 = vpop.xlane.xlu1 %685 }
 0x108   : > { %v727_v50 = vmul.f32 0.015625, %v680_v48  ;;  %v729_v51 = vmul.f32 0.015625, %v686_v49 }
 0x10a   : > { %v4311_v52 = vsub.f32 %v4199_v0, %v727_v50  ;;  %v4314_v53 = vsub.f32 %v4202_v1, %v729_v51 }
 0x10b   : > { %v683_v54 = vpop.xlane.xlu0 %682  ;;  %v689_v55 = vpop.xlane.xlu1 %688 }
 0x10c   : > { %v728_v56 = vmul.f32 0.015625, %v683_v54  ;;  %v730_v57 = vmul.f32 0.015625, %v689_v55  ;;  %v759_v58 = vmul.f32 %v4311_v52, %v4311_v52  ;;  %v761_v59 = vmul.f32 %v4314_v53, %v4314_v53 }
 0x10e   : > { %v4321_v60 = vsub.f32 %v4205_v2, %v728_v56  ;;  %v4324_v61 = vsub.f32 %v4212_v5, %v730_v57  ;;  %v775_v62 = vsel %vm677_vm0, %v759_v58, 0.0  ;;  %v781_v1 = vsel %vm677_vm0, %v761_v59, 0.0 }
 0x10f   : > { %776 = vadd.xlane.f32.xlu0 %v775_v62  ;;  %v692_v63 = vpop.xlane.xlu0 %691  ;;  %v695_v0 = vpop.xlane.xlu1 %694 }
 0x110   : > { %v731_v3 = vmul.f32 0.015625, %v692_v63  ;;  %v732_v4 = vmul.f32 0.015625, %v695_v0  ;;  %v760_v6 = vmul.f32 %v4321_v60, %v4321_v60  ;;  %v762_v7 = vmul.f32 %v4324_v61, %v4324_v61 }
 0x112   : > { %v4333_v2 = vsub.f32 %v4221_v10, %v731_v3  ;;  %v4336_v5 = vsub.f32 %v4224_v11, %v732_v4  ;;  %v778_v8 = vsel %vm677_vm0, %v760_v6, 0.0  ;;  %v784_v13 = vsel %vm677_vm0, %v762_v7, 0.0  ;;  %v1475_v7 = vld [vmem:[%s5183_s7 + $0x70] sm:$0xff] }
 0x113   : > { %782 = vadd.xlane.f32.xlu0 %v781_v1  ;;  %779 = vadd.xlane.f32.xlu1 %v778_v8  ;;  %v698_v9 = vpop.xlane.xlu0 %697  ;;  %v701_v12 = vpop.xlane.xlu1 %700  ;;  %v4415_v8 = vld [vmem:[%s5180_s4] ss:$0 sm:$0xff] }
 0x114   : > { %v733_v14 = vmul.f32 0.015625, %v698_v9  ;;  %v734_v16 = vmul.f32 0.015625, %v701_v12  ;;  %v763_v18 = vmul.f32 %v4333_v2, %v4333_v2  ;;  %v764_v10 = vmul.f32 %v4336_v5, %v4336_v5  ;;  %v1474_v9 = vld [vmem:[%s5183_s7 + $0x68] sm:$0xff] }
 0x116   : > { %v4345_v19 = vsub.f32 %v4231_v15, %v733_v14  ;;  %v4348_v11 = vsub.f32 %v4234_v17, %v734_v16  ;;  %v787_v20 = vsel %vm677_vm0, %v763_v18, 0.0  ;;  %v790_v25 = vsel %vm677_vm0, %v764_v10, 0.0  ;;  %v1473_v14 = vld [vmem:[%s5183_s7 + $0x60] sm:$0xff]  ;;  %v1472_v10 = vld [vmem:[%s5183_s7 + $0x58] sm:$0xff] }
 0x117   : > { %785 = vadd.xlane.f32.xlu1 %v784_v13  ;;  %788 = vadd.xlane.f32.xlu0 %v787_v20  ;;  %v704_v23 = vpop.xlane.xlu0 %703  ;;  %v707_v24 = vpop.xlane.xlu1 %706 }
 0x118   : > { %v735_v27 = vmul.f32 0.015625, %v704_v23  ;;  %v736_v29 = vmul.f32 0.015625, %v707_v24  ;;  %v765_v30 = vmul.f32 %v4345_v19, %v4345_v19  ;;  %v766_v15 = vmul.f32 %v4348_v11, %v4348_v11 }
 0x11a   : > { %v4357_v31 = vsub.f32 %v4241_v21, %v735_v27  ;;  %v4360_v17 = vsub.f32 %v4244_v22, %v736_v29  ;;  %v793_v34 = vsel %vm677_vm0, %v765_v30, 0.0  ;;  %v796_v39 = vsel %vm677_vm0, %v766_v15, 0.0  ;;  %v1471_v27 = vld [vmem:[%s5183_s7 + $0x50] sm:$0xff]  ;;  %v1470_v15 = vld [vmem:[%s5183_s7 + $0x48] sm:$0xff] }
 0x11b   : > { %791 = vadd.xlane.f32.xlu1 %v790_v25  ;;  %794 = vadd.xlane.f32.xlu0 %v793_v34  ;;  %v710_v35 = vpop.xlane.xlu0 %709  ;;  %v713_v38 = vpop.xlane.xlu1 %712 }
 0x11c   : > { %v737_v40 = vmul.f32 0.015625, %v710_v35  ;;  %v738_v41 = vmul.f32 0.015625, %v713_v38  ;;  %v767_v42 = vmul.f32 %v4357_v31, %v4357_v31  ;;  %v768_v21 = vmul.f32 %v4360_v17, %v4360_v17 }
 0x11e   : > { %v4369_v43 = vsub.f32 %v4251_v26, %v737_v40  ;;  %v4372_v22 = vsub.f32 %v4254_v28, %v738_v41  ;;  %v799_v44 = vsel %vm677_vm0, %v767_v42, 0.0  ;;  %v802_v47 = vsel %vm677_vm0, %v768_v21, 0.0  ;;  %v1469_v40 = vld [vmem:[%s5183_s7 + $0x40] sm:$0xff]  ;;  %v1468_v21 = vld [vmem:[%s5183_s7 + $0x38] sm:$0xff] }
 0x11f   : > { %797 = vadd.xlane.f32.xlu1 %v796_v39  ;;  %800 = vadd.xlane.f32.xlu0 %v799_v44  ;;  %v716_v45 = vpop.xlane.xlu0 %715  ;;  %v719_v46 = vpop.xlane.xlu1 %718 }
 0x120   : > { %v739_v48 = vmul.f32 0.015625, %v716_v45  ;;  %v740_v49 = vmul.f32 0.015625, %v719_v46  ;;  %v769_v50 = vmul.f32 %v4369_v43, %v4369_v43  ;;  %v770_v26 = vmul.f32 %v4372_v22, %v4372_v22 }
 0x122   : > { %v4381_v51 = vsub.f32 %v4261_v32, %v739_v48  ;;  %v4384_v28 = vsub.f32 %v4264_v33, %v740_v49  ;;  %v805_v54 = vsel %vm677_vm0, %v769_v50, 0.0  ;;  %v808_v57 = vsel %vm677_vm0, %v770_v26, 0.0  ;;  %v1467_v48 = vld [vmem:[%s5183_s7 + $0x30] sm:$0xff]  ;;  %v1466_v26 = vld [vmem:[%s5183_s7 + $0x28] sm:$0xff] }
 0x123   : > { %803 = vadd.xlane.f32.xlu1 %v802_v47  ;;  %806 = vadd.xlane.f32.xlu0 %v805_v54  ;;  %v722_v55 = vpop.xlane.xlu0 %721  ;;  %v725_v56 = vpop.xlane.xlu1 %724 }
 0x124   : > { %v741_v58 = vmul.f32 0.015625, %v722_v55  ;;  %v742_v59 = vmul.f32 0.015625, %v725_v56  ;;  %v771_v62 = vmul.f32 %v4381_v51, %v4381_v51  ;;  %v772_v32 = vmul.f32 %v4384_v28, %v4384_v28 }
 0x126   : > { %v4393_v63 = vsub.f32 %v4273_v36, %v741_v58  ;;  %v4396_v33 = vsub.f32 %v4276_v37, %v742_v59  ;;  %v811_v0 = vsel %vm677_vm0, %v771_v62, 0.0  ;;  %v814_v1 = vsel %vm677_vm0, %v772_v32, 0.0  ;;  %v1476_v37 = vld [vmem:[%s5183_s7 + $0x78] sm:$0xff] }
 0x127   : > { %809 = vadd.xlane.f32.xlu1 %v808_v57  ;;  %812 = vadd.xlane.f32.xlu0 %v811_v0 }
 0x128   : > { %v773_v3 = vmul.f32 %v4393_v63, %v4393_v63  ;;  %v774_v4 = vmul.f32 %v4396_v33, %v4396_v33  ;;  %3200 = vmatprep.subr.mxu0 %v1476_v37 }
 0x129   : > { %3201 = vmatpush3.msra.mxu0 %v1476_v37 }
 0x12a   : > { %v817_v6 = vsel %vm677_vm0, %v773_v3, 0.0  ;;  %v820_v36 = vsel %vm677_vm0, %v774_v4, 0.0  ;;  %3202 = vmatprep.subr.mxu0 %v1475_v7 }
 0x12b   : > { %815 = vadd.xlane.f32.xlu1 %v814_v1  ;;  %818 = vadd.xlane.f32.xlu0 %v817_v6 }
 0x12c   : > { %3203 = vmatpush3.msra.mxu0 %v1475_v7 }
 0x12d   : > { %3204 = vmatprep.subr.mxu0 %v1474_v9 }
 0x12e   : > { %3205 = vmatpush3.msra.mxu0 %v1474_v9 }
 0x12f   : > { %821 = vadd.xlane.f32.xlu1 %v820_v36  ;;  %3206 = vmatprep.subr.mxu0 %v1473_v14 }
 0x130   : > { %3207 = vmatpush3.msra.mxu0 %v1473_v14 }
 0x131   : > { %3208 = vmatprep.subr.mxu0 %v1472_v10 }
 0x132   : > { %3209 = vmatpush3.msra.mxu0 %v1472_v10 }
 0x133   : > { %3210 = vmatprep.subr.mxu0 %v1471_v27 }
 0x134   : > { %3211 = vmatpush3.msra.mxu0 %v1471_v27 }
 0x135   : > { %3212 = vmatprep.subr.mxu0 %v1470_v15 }
 0x136   : > { %3213 = vmatpush3.msra.mxu0 %v1470_v15 }
 0x137   : > { %3214 = vmatprep.subr.mxu0 %v1469_v40 }
 0x138   : > { %3215 = vmatpush3.msra.mxu0 %v1469_v40 }
 0x139   : > { %3216 = vmatprep.subr.mxu0 %v1468_v21 }
 0x13a   : > { %3217 = vmatpush3.msra.mxu0 %v1468_v21  ;;  %v1465_v21 = vld [vmem:[%s5183_s7 + $0x20] sm:$0xff] }
 0x13b   : > { %3218 = vmatprep.subr.mxu0 %v1467_v48 }
 0x13c   : > { %3219 = vmatpush3.msra.mxu0 %v1467_v48 }
 0x13d   : > { %3220 = vmatprep.subr.mxu0 %v1466_v26 }
 0x13e   : > { %3221 = vmatpush3.msra.mxu0 %v1466_v26  ;;  %v1463_v26 = vld [vmem:[%s5183_s7 + $0x10] sm:$0xff] }
 0x13f   : > { %3222 = vmatprep.subr.mxu0 %v1465_v21 }
 0x140   : > { %3223 = vmatpush3.msra.mxu0 %v1465_v21 }
 0x149   : > { %v3138_v12 = vpop.f32.mrf.mxu0 }
 0x14a   : > { %v1148_v13 = vadd.f32 %v3138_v12, %v4415_v8 }
 0x14b   : > { %v1142_v16 = vpop.f32.mrf.mxu0 }
 0x14c   : > { %v1143_v18 = vadd.f32 %v4415_v8, %v1142_v16  ;;  %v1222_v20 = vmax.f32 %v1148_v13, 0.0 }
 0x14d   : > { %v3141_v23 = vpop.f32.mrf.mxu0 }
 0x14e   : > { %v1221_v24 = vmax.f32 %v1143_v18, 0.0  ;;  %v1158_v25 = vadd.f32 %v3141_v23, %v4415_v8 }
 0x14f   : > { %v1152_v29 = vpop.f32.mrf.mxu0 }
 0x150   : > { %v1153_v30 = vadd.f32 %v4415_v8, %v1152_v29  ;;  %3176 = vmatprep.mubr.msk.f32.mxu1 %vm677_vm0, %v1221_v24  ;;  %v1224_v34 = vmax.f32 %v1158_v25, 0.0 }
 0x151   : > { %v3144_v35 = vpop.f32.mrf.mxu0  ;;  %3177 = vmatmul.mubr.msk.f32.vlgmr.msra.gmra.mxu1 %vm677_vm0, %v1222_v20 }
 0x152   : > { %v1223_v38 = vmax.f32 %v1153_v30, 0.0  ;;  %v1168_v39 = vadd.f32 %v3144_v35, %v4415_v8 }
 0x153   : > { %v1162_v41 = vpop.f32.mrf.mxu0 }
 0x154   : > { %v1163_v42 = vadd.f32 %v4415_v8, %v1162_v41  ;;  %3179 = vmatprep.mubr.msk.f32.mxu1 %vm677_vm0, %v1223_v38  ;;  %v1226_v44 = vmax.f32 %v1168_v39, 0.0 }
 0x155   : > { %v3147_v45 = vpop.f32.mrf.mxu0  ;;  %3180 = vmatmul.mubr.msk.f32.gmra.mxu1 %vm677_vm0, %v1224_v34 }
 0x156   : > { %v1225_v46 = vmax.f32 %v1163_v42, 0.0  ;;  %v1178_v47 = vadd.f32 %v3147_v45, %v4415_v8 }
 0x157   : > { %v1172_v49 = vpop.f32.mrf.mxu0 }
 0x158   : > { %v1173_v50 = vadd.f32 %v4415_v8, %v1172_v49  ;;  %3182 = vmatprep.mubr.msk.f32.mxu1 %vm677_vm0, %v1225_v46  ;;  %v1228_v54 = vmax.f32 %v1178_v47, 0.0  ;;  %v1464_v46 = vld [vmem:[%s5183_s7 + $0x18] sm:$0xff] }
 0x159   : > { %v3150_v55 = vpop.f32.mrf.mxu0  ;;  %3183 = vmatmul.mubr.msk.f32.gmra.mxu1 %vm677_vm0, %v1226_v44  ;;  %3224 = vmatprep.subr.mxu0 %v1464_v46 }
 0x15a   : > { %v1227_v56 = vmax.f32 %v1173_v50, 0.0  ;;  %v1188_v57 = vadd.f32 %v3150_v55, %v4415_v8  ;;  %3225 = vmatpush3.msra.mxu0 %v1464_v46 }
 0x15b   : > { %v1182_v58 = vpop.f32.mrf.mxu0  ;;  %3226 = vmatprep.subr.mxu0 %v1463_v26 }
 0x15c   : > { %v1183_v59 = vadd.f32 %v4415_v8, %v1182_v58  ;;  %3185 = vmatprep.mubr.msk.f32.mxu1 %vm677_vm0, %v1227_v56  ;;  %v1230_v62 = vmax.f32 %v1188_v57, 0.0  ;;  %3227 = vmatpush3.msra.mxu0 %v1463_v26  ;;  %v1462_v56 = vld [vmem:[%s5183_s7 + $0x8] sm:$0xff] }
 0x15d   : > { %v3153_v32 = vpop.f32.mrf.mxu0  ;;  %3186 = vmatmul.mubr.msk.f32.gmra.mxu1 %vm677_vm0, %v1228_v54  ;;  %3228 = vmatprep.subr.mxu0 %v1462_v56 }
 0x15e   : > { %v1229_v0 = vmax.f32 %v1183_v59, 0.0  ;;  %v1198_v1 = vadd.f32 %v3153_v32, %v4415_v8  ;;  %3229 = vmatpush3.msra.mxu0 %v1462_v56  ;;  %v1461_v32 = vld [vmem:[%s5183_s7] sm:$0xff] }
 0x15f   : > { %v1192_v3 = vpop.f32.mrf.mxu0  ;;  %3230 = vmatprep.subr.mxu0 %v1461_v32 }
 0x160   : > { %v1193_v4 = vadd.f32 %v4415_v8, %v1192_v3  ;;  %3188 = vmatprep.mubr.msk.f32.mxu1 %vm677_vm0, %v1229_v0  ;;  %v1232_v6 = vmax.f32 %v1198_v1, 0.0  ;;  %3231 = vmatpush3.msra.mxu0 %v1461_v32  ;;  %v4629_v32 = vld [vmem:[%s5189_s13 + $0x38] sm:$0xff] }
 0x161   : > { %v3156_v36 = vpop.f32.mrf.mxu0  ;;  %3189 = vmatmul.mubr.msk.f32.gmra.mxu1 %vm677_vm0, %v1230_v62 }
 0x162   : > { %v1231_v37 = vmax.f32 %v1193_v4, 0.0  ;;  %v1208_v7 = vadd.f32 %v3156_v36, %v4415_v8 }
 0x163   : > { %v1202_v9 = vpop.f32.mrf.mxu0 }
 0x164   : > { %v1203_v12 = vadd.f32 %v4415_v8, %v1202_v9  ;;  %3191 = vmatprep.mubr.msk.f32.mxu1 %vm677_vm0, %v1231_v37  ;;  %v1234_v13 = vmax.f32 %v1208_v7, 0.0 }
 0x165   : > { %v3159_v14 = vpop.f32.mrf.mxu0  ;;  %3192 = vmatmul.mubr.msk.f32.gmra.mxu1 %vm677_vm0, %v1232_v6 }
 0x166   : > { %v1233_v16 = vmax.f32 %v1203_v12, 0.0  ;;  %v1218_v18 = vadd.f32 %v3159_v14, %v4415_v8 }
 0x167   : > { %v1212_v10 = vpop.f32.mrf.mxu0 }
 0x168   : > { %v1213_v20 = vadd.f32 %v4415_v8, %v1212_v10  ;;  %3194 = vmatprep.mubr.msk.f32.mxu1 %vm677_vm0, %v1233_v16  ;;  %v1236_v23 = vmax.f32 %v1218_v18, 0.0 }
 0x169   : > { %3195 = vmatmul.mubr.msk.f32.gmra.mxu1 %vm677_vm0, %v1234_v13 }
 0x16a   : > { %v1235_v24 = vmax.f32 %v1213_v20, 0.0 }
 0x16c   : > { %3197 = vmatprep.mubr.msk.f32.mxu1 %vm677_vm0, %v1235_v24 }
 0x16d   : > { %3198 = vmatmul.mubr.msk.f32.gmra.mxu1 %vm677_vm0, %v1236_v23 }
 0x198   : > { %v777_v25 = vpop.xlane.xlu0 %776 }
 0x199   : > { %v823_v27 = vmul.f32 0.015625, %v777_v25 }
 0x19b   : > { %v839_v29 = vadd.f32 1e-05, %v823_v27 }
 0x19c   : > { %v780_v30 = vpop.xlane.xlu1 %779  ;;  %v783_v15 = vpop.xlane.xlu0 %782 }
 0x19d   : > { %3641 = vrsqrt.f32 %v839_v29  ;;  %v824_v34 = vmul.f32 0.015625, %v780_v30  ;;  %v825_v35 = vmul.f32 0.015625, %v783_v15 }
 0x19f   : > { %v840_v38 = vadd.f32 1e-05, %v824_v34  ;;  %v841_v8 = vadd.f32 1e-05, %v825_v35 }
 0x1a0   : > { %v786_v39 = vpop.xlane.xlu1 %785  ;;  %v789_v40 = vpop.xlane.xlu0 %788 }
 0x1a1   : > { %3643 = vrsqrt.f32 %v840_v38  ;;  %v826_v41 = vmul.f32 0.015625, %v786_v39  ;;  %v827_v42 = vmul.f32 0.015625, %v789_v40 }
 0x1a2   : > { %3645 = vrsqrt.f32 %v841_v8 }
 0x1a3   : > { %v842_v44 = vadd.f32 1e-05, %v826_v41  ;;  %v843_v45 = vadd.f32 1e-05, %v827_v42 }
 0x1a4   : > { %v792_v47 = vpop.xlane.xlu1 %791  ;;  %v795_v48 = vpop.xlane.xlu0 %794 }
 0x1a5   : > { %v828_v49 = vmul.f32 0.015625, %v792_v47  ;;  %v829_v50 = vmul.f32 0.015625, %v795_v48  ;;  %3647 = vrsqrt.f32 %v843_v45 }
 0x1a6   : > { %3649 = vrsqrt.f32 %v842_v44 }
 0x1a7   : > { %v844_v54 = vadd.f32 1e-05, %v828_v49  ;;  %v845_v55 = vadd.f32 1e-05, %v829_v50 }
 0x1a8   : > { %v798_v57 = vpop.xlane.xlu1 %797  ;;  %v801_v58 = vpop.xlane.xlu0 %800 }
 0x1a9   : > { %v830_v59 = vmul.f32 0.015625, %v798_v57  ;;  %v831_v62 = vmul.f32 0.015625, %v801_v58  ;;  %3651 = vrsqrt.f32 %v845_v55  ;;  %v4592_v57 = vld [vmem:[%s5189_s13 + $0x60] sm:$0xff]  ;;  %v4601_v58 = vld [vmem:[%s5189_s13 + $0x58] sm:$0xff] }
 0x1aa   : > { %v3642_v0 = vpop.eup %3641  ;;  %3653 = vrsqrt.f32 %v844_v54 }
 0x1ab   : > { %v846_v1 = vadd.f32 1e-05, %v830_v59  ;;  %v847_v3 = vadd.f32 1e-05, %v831_v62  ;;  %v4492_v4 = vmul.f32 %v3642_v0, %v4311_v52  ;;  %v4615_v59 = vld [vmem:[%s5189_s13 + $0x48] sm:$0xff]  ;;  %v4622_v62 = vld [vmem:[%s5189_s13 + $0x40] sm:$0xff] }
 0x1ac   : > { %v804_v6 = vpop.xlane.xlu1 %803  ;;  %v807_v36 = vpop.xlane.xlu0 %806  ;;  %v4636_v0 = vld [vmem:[%s5189_s13 + $0x30] sm:$0xff] }
 0x1ad   : > { %v832_v37 = vmul.f32 0.015625, %v804_v6  ;;  %v833_v7 = vmul.f32 0.015625, %v807_v36  ;;  %903 = vrot.lane.b32.xlu0 %v4492_v4, %s3947_s29  ;;  %3655 = vrsqrt.f32 %v847_v3  ;;  %v4650_v3 = vld [vmem:[%s5189_s13 + $0x20] sm:$0xff]  ;;  %v4657_v6 = vld [vmem:[%s5189_s13 + $0x18] sm:$0xff] }
 0x1ae   : > { %v3644_v9 = vpop.eup %3643  ;;  %3657 = vrsqrt.f32 %v846_v1  ;;  %v4643_v1 = vld [vmem:[%s5189_s13 + $0x28] sm:$0xff] }
 0x1af   : > { %v848_v12 = vadd.f32 1e-05, %v832_v37  ;;  %v849_v13 = vadd.f32 1e-05, %v833_v7  ;;  %v4497_v14 = vmul.f32 %v3644_v9, %v4321_v60  ;;  %v3646_v16 = vpop.eup %3645  ;;  %v4663_v37 = vld [vmem:[#allocation2] ss:$0 sm:$0xff] }
 0x1b0   : > { %v810_v52 = vpop.xlane.xlu1 %809  ;;  %v813_v18 = vpop.xlane.xlu0 %812  ;;  %v4502_v27 = vmul.f32 %v3646_v16, %v4314_v53  ;;  %v4668_v7 = vld [vmem:[%s5182_s6] ss:$0 sm:$0xff]  ;;  %v4672_v16 = vld [vmem:[#allocation5] ss:$0 sm:$0xff] }
 0x1b1   : > { %v834_v10 = vmul.f32 0.015625, %v810_v52  ;;  %v835_v20 = vmul.f32 0.015625, %v813_v18  ;;  %905 = vrot.lane.b32.xlu1 %v4497_v14, %s3947_s29  ;;  %3659 = vrsqrt.f32 %v849_v13 }
 0x1b2   : > { %v3648_v23 = vpop.eup %3647  ;;  %3661 = vrsqrt.f32 %v848_v12 }
 0x1b3   : > { %v850_v24 = vadd.f32 1e-05, %v834_v10  ;;  %v851_v25 = vadd.f32 1e-05, %v835_v20  ;;  %v3650_v29 = vpop.eup %3649  ;;  %v4505_v15 = vmul.f32 %v3648_v23, %v4333_v2 }
 0x1b4   : > { %v816_v30 = vpop.xlane.xlu1 %815  ;;  %v819_v60 = vpop.xlane.xlu0 %818  ;;  %v4512_v39 = vmul.f32 %v3650_v29, %v4324_v61 }
 0x1b5   : > { %v836_v34 = vmul.f32 0.015625, %v816_v30  ;;  %v837_v35 = vmul.f32 0.015625, %v819_v60  ;;  %907 = vrot.lane.b32.xlu1 %v4502_v27, %s3947_s29  ;;  %3663 = vrsqrt.f32 %v851_v25  ;;  %911 = vrot.lane.b32.xlu0 %v4505_v15, %s3947_s29 }
 0x1b6   : > { %v3652_v38 = vpop.eup %3651  ;;  %3665 = vrsqrt.f32 %v850_v24 }
 0x1b7   : > { %v852_v8 = vadd.f32 1e-05, %v836_v34  ;;  %v853_v53 = vadd.f32 1e-05, %v837_v35  ;;  %v3654_v40 = vpop.eup %3653  ;;  %v4515_v2 = vmul.f32 %v3652_v38, %v4345_v19 }
 0x1b8   : > { %v822_v41 = vpop.xlane.xlu1 %821  ;;  %v4522_v45 = vmul.f32 %v3654_v40, %v4336_v5 }
 0x1b9   : > { %v838_v42 = vmul.f32 0.015625, %v822_v41  ;;  %909 = vrot.lane.b32.xlu1 %v4512_v39, %s3947_s29  ;;  %3667 = vrsqrt.f32 %v853_v53  ;;  %915 = vrot.lane.b32.xlu0 %v4515_v2, %s3947_s29 }
 0x1ba   : > { %v3656_v21 = vpop.eup %3655  ;;  %3669 = vrsqrt.f32 %v852_v8 }
 0x1bb   : > { %v854_v44 = vadd.f32 1e-05, %v838_v42  ;;  %v3658_v61 = vpop.eup %3657  ;;  %v4525_v46 = vmul.f32 %v3656_v21, %v4357_v31 }
 0x1bc   : > { %v4532_v47 = vmul.f32 %v3658_v61, %v4348_v11 }
 0x1bd   : > { %913 = vrot.lane.b32.xlu1 %v4522_v45, %s3947_s29  ;;  %919 = vrot.lane.b32.xlu0 %v4525_v46, %s3947_s29  ;;  %3671 = vrsqrt.f32 %v854_v44 }
 0x1be   : > { %v3660_v19 = vpop.eup %3659 }
 0x1bf   : > { %v3662_v48 = vpop.eup %3661  ;;  %v4535_v49 = vmul.f32 %v3660_v19, %v4369_v43 }
 0x1c0   : > { %v4542_v31 = vmul.f32 %v3662_v48, %v4360_v17 }
 0x1c1   : > { %917 = vrot.lane.b32.xlu1 %v4532_v47, %s3947_s29  ;;  %923 = vrot.lane.b32.xlu0 %v4535_v49, %s3947_s29 }
 0x1c2   : > { %v3664_v5 = vpop.eup %3663 }
 0x1c3   : > { %v3666_v50 = vpop.eup %3665  ;;  %v4545_v26 = vmul.f32 %v3664_v5, %v4381_v51  ;;  %v4567_v51 = vld [vmem:[%s5189_s13 + $0x78] sm:$0xff] }
 0x1c4   : > { %v4552_v43 = vmul.f32 %v3666_v50, %v4372_v22  ;;  %v4572_v22 = vld [vmem:[%s5189_s13 + $0x70] sm:$0xff]  ;;  %3256 = vmatprep.subr.mxu1 %v4567_v51  ;;  %3312 = vmatprep.subr.mxu0 %v4567_v51 }
 0x1c5   : > { %921 = vrot.lane.b32.xlu1 %v4542_v31, %s3947_s29  ;;  %927 = vrot.lane.b32.xlu0 %v4545_v26, %s3947_s29 }
 0x1c6   : > { %v3668_v11 = vpop.eup %3667  ;;  %3257 = vmatpush3.msra.mxu1 %v4567_v51 }
 0x1c7   : > { %v3670_v54 = vpop.eup %3669  ;;  %v4555_v55 = vmul.f32 %v3668_v11, %v4393_v63  ;;  %3258 = vmatprep.subr.mxu1 %v4572_v22 }
 0x1c8   : > { %v4562_v17 = vmul.f32 %v3670_v54, %v4384_v28  ;;  %v4582_v28 = vld [vmem:[%s5189_s13 + $0x68] sm:$0xff]  ;;  %3259 = vmatpush3.msra.mxu1 %v4572_v22 }
 0x1c9   : > { %925 = vrot.lane.b32.xlu1 %v4552_v43, %s3947_s29  ;;  %931 = vrot.lane.b32.xlu0 %v4555_v55, %s3947_s29 }
 0x1ca   : > { %v3672_v63 = vpop.eup %3671  ;;  %3260 = vmatprep.subr.mxu1 %v4582_v28 }
 0x1cb   : > { %v4586_v56 = vmul.f32 %v3672_v63, %v4396_v33  ;;  %3261 = vmatpush3.msra.mxu1 %v4582_v28  ;;  %v4608_v33 = vld [vmem:[%s5189_s13 + $0x50] sm:$0xff] }
 0x1cc   : > { %3262 = vmatprep.subr.mxu1 %v4592_v57 }
 0x1cd   : > { %929 = vrot.lane.b32.xlu1 %v4562_v17, %s3947_s29  ;;  %3263 = vmatpush3.msra.mxu1 %v4592_v57 }
 0x1ce   : > { %3264 = vmatprep.subr.mxu1 %v4601_v58 }
 0x1cf   : > { %3265 = vmatpush3.msra.mxu1 %v4601_v58 }
 0x1d0   : > { %3266 = vmatprep.subr.mxu1 %v4608_v33 }
 0x1d1   : > { %933 = vrot.lane.b32.xlu1 %v4586_v56, %s3947_s29  ;;  %3267 = vmatpush3.msra.mxu1 %v4608_v33  ;;  %s2691_s29 = sshll.u32 %s5093_s21, 4  ;;  %s5130_s29 = int_to_ptr.vmem [resolvable:$true] %s2691_s29 }
 0x1d2   : > { %3268 = vmatprep.subr.mxu1 %v4615_v59  ;;  %s3861_s18 = scalar_lea.vmem %s5130_s29, 2048  ;;  %p3868_p13 = scmp.lt.s32.totalorder %s5130_s29, %s3866_s30 }
 0x1d3   : > { %3269 = vmatpush3.msra.mxu1 %v4615_v59  ;;  %p3862_p2 = scmp.ne.s32.totalorder %s5130_s29, %s3861_s18  ;;  %p3869_p7 = scmp.lt.s32.totalorder %s3867_s25, %s3861_s18 }
 0x1d4   : > { %3270 = vmatprep.subr.mxu1 %v4622_v62 }
 0x1d5   : > { %3271 = vmatpush3.msra.mxu1 %v4622_v62  ;;  %p3863_p4 = pnand %p3862_p2, %p4084_p5  ;;  %p3870_p8 = por %p3869_p7, %p3868_p13 }
 0x1d6   : > { %3272 = vmatprep.subr.mxu1 %v4629_v32 }
 0x1d7   : > { %3273 = vmatpush3.msra.mxu1 %v4629_v32  ;;  %p3864_p9 = pneg %p3863_p4 }
 0x1d8   : > { %3274 = vmatprep.subr.mxu1 %v4636_v0 }
 0x1d9   : > { %3275 = vmatpush3.msra.mxu1 %v4636_v0  ;;  %p3871_p11 = pnand %p3870_p8, %p3864_p9 }
 0x1da   : > { %3276 = vmatprep.subr.mxu1 %v4643_v1 }
 0x1db   : > { %3277 = vmatpush3.msra.mxu1 %v4643_v1 }
 0x1dc   : > { %3278 = vmatprep.subr.mxu1 %v4650_v3 }
 0x1dd   : > { %3279 = vmatpush3.msra.mxu1 %v4650_v3 }
 0x1de   : > { %3280 = vmatprep.subr.mxu1 %v4657_v6 }
 0x1df   : > { %3281 = vmatpush3.msra.mxu1 %v4657_v6 }
 0x211   : > { %v3178_v36 = vpop.f32.mrf.mxu1 }
 0x213   : > { %v1366_v9 = vpop.f32.mrf.mxu1 }
 0x214   : > { %v1367_v10 = vadd.f32 %v4668_v7, %v1366_v9 }
 0x215   : > { %v3181_v52 = vpop.f32.mrf.mxu1 }
 0x217   : > { %v1376_v20 = vpop.f32.mrf.mxu1 }
 0x218   : > { %v1377_v61 = vadd.f32 %v4668_v7, %v1376_v20 }
 0x219   : > { %v3184_v29 = vpop.f32.mrf.mxu1 }
 0x21b   : > { %v1386_v34 = vpop.f32.mrf.mxu1 }
 0x21d   : > { %v3187_v40 = vpop.f32.mrf.mxu1 }
 0x21f   : > { %v904_v12 = vpop.permute.xlu0 %903  ;;  %v1396_v44 = vpop.f32.mrf.mxu1 }
 0x220   : > { %v951_v13 = vsel %vm677_vm0, %v4492_v4, %v904_v12  ;;  %v1372_v4 = vadd.f32 %v3178_v36, %v4668_v7  ;;  %v1387_v36 = vadd.f32 %v4668_v7, %v1386_v34  ;;  %v1382_v12 = vadd.f32 %v3181_v52, %v4668_v7 }
 0x221   : > { %v974_v18 = vmul.f32 %v4663_v37, %v951_v13  ;;  %v4692_v50 = vpop.f32.mrf.mxu1 }
 0x223   : > { %v997_v23 = vadd.f32 %v4672_v16, %v974_v18  ;;  %v906_v24 = vpop.permute.xlu1 %905 }
 0x224   : > { %v952_v25 = vsel %vm677_vm0, %v4497_v14, %v906_v24 }
 0x225   : > { %v1445_v30 = vmul.f32 %v1367_v10, %v997_v23  ;;  %v975_v60 = vmul.f32 %v4663_v37, %v952_v25  ;;  %v1397_v25 = vadd.f32 %v4668_v7, %v1396_v44 }
 0x227   : > { %v998_v35 = vadd.f32 %v4672_v16, %v975_v60  ;;  %v908_v38 = vpop.permute.xlu1 %907  ;;  %3232 = vmatprep.mubr.f32.mxu0 %v1445_v30  ;;  %v912_v53 = vpop.permute.xlu0 %911 }
 0x228   : > { %v953_v8 = vsel %vm677_vm0, %v4502_v27, %v908_v38  ;;  %v955_v14 = vsel %vm677_vm0, %v4505_v15, %v912_v53 }
 0x229   : > { %v1446_v41 = vmul.f32 %v1372_v4, %v998_v35  ;;  %v976_v42 = vmul.f32 %v4663_v37, %v953_v8  ;;  %v978_v21 = vmul.f32 %v4663_v37, %v955_v14 }
 0x22b   : > { %v999_v19 = vadd.f32 %v4672_v16, %v976_v42  ;;  %v910_v48 = vpop.permute.xlu1 %909  ;;  %3233 = vmatmul.mubr.f32.vlgmr.msra.gmra.mxu0 %v1446_v41  ;;  %v916_v5 = vpop.permute.xlu0 %915  ;;  %v1001_v63 = vadd.f32 %v4672_v16, %v978_v21  ;;  %v1402_v42 = vadd.f32 %v3187_v40, %v4668_v7 }
 0x22c   : > { %v954_v27 = vsel %vm677_vm0, %v4512_v39, %v910_v48  ;;  %3313 = vmatpush3.msra.mxu0 %v4567_v51  ;;  %v957_v15 = vsel %vm677_vm0, %v4515_v2, %v916_v5  ;;  %v1406_v39 = vpop.f32.mrf.mxu1 }
 0x22d   : > { %v977_v11 = vmul.f32 %v4663_v37, %v954_v27  ;;  %v1447_v54 = vmul.f32 %v1377_v61, %v999_v19  ;;  %3314 = vmatprep.subr.mxu0 %v4572_v22  ;;  %v980_v9 = vmul.f32 %v4663_v37, %v957_v15  ;;  %v1449_v23 = vmul.f32 %v1387_v36, %v1001_v63 }
 0x22e   : > { %3315 = vmatpush3.msra.mxu0 %v4572_v22  ;;  %v4708_v10 = vpop.f32.mrf.mxu1  ;;  %v1407_v41 = vadd.f32 %v4668_v7, %v1406_v39 }
 0x22f   : > { %v1000_v51 = vadd.f32 %v4672_v16, %v977_v11  ;;  %v914_v13 = vpop.permute.xlu1 %913  ;;  %3235 = vmatprep.mubr.f32.mxu0 %v1447_v54  ;;  %3316 = vmatprep.subr.mxu0 %v4582_v28  ;;  %v920_v18 = vpop.permute.xlu0 %919  ;;  %v1003_v24 = vadd.f32 %v4672_v16, %v980_v9 }
 0x230   : > { %v956_v2 = vsel %vm677_vm0, %v4522_v45, %v914_v13  ;;  %3317 = vmatpush3.msra.mxu0 %v4582_v28  ;;  %v959_v22 = vsel %vm677_vm0, %v4525_v46, %v920_v18  ;;  %v1416_v30 = vpop.f32.mrf.mxu1  ;;  %v1392_v28 = vadd.f32 %v3184_v29, %v4668_v7 }
 0x231   : > { %v979_v20 = vmul.f32 %v4663_v37, %v956_v2  ;;  %v1448_v52 = vmul.f32 %v1382_v12, %v1000_v51  ;;  %3318 = vmatprep.subr.mxu0 %v4592_v57  ;;  %v982_v45 = vmul.f32 %v4663_v37, %v959_v22  ;;  %v1451_v8 = vmul.f32 %v1397_v25, %v1003_v24 }
 0x232   : > { %3319 = vmatpush3.msra.mxu0 %v4592_v57  ;;  %v4724_v35 = vpop.f32.mrf.mxu1  ;;  %v1417_v27 = vadd.f32 %v4668_v7, %v1416_v30 }
 0x233   : > { %v1002_v60 = vadd.f32 %v4672_v16, %v979_v20  ;;  %v918_v34 = vpop.permute.xlu1 %917  ;;  %3236 = vmatmul.mubr.f32.gmra.mxu0 %v1448_v52  ;;  %3320 = vmatprep.subr.mxu0 %v4601_v58  ;;  %v924_v4 = vpop.permute.xlu0 %923  ;;  %v1005_v53 = vadd.f32 %v4672_v16, %v982_v45  ;;  %v1432_v22 = vadd.f32 %v4724_v35, %v4668_v7 }
 0x234   : > { %v958_v46 = vsel %vm677_vm0, %v4532_v47, %v918_v34  ;;  %3238 = vmatprep.mubr.f32.mxu0 %v1449_v23  ;;  %3321 = vmatpush3.msra.mxu0 %v4601_v58  ;;  %v961_v57 = vsel %vm677_vm0, %v4535_v49, %v924_v4  ;;  %v1426_v21 = vpop.f32.mrf.mxu1 }
 0x235   : > { %v981_v38 = vmul.f32 %v4663_v37, %v958_v46  ;;  %v1450_v29 = vmul.f32 %v1392_v28, %v1002_v60  ;;  %3322 = vmatprep.subr.mxu0 %v4608_v33  ;;  %v984_v47 = vmul.f32 %v4663_v37, %v961_v57  ;;  %v1453_v19 = vmul.f32 %v1407_v41, %v1005_v53  ;;  %v1631_v28 = vld [vmem:[%s5189_s13 + $0x10] sm:$0xff] }
 0x236   : > { %3323 = vmatpush3.msra.mxu0 %v4608_v33  ;;  %v1427_v39 = vadd.f32 %v4668_v7, %v1426_v21  ;;  %3282 = vmatprep.subr.mxu1 %v1631_v28 }
 0x237   : > { %v1004_v58 = vadd.f32 %v4672_v16, %v981_v38  ;;  %v922_v14 = vpop.permute.xlu1 %921  ;;  %3239 = vmatmul.mubr.f32.gmra.mxu0 %v1450_v29  ;;  %3324 = vmatprep.subr.mxu0 %v4615_v59  ;;  %v928_v44 = vpop.permute.xlu0 %927  ;;  %v1007_v48 = vadd.f32 %v4672_v16, %v984_v47 }
 0x238   : > { %v960_v49 = vsel %vm677_vm0, %v4542_v31, %v922_v14  ;;  %3241 = vmatprep.mubr.f32.mxu0 %v1451_v8  ;;  %3325 = vmatpush3.msra.mxu0 %v4615_v59  ;;  %v963_v33 = vsel %vm677_vm0, %v4545_v26, %v928_v44  ;;  %v1412_v31 = vadd.f32 %v4692_v50, %v4668_v7  ;;  %v3199_v26 = vpop.f32.mrf.mxu1 }
 0x239   : > { %v983_v61 = vmul.f32 %v4663_v37, %v960_v49  ;;  %v1452_v40 = vmul.f32 %v1402_v42, %v1004_v58  ;;  %3326 = vmatprep.subr.mxu0 %v4622_v62  ;;  %v986_v5 = vmul.f32 %v4663_v37, %v963_v33  ;;  %v1455_v36 = vmul.f32 %v1417_v27, %v1007_v48 }
 0x23a   : > { %3327 = vmatpush3.msra.mxu0 %v4622_v62  ;;  %v1436_v51 = vpop.f32.mrf.mxu1  ;;  %3283 = vmatpush3.msra.mxu1 %v1631_v28 }
 0x23b   : > { %v1006_v59 = vadd.f32 %v4672_v16, %v983_v61  ;;  %v926_v11 = vpop.permute.xlu1 %925  ;;  %3242 = vmatmul.mubr.f32.gmra.mxu0 %v1452_v40  ;;  %3328 = vmatprep.subr.mxu0 %v4629_v32  ;;  %v932_v54 = vpop.permute.xlu0 %931  ;;  %v1009_v9 = vadd.f32 %v4672_v16, %v986_v5  ;;  %v1437_v20 = vadd.f32 %v4668_v7, %v1436_v51 }
 0x23c   : > { %v962_v15 = vsel %vm677_vm0, %v4552_v43, %v926_v11  ;;  %3244 = vmatprep.mubr.f32.mxu0 %v1453_v19  ;;  %3329 = vmatpush3.msra.mxu0 %v4629_v32  ;;  %v965_v62 = vsel %vm677_vm0, %v4555_v55, %v932_v54  ;;  %v1422_v43 = vadd.f32 %v4708_v10, %v4668_v7 }
 0x23d   : > { %v985_v63 = vmul.f32 %v4663_v37, %v962_v15  ;;  %v1454_v50 = vmul.f32 %v1412_v31, %v1006_v59  ;;  %3330 = vmatprep.subr.mxu0 %v4636_v0  ;;  %v988_v12 = vmul.f32 %v4663_v37, %v965_v62 }
 0x23e   : > { %3331 = vmatpush3.msra.mxu0 %v4636_v0  ;;  %v1457_v0 = vmul.f32 %v1427_v39, %v1009_v9 }
 0x23f   : > { %v1008_v32 = vadd.f32 %v4672_v16, %v985_v63  ;;  %v930_v13 = vpop.permute.xlu1 %929  ;;  %3245 = vmatmul.mubr.f32.gmra.mxu0 %v1454_v50  ;;  %3332 = vmatprep.subr.mxu0 %v4643_v1  ;;  %v1011_v10 = vadd.f32 %v4672_v16, %v988_v12 }
 0x240   : > { %v964_v55 = vsel %vm677_vm0, %v4562_v17, %v930_v13  ;;  %3247 = vmatprep.mubr.f32.mxu0 %v1455_v36  ;;  %3333 = vmatpush3.msra.mxu0 %v4643_v1 }
 0x241   : > { %v987_v2 = vmul.f32 %v4663_v37, %v964_v55  ;;  %v1456_v18 = vmul.f32 %v1422_v43, %v1008_v32  ;;  %3334 = vmatprep.subr.mxu0 %v4650_v3  ;;  %v1459_v25 = vmul.f32 %v1437_v20, %v1011_v10  ;;  %v2140_v10 = vld [vmem:[%s5187_s11 + $0x78] sm:$0xff]  ;;  %v2139_v20 = vld [vmem:[%s5187_s11 + $0x70] sm:$0xff] }
 0x242   : > { %3335 = vmatpush3.msra.mxu0 %v4650_v3  ;;  %v1442_v3 = vadd.f32 %v3199_v26, %v4668_v7 }
 0x243   : > { %v1010_v17 = vadd.f32 %v4672_v16, %v987_v2  ;;  %v934_v52 = vpop.permute.xlu1 %933  ;;  %3248 = vmatmul.mubr.f32.gmra.mxu0 %v1456_v18  ;;  %3336 = vmatprep.subr.mxu0 %v4657_v6 }
 0x244   : > { %v966_v1 = vsel %vm677_vm0, %v4586_v56, %v934_v52  ;;  %3250 = vmatprep.mubr.f32.mxu0 %v1457_v0  ;;  %3337 = vmatpush3.msra.mxu0 %v4657_v6  ;;  %v1630_v56 = vld [vmem:[%s5189_s13 + $0x8] sm:$0xff]  ;;  %v1629_v6 = vld [vmem:[%s5189_s13] sm:$0xff]  ;;  %v2136_v52 = vld [vmem:[%s5187_s11 + $0x58] sm:$0xff] }
 0x245   : > { %v989_v23 = vmul.f32 %v4663_v37, %v966_v1  ;;  %v1458_v24 = vmul.f32 %v1432_v22, %v1010_v17  ;;  %3338 = vmatprep.subr.mxu0 %v1631_v28  ;;  %3284 = vmatprep.subr.mxu1 %v1630_v56  ;;  %v4798_v37 = vld [vmem:[%s5184_s8] ss:$0 sm:$0xff]  ;;  %v2138_v22 = vld [vmem:[%s5187_s11 + $0x68] sm:$0xff]  ;;  %v2135_v1 = vld [vmem:[%s5187_s11 + $0x50] sm:$0xff] }
 0x246   : > { %3339 = vmatpush3.msra.mxu0 %v1631_v28  ;;  %3285 = vmatpush3.msra.mxu1 %v1630_v56  ;;  %v2137_v17 = vld [vmem:[%s5187_s11 + $0x60] sm:$0xff]  ;;  %v2128_v28 = vld [vmem:[%s5187_s11 + $0x18] sm:$0xff] }
 0x247   : > { %v1012_v45 = vadd.f32 %v4672_v16, %v989_v23  ;;  %3251 = vmatmul.mubr.f32.gmra.mxu0 %v1458_v24  ;;  %3340 = vmatprep.subr.mxu0 %v1630_v56  ;;  %v2134_v23 = vld [vmem:[%s5187_s11 + $0x48] sm:$0xff]  ;;  %v2133_v24 = vld [vmem:[%s5187_s11 + $0x40] sm:$0xff] }
 0x248   : > { %3253 = vmatprep.mubr.f32.mxu0 %v1459_v25  ;;  %3341 = vmatpush3.msra.mxu0 %v1630_v56  ;;  %v2132_v25 = vld [vmem:[%s5187_s11 + $0x38] sm:$0xff]  ;;  %v2127_v56 = vld [vmem:[%s5187_s11 + $0x10] sm:$0xff] }
 0x249   : > { %v1460_v30 = vmul.f32 %v1442_v3, %v1012_v45  ;;  %3286 = vmatprep.subr.mxu1 %v1629_v6  ;;  %3342 = vmatprep.subr.mxu0 %v1629_v6  ;;  %v2131_v3 = vld [vmem:[%s5187_s11 + $0x30] sm:$0xff]  ;;  %v2130_v45 = vld [vmem:[%s5187_s11 + $0x28] sm:$0xff] }
 0x24a   : > { %3287 = vmatpush3.msra.mxu1 %v1629_v6  ;;  %3343 = vmatpush3.msra.mxu0 %v1629_v6  ;;  %v2126_v6 = vld [vmem:[%s5187_s11 + $0x8] sm:$0xff] }
 0x24b   : > { %3254 = vmatmul.mubr.f32.gmra.mxu0 %v1460_v30  ;;  %3368 = vmatprep.subr.mxu1 %v2140_v10  ;;  %v2129_v30 = vld [vmem:[%s5187_s11 + $0x20] sm:$0xff] }
 0x2eb   : > { %v3234_v7 = vpop.f32.mrf.mxu0 }
 0x2ec   : > { %v4801_v16 = vadd.f32 %v3234_v7, %v4798_v37  ;;  %v2308_v7 = vld [vmem:[#allocation10 + $0x78] sm:$0xff] }
 0x2ed   : > { %v1550_v60 = vpop.f32.mrf.mxu0  ;;  %3424 = vmatprep.subr.mxu0 %v2308_v7 }
 0x2ee   : > { %v4804_v34 = vadd.f32 %v4798_v37, %v1550_v60  ;;  %v1791_v4 = vmul.f32 %v4801_v16, %v4801_v16  ;;  %v2307_v60 = vld [vmem:[#allocation10 + $0x70] sm:$0xff] }
 0x2f0   : > { %3288 = vmatprep.mubr.f32.mxu1 %v4804_v34  ;;  %v1790_v46 = vmul.f32 %v4804_v34, %v4804_v34 }
 0x2f1   : > { %3289 = vmatmul.mubr.f32.vlgmr.msra.gmra.mxu1 %v4801_v16 }
 0x2f2   : > { %3344 = vmatprep.mubr.f32.mxu0 %v1790_v46  ;;  %3369 = vmatpush3.msra.mxu1 %v2140_v10  ;;  %v2306_v46 = vld [vmem:[#allocation10 + $0x68] sm:$0xff] }
 0x2f3   : > { %v3237_v35 = vpop.f32.mrf.mxu0  ;;  %3345 = vmatmul.mubr.f32.vlgmr.msra.gmra.mxu0 %v1791_v4  ;;  %3370 = vmatprep.subr.mxu1 %v2139_v20  ;;  %v2305_v4 = vld [vmem:[#allocation10 + $0x60] sm:$0xff] }
 0x2f4   : > { %v4813_v38 = vadd.f32 %v3237_v35, %v4798_v37  ;;  %3371 = vmatpush3.msra.mxu1 %v2139_v20  ;;  %3425 = vmatpush3.msra.mxu0 %v2308_v7  ;;  %v2304_v35 = vld [vmem:[#allocation10 + $0x58] sm:$0xff] }
 0x2f5   : > { %v1560_v57 = vpop.f32.mrf.mxu0  ;;  %3372 = vmatprep.subr.mxu1 %v2138_v22  ;;  %3426 = vmatprep.subr.mxu0 %v2307_v60 }
 0x2f6   : > { %v4816_v29 = vadd.f32 %v4798_v37, %v1560_v57  ;;  %v1793_v42 = vmul.f32 %v4813_v38, %v4813_v38  ;;  %3373 = vmatpush3.msra.mxu1 %v2138_v22  ;;  %3427 = vmatpush3.msra.mxu0 %v2307_v60  ;;  %v2303_v57 = vld [vmem:[#allocation10 + $0x50] sm:$0xff] }
 0x2f7   : > { %v3240_v8 = vpop.f32.mrf.mxu0  ;;  %3374 = vmatprep.subr.mxu1 %v2137_v17  ;;  %3428 = vmatprep.subr.mxu0 %v2306_v46 }
 0x2f8   : > { %3291 = vmatprep.mubr.f32.mxu1 %v4816_v29  ;;  %v1792_v53 = vmul.f32 %v4816_v29, %v4816_v29  ;;  %v4822_v41 = vadd.f32 %v3240_v8, %v4798_v37  ;;  %3375 = vmatpush3.msra.mxu1 %v2137_v17  ;;  %v2302_v8 = vld [vmem:[#allocation10 + $0x48] sm:$0xff] }
 0x2f9   : > { %v1570_v47 = vpop.f32.mrf.mxu0  ;;  %3292 = vmatmul.mubr.f32.gmra.mxu1 %v4813_v38  ;;  %3376 = vmatprep.subr.mxu1 %v2136_v52 }
 0x2fa   : > { %v4828_v58 = vadd.f32 %v4798_v37, %v1570_v47  ;;  %3347 = vmatprep.mubr.f32.mxu0 %v1792_v53  ;;  %v1795_v61 = vmul.f32 %v4822_v41, %v4822_v41  ;;  %3377 = vmatpush3.msra.mxu1 %v2136_v52  ;;  %v2301_v53 = vld [vmem:[#allocation10 + $0x40] sm:$0xff]  ;;  %v2300_v47 = vld [vmem:[#allocation10 + $0x38] sm:$0xff] }
 0x2fb   : > { %v3243_v14 = vpop.f32.mrf.mxu0  ;;  %3348 = vmatmul.mubr.f32.gmra.mxu0 %v1793_v42  ;;  %3378 = vmatprep.subr.mxu1 %v2135_v1  ;;  %v2299_v42 = vld [vmem:[#allocation10 + $0x30] sm:$0xff] }
 0x2fc   : > { %3294 = vmatprep.mubr.f32.mxu1 %v4828_v58  ;;  %v1794_v21 = vmul.f32 %v4828_v58, %v4828_v58  ;;  %v4834_v49 = vadd.f32 %v3243_v14, %v4798_v37  ;;  %3379 = vmatpush3.msra.mxu1 %v2135_v1  ;;  %v2298_v14 = vld [vmem:[#allocation10 + $0x28] sm:$0xff] }
 0x2fd   : > { %v1580_v44 = vpop.f32.mrf.mxu0  ;;  %3295 = vmatmul.mubr.f32.gmra.mxu1 %v4822_v41  ;;  %3380 = vmatprep.subr.mxu1 %v2134_v23 }
 0x2fe   : > { %v4840_v33 = vadd.f32 %v4798_v37, %v1580_v44  ;;  %3350 = vmatprep.mubr.f32.mxu0 %v1794_v21  ;;  %v1797_v5 = vmul.f32 %v4834_v49, %v4834_v49  ;;  %3381 = vmatpush3.msra.mxu1 %v2134_v23  ;;  %v2297_v21 = vld [vmem:[#allocation10 + $0x20] sm:$0xff]  ;;  %v2296_v44 = vld [vmem:[#allocation10 + $0x18] sm:$0xff] }
 0x2ff   : > { %v3246_v40 = vpop.f32.mrf.mxu0  ;;  %3351 = vmatmul.mubr.f32.gmra.mxu0 %v1795_v61  ;;  %3382 = vmatprep.subr.mxu1 %v2133_v24 }
 0x300   : > { %3297 = vmatprep.mubr.f32.mxu1 %v4840_v33  ;;  %v1796_v19 = vmul.f32 %v4840_v33, %v4840_v33  ;;  %v4846_v48 = vadd.f32 %v3246_v40, %v4798_v37  ;;  %3383 = vmatpush3.msra.mxu1 %v2133_v24 }
 0x301   : > { %v1590_v27 = vpop.f32.mrf.mxu0  ;;  %3298 = vmatmul.mubr.f32.gmra.mxu1 %v4834_v49  ;;  %3384 = vmatprep.subr.mxu1 %v2132_v25 }
 0x302   : > { %v4852_v31 = vadd.f32 %v4798_v37, %v1590_v27  ;;  %3353 = vmatprep.mubr.f32.mxu0 %v1796_v19  ;;  %v1799_v54 = vmul.f32 %v4846_v48, %v4846_v48  ;;  %3385 = vmatpush3.msra.mxu1 %v2132_v25 }
 0x303   : > { %v3249_v59 = vpop.f32.mrf.mxu0  ;;  %3354 = vmatmul.mubr.f32.gmra.mxu0 %v1797_v5  ;;  %3386 = vmatprep.subr.mxu1 %v2131_v3 }
 0x304   : > { %3300 = vmatprep.mubr.f32.mxu1 %v4852_v31  ;;  %v1798_v11 = vmul.f32 %v4852_v31, %v4852_v31  ;;  %v4858_v26 = vadd.f32 %v3249_v59, %v4798_v37  ;;  %3387 = vmatpush3.msra.mxu1 %v2131_v3 }
 0x305   : > { %v1600_v15 = vpop.f32.mrf.mxu0  ;;  %3301 = vmatmul.mubr.f32.gmra.mxu1 %v4846_v48  ;;  %3388 = vmatprep.subr.mxu1 %v2130_v45 }
 0x306   : > { %v4864_v63 = vadd.f32 %v4798_v37, %v1600_v15  ;;  %3356 = vmatprep.mubr.f32.mxu0 %v1798_v11  ;;  %v1801_v39 = vmul.f32 %v4858_v26, %v4858_v26  ;;  %3389 = vmatpush3.msra.mxu1 %v2130_v45 }
 0x307   : > { %v3252_v62 = vpop.f32.mrf.mxu0  ;;  %3357 = vmatmul.mubr.f32.gmra.mxu0 %v1799_v54  ;;  %3390 = vmatprep.subr.mxu1 %v2129_v30 }
 0x308   : > { %3303 = vmatprep.mubr.f32.mxu1 %v4864_v63  ;;  %v1800_v50 = vmul.f32 %v4864_v63, %v4864_v63  ;;  %v4870_v36 = vadd.f32 %v3252_v62, %v4798_v37  ;;  %3391 = vmatpush3.msra.mxu1 %v2129_v30 }
 0x309   : > { %v1610_v9 = vpop.f32.mrf.mxu0  ;;  %3304 = vmatmul.mubr.f32.gmra.mxu1 %v4858_v26  ;;  %3392 = vmatprep.subr.mxu1 %v2128_v28 }
 0x30a   : > { %v4876_v12 = vadd.f32 %v4798_v37, %v1610_v9  ;;  %3359 = vmatprep.mubr.f32.mxu0 %v1800_v50  ;;  %v1803_v55 = vmul.f32 %v4870_v36, %v4870_v36  ;;  %3393 = vmatpush3.msra.mxu1 %v2128_v28 }
 0x30b   : > { %v3255_v43 = vpop.f32.mrf.mxu0  ;;  %3360 = vmatmul.mubr.f32.gmra.mxu0 %v1801_v39  ;;  %3394 = vmatprep.subr.mxu1 %v2127_v56 }
 0x30c   : > { %3306 = vmatprep.mubr.f32.mxu1 %v4876_v12  ;;  %v1802_v32 = vmul.f32 %v4876_v12, %v4876_v12  ;;  %v4882_v51 = vadd.f32 %v3255_v43, %v4798_v37  ;;  %3395 = vmatpush3.msra.mxu1 %v2127_v56 }
 0x30d   : > { %v1620_v13 = vpop.f32.mrf.mxu0  ;;  %3307 = vmatmul.mubr.f32.gmra.mxu1 %v4870_v36  ;;  %3396 = vmatprep.subr.mxu1 %v2126_v6 }
 0x30e   : > { %v4888_v2 = vadd.f32 %v4798_v37, %v1620_v13  ;;  %3362 = vmatprep.mubr.f32.mxu0 %v1802_v32  ;;  %v1805_v0 = vmul.f32 %v4882_v51, %v4882_v51  ;;  %3397 = vmatpush3.msra.mxu1 %v2126_v6  ;;  %v2125_v37 = vld [vmem:[%s5187_s11] sm:$0xff] }
 0x30f   : > { %3363 = vmatmul.mubr.f32.gmra.mxu0 %v1803_v55  ;;  %3398 = vmatprep.subr.mxu1 %v2125_v37 }
 0x310   : > { %3309 = vmatprep.mubr.f32.mxu1 %v4888_v2  ;;  %v1804_v18 = vmul.f32 %v4888_v2, %v4888_v2  ;;  %3399 = vmatpush3.msra.mxu1 %v2125_v37 }
 0x311   : > { %3310 = vmatmul.mubr.f32.gmra.mxu1 %v4882_v51  ;;  %3429 = vmatpush3.msra.mxu0 %v2306_v46 }
 0x312   : > { %3365 = vmatprep.mubr.f32.mxu0 %v1804_v18  ;;  %3430 = vmatprep.subr.mxu0 %v2305_v4 }
 0x313   : > { %3366 = vmatmul.mubr.f32.gmra.mxu0 %v1805_v0 }
 0x314   : > { %3431 = vmatpush3.msra.mxu0 %v2305_v4 }
 0x315   : > { %3432 = vmatprep.subr.mxu0 %v2304_v35 }
 0x316   : > { %3433 = vmatpush3.msra.mxu0 %v2304_v35 }
 0x317   : > { %3434 = vmatprep.subr.mxu0 %v2303_v57 }
 0x318   : > { %3435 = vmatpush3.msra.mxu0 %v2303_v57 }
 0x319   : > { %3436 = vmatprep.subr.mxu0 %v2302_v8 }
 0x31a   : > { %3437 = vmatpush3.msra.mxu0 %v2302_v8 }
 0x31b   : > { %3438 = vmatprep.subr.mxu0 %v2301_v53 }
 0x31c   : > { %3439 = vmatpush3.msra.mxu0 %v2301_v53 }
 0x31d   : > { %3440 = vmatprep.subr.mxu0 %v2300_v47 }
 0x31e   : > { %3441 = vmatpush3.msra.mxu0 %v2300_v47 }
 0x31f   : > { %3442 = vmatprep.subr.mxu0 %v2299_v42 }
 0x320   : > { %3443 = vmatpush3.msra.mxu0 %v2299_v42 }
 0x321   : > { %3444 = vmatprep.subr.mxu0 %v2298_v14 }
 0x322   : > { %3445 = vmatpush3.msra.mxu0 %v2298_v14 }
 0x323   : > { %3446 = vmatprep.subr.mxu0 %v2297_v21 }
 0x324   : > { %3447 = vmatpush3.msra.mxu0 %v2297_v21 }
 0x325   : > { %3448 = vmatprep.subr.mxu0 %v2296_v44 }
 0x326   : > { %3449 = vmatpush3.msra.mxu0 %v2296_v44 }
 0x3b1   : > { %v3290_v61 = vpop.f32.mrf.mxu1 }
 0x3b2   : > { %v1952_v40 = vmul.f32 %v3290_v61, %v3290_v61  ;;  %v2000_v47 = vsub.f32 %v4801_v16, %v3290_v61  ;;  %v4984_v16 = vld [vmem:[%s5185_s9] ss:$0 sm:$0xff] }
 0x3b3   : > { %v4944_v19 = vpop.f32.mrf.mxu1  ;;  %v3346_v27 = vpop.f32.mrf.mxu0 }
 0x3b4   : > { %v1951_v5 = vmul.f32 %v4944_v19, %v4944_v19  ;;  %v1968_v59 = vsub.f32 %v3346_v27, %v1952_v40 }
 0x3b5   : > { %v1872_v11 = vpop.f32.mrf.mxu0 }
 0x3b6   : > { %v1984_v15 = vmax.f32 %v1968_v59, 0.0  ;;  %v1967_v54 = vsub.f32 %v1872_v11, %v1951_v5 }
 0x3b8   : > { %v2016_v62 = vadd.f32 1e-05, %v1984_v15  ;;  %v1983_v50 = vmax.f32 %v1967_v54, 0.0 }
 0x3b9   : > { %v4948_v9 = vpop.f32.mrf.mxu1 }
 0x3ba   : > { %3673 = vrsqrt.f32 %v2016_v62  ;;  %v2015_v39 = vadd.f32 1e-05, %v1983_v50  ;;  %v1954_v43 = vmul.f32 %v4948_v9, %v4948_v9  ;;  %v1999_v62 = vsub.f32 %v4804_v34, %v4944_v19  ;;  %v4997_v34 = vld [vmem:[%s5186_s10] ss:$0 sm:$0xff] }
 0x3bb   : > { %v4952_v32 = vpop.f32.mrf.mxu1  ;;  %v3349_v13 = vpop.f32.mrf.mxu0 }
 0x3bc   : > { %3675 = vrsqrt.f32 %v2015_v39  ;;  %v1953_v55 = vmul.f32 %v4952_v32, %v4952_v32  ;;  %v1970_v18 = vsub.f32 %v3349_v13, %v1954_v43 }
 0x3bd   : > { %v4956_v0 = vpop.f32.mrf.mxu1  ;;  %v1882_v10 = vpop.f32.mrf.mxu0 }
 0x3be   : > { %v1986_v20 = vmax.f32 %v1970_v18, 0.0  ;;  %v1956_v22 = vmul.f32 %v4956_v0, %v4956_v0  ;;  %v1969_v17 = vsub.f32 %v1882_v10, %v1953_v55 }
 0x3bf   : > { %v4960_v52 = vpop.f32.mrf.mxu1  ;;  %v3352_v1 = vpop.f32.mrf.mxu0 }
 0x3c0   : > { %v2018_v23 = vadd.f32 1e-05, %v1986_v20  ;;  %v1985_v24 = vmax.f32 %v1969_v17, 0.0  ;;  %v1955_v25 = vmul.f32 %v4960_v52, %v4960_v52  ;;  %v1972_v3 = vsub.f32 %v3352_v1, %v1956_v22 }
 0x3c1   : > { %v4964_v45 = vpop.f32.mrf.mxu1  ;;  %v1892_v30 = vpop.f32.mrf.mxu0 }
 0x3c2   : > { %3677 = vrsqrt.f32 %v2018_v23  ;;  %v2017_v28 = vadd.f32 1e-05, %v1985_v24  ;;  %v1958_v56 = vmul.f32 %v4964_v45, %v4964_v45  ;;  %v1988_v6 = vmax.f32 %v1972_v3, 0.0 }
 0x3c3   : > { %v1971_v37 = vsub.f32 %v1892_v30, %v1955_v25  ;;  %v4968_v7 = vpop.f32.mrf.mxu1  ;;  %v3355_v60 = vpop.f32.mrf.mxu0  ;;  %v2002_v24 = vsub.f32 %v4813_v38, %v4948_v9 }
 0x3c4   : > { %3679 = vrsqrt.f32 %v2017_v28  ;;  %v1957_v46 = vmul.f32 %v4968_v7, %v4968_v7  ;;  %v1974_v4 = vsub.f32 %v3355_v60, %v1958_v56  ;;  %v2020_v35 = vadd.f32 1e-05, %v1988_v6 }
 0x3c5   : > { %v1987_v57 = vmax.f32 %v1971_v37, 0.0  ;;  %v4972_v8 = vpop.f32.mrf.mxu1  ;;  %v1902_v53 = vpop.f32.mrf.mxu0 }
 0x3c6   : > { %v1990_v42 = vmax.f32 %v1974_v4, 0.0  ;;  %v1960_v14 = vmul.f32 %v4972_v8, %v4972_v8  ;;  %v1973_v21 = vsub.f32 %v1902_v53, %v1957_v46  ;;  %3681 = vrsqrt.f32 %v2020_v35 }
 0x3c7   : > { %v3674_v44 = vpop.eup %3673  ;;  %v2019_v40 = vadd.f32 1e-05, %v1987_v57  ;;  %v4977_v27 = vpop.f32.mrf.mxu1  ;;  %v2001_v35 = vsub.f32 %v4816_v29, %v4952_v32 }
 0x3c8   : > { %v3358_v5 = vpop.f32.mrf.mxu0  ;;  %v2048_v59 = vmul.f32 %v3674_v44, %v2000_v47  ;;  %v2022_v11 = vadd.f32 1e-05, %v1990_v42  ;;  %v1989_v15 = vmax.f32 %v1973_v21, 0.0  ;;  %v1959_v54 = vmul.f32 %v4977_v27, %v4977_v27 }
 0x3c9   : > { %v3676_v61 = vpop.eup %3675  ;;  %3683 = vrsqrt.f32 %v2019_v40  ;;  %v1976_v50 = vsub.f32 %v3358_v5, %v1960_v14  ;;  %v4988_v39 = vpop.f32.mrf.mxu1  ;;  %v2004_v47 = vsub.f32 %v4822_v41, %v4956_v0 }
 0x3ca   : > { %v1912_v43 = vpop.f32.mrf.mxu0  ;;  %3685 = vrsqrt.f32 %v2022_v11  ;;  %v2021_v13 = vadd.f32 1e-05, %v1989_v15  ;;  %v1962_v55 = vmul.f32 %v4988_v39, %v4988_v39  ;;  %v2047_v17 = vmul.f32 %v3676_v61, %v1999_v62 }
 0x3cb   : > { %v1992_v18 = vmax.f32 %v1976_v50, 0.0  ;;  %v1975_v10 = vsub.f32 %v1912_v43, %v1959_v54  ;;  %v4992_v20 = vpop.f32.mrf.mxu1  ;;  %v2071_v19 = vmul.f32 %v4984_v16, %v2048_v59 }
 0x3cc   : > { %v3361_v22 = vpop.f32.mrf.mxu0  ;;  %3687 = vrsqrt.f32 %v2021_v13  ;;  %v1961_v1 = vmul.f32 %v4992_v20, %v4992_v20  ;;  %v2070_v56 = vmul.f32 %v4984_v16, %v2047_v17 }
 0x3cd   : > { %v1978_v23 = vsub.f32 %v3361_v22, %v1962_v55  ;;  %v2024_v25 = vadd.f32 1e-05, %v1992_v18  ;;  %v1991_v3 = vmax.f32 %v1975_v10, 0.0  ;;  %v5004_v30 = vpop.f32.mrf.mxu1  ;;  %v2094_v46 = vadd.f32 %v4997_v34, %v2071_v19 }
 0x3ce   : > { %v1922_v28 = vpop.f32.mrf.mxu0  ;;  %v1964_v37 = vmul.f32 %v5004_v30, %v5004_v30  ;;  %v2093_v53 = vadd.f32 %v4997_v34, %v2070_v56  ;;  %v2003_v55 = vsub.f32 %v4828_v58, %v4960_v52  ;;  %v2005_v56 = vsub.f32 %v4840_v33, %v4968_v7 }
 0x3cf   : > { %v1994_v6 = vmax.f32 %v1978_v23, 0.0  ;;  %v1977_v60 = vsub.f32 %v1922_v28, %v1961_v1  ;;  %v3678_v4 = vpop.eup %3677  ;;  %3689 = vrsqrt.f32 %v2024_v25  ;;  %v2023_v38 = vadd.f32 1e-05, %v1991_v3  ;;  %v5012_v9 = vpop.f32.mrf.mxu1 }
 0x3d0   : > { %v3364_v57 = vpop.f32.mrf.mxu0  ;;  %v1963_v21 = vmul.f32 %v5012_v9, %v5012_v9  ;;  %v2109_v32 = vmax.f32 %v2093_v53, 0.0  ;;  %v2050_v59 = vmul.f32 %v3678_v4, %v2002_v24  ;;  %v2110_v54 = vmax.f32 %v2094_v46, 0.0 }
 0x3d1   : > { %v2026_v42 = vadd.f32 1e-05, %v1994_v6  ;;  %v1993_v14 = vmax.f32 %v1977_v60, 0.0  ;;  %v3680_v44 = vpop.eup %3679  ;;  %3691 = vrsqrt.f32 %v2023_v38  ;;  %v1980_v40 = vsub.f32 %v3364_v57, %v1964_v37  ;;  %v5019_v5 = vpop.f32.mrf.mxu1 }
 0x3d2   : > { %v1932_v29 = vpop.f32.mrf.mxu0  ;;  %v1966_v15 = vmul.f32 %v5019_v5, %v5019_v5  ;;  %3400 = vmatprep.mubr.f32.mxu1 %v2109_v32  ;;  %v2049_v50 = vmul.f32 %v3680_v44, %v2001_v35  ;;  %v2073_v43 = vmul.f32 %v4984_v16, %v2050_v59  ;;  %v2006_v25 = vsub.f32 %v4834_v49, %v4964_v45 }
 0x3d3   : > { %3693 = vrsqrt.f32 %v2026_v42  ;;  %v2025_v11 = vadd.f32 1e-05, %v1993_v14  ;;  %v1996_v41 = vmax.f32 %v1980_v40, 0.0  ;;  %v1979_v0 = vsub.f32 %v1932_v29, %v1963_v21  ;;  %v5023_v61 = vpop.f32.mrf.mxu1  ;;  %v3682_v13 = vpop.eup %3681  ;;  %3401 = vmatmul.mubr.f32.vlgmr.msra.gmra.mxu1 %v2110_v54 }
 0x3d4   : > { %v3367_v62 = vpop.f32.mrf.mxu0  ;;  %v1965_v18 = vmul.f32 %v5023_v61, %v5023_v61  ;;  %v2072_v1 = vmul.f32 %v4984_v16, %v2049_v50  ;;  %v2096_v23 = vadd.f32 %v4997_v34, %v2073_v43  ;;  %v2052_v58 = vmul.f32 %v3682_v13, %v2004_v47 }
 0x3d5   : > { %3695 = vrsqrt.f32 %v2025_v11  ;;  %v1982_v10 = vsub.f32 %v3367_v62, %v1966_v15  ;;  %v2028_v22 = vadd.f32 1e-05, %v1996_v41  ;;  %v1995_v17 = vmax.f32 %v1979_v0, 0.0 }
 0x3d6   : > { %v1942_v19 = vpop.f32.mrf.mxu0  ;;  %v3684_v24 = vpop.eup %3683  ;;  %v2095_v37 = vadd.f32 %v4997_v34, %v2072_v1  ;;  %v2075_v35 = vmul.f32 %v4984_v16, %v2052_v58  ;;  %v2112_v49 = vmax.f32 %v2096_v23, 0.0  ;;  %v2008_v7 = vsub.f32 %v4846_v48, %v4972_v8 }
 0x3d7   : > { %v1998_v3 = vmax.f32 %v1982_v10, 0.0  ;;  %v1981_v28 = vsub.f32 %v1942_v19, %v1965_v18  ;;  %v3686_v52 = vpop.eup %3685  ;;  %3697 = vrsqrt.f32 %v2028_v22  ;;  %v2027_v6 = vadd.f32 1e-05, %v1995_v17 }
 0x3d8   : > { %v2051_v4 = vmul.f32 %v3684_v24, %v2003_v55  ;;  %v2111_v57 = vmax.f32 %v2095_v37, 0.0  ;;  %v2054_v45 = vmul.f32 %v3686_v52, %v2006_v25  ;;  %v2098_v33 = vadd.f32 %v4997_v34, %v2075_v35 }
 0x3d9   : > { %v2030_v60 = vadd.f32 1e-05, %v1998_v3  ;;  %v1997_v46 = vmax.f32 %v1981_v28, 0.0  ;;  %v3688_v38 = vpop.eup %3687  ;;  %3699 = vrsqrt.f32 %v2027_v6  ;;  %v2007_v40 = vsub.f32 %v4852_v31, %v4977_v27 }
 0x3da   : > { %v2074_v47 = vmul.f32 %v4984_v16, %v2051_v4  ;;  %3403 = vmatprep.mubr.f32.mxu1 %v2111_v57  ;;  %v2053_v42 = vmul.f32 %v3688_v38, %v2005_v56  ;;  %v2077_v14 = vmul.f32 %v4984_v16, %v2054_v45  ;;  %v2010_v11 = vsub.f32 %v4858_v26, %v4988_v39  ;;  %v2295_v45 = vld [vmem:[#allocation10 + $0x10] sm:$0xff] }
 0x3db   : > { %3701 = vrsqrt.f32 %v2030_v60  ;;  %v2029_v53 = vadd.f32 1e-05, %v1997_v46  ;;  %3404 = vmatmul.mubr.f32.gmra.mxu1 %v2112_v49  ;;  %v2114_v8 = vmax.f32 %v2098_v33, 0.0  ;;  %v2009_v31 = vsub.f32 %v4864_v63, %v4992_v20  ;;  %3450 = vmatprep.subr.mxu0 %v2295_v45  ;;  %v2491_v33 = vld [vmem:[#allocation11 + $0x70] sm:$0xff] }
 0x3dc   : > { %v3690_v21 = vpop.eup %3689  ;;  %v2097_v44 = vadd.f32 %v4997_v34, %v2074_v47  ;;  %v2076_v29 = vmul.f32 %v4984_v16, %v2053_v42  ;;  %v2100_v41 = vadd.f32 %v4997_v34, %v2077_v14  ;;  %v2012_v39 = vsub.f32 %v4870_v36, %v5004_v30  ;;  %3451 = vmatpush3.msra.mxu0 %v2295_v45  ;;  %v2293_v47 = vld [vmem:[#allocation10] sm:$0xff]  ;;  %v2488_v42 = vld [vmem:[#allocation11 + $0x58] sm:$0xff]  ;;  %v2487_v14 = vld [vmem:[#allocation11 + $0x50] sm:$0xff] }
 0x3dd   : > { %3703 = vrsqrt.f32 %v2029_v53  ;;  %v2056_v32 = vmul.f32 %v3690_v21, %v2008_v7  ;;  %v2011_v17 = vsub.f32 %v4876_v12, %v5012_v9  ;;  %v2014_v36 = vsub.f32 %v4882_v51, %v5019_v5  ;;  %v2294_v53 = vld [vmem:[#allocation10 + $0x8] sm:$0xff] }
 0x3de   : > { %v3692_v59 = vpop.eup %3691  ;;  %v2113_v48 = vmax.f32 %v2097_v44, 0.0  ;;  %v2099_v54 = vadd.f32 %v4997_v34, %v2076_v29  ;;  %v2116_v55 = vmax.f32 %v2100_v41, 0.0  ;;  %v2013_v12 = vsub.f32 %v4888_v2, %v5023_v61  ;;  %3452 = vmatprep.subr.mxu0 %v2294_v53  ;;  %v2490_v7 = vld [vmem:[#allocation11 + $0x68] sm:$0xff]  ;;  %v2485_v44 = vld [vmem:[#allocation11 + $0x40] sm:$0xff]  ;;  %v2483_v29 = vld [vmem:[#allocation11 + $0x30] sm:$0xff] }
 0x3df   : > { %v2055_v0 = vmul.f32 %v3692_v59, %v2007_v40  ;;  %v2079_v62 = vmul.f32 %v4984_v16, %v2056_v32  ;;  %3453 = vmatpush3.msra.mxu0 %v2294_v53  ;;  %v2486_v21 = vld [vmem:[#allocation11 + $0x48] sm:$0xff]  ;;  %v2484_v40 = vld [vmem:[#allocation11 + $0x38] sm:$0xff]  ;;  %v2481_v59 = vld [vmem:[#allocation11 + $0x20] sm:$0xff] }
 0x3e0   : > { %v3694_v15 = vpop.eup %3693  ;;  %3406 = vmatprep.mubr.f32.mxu1 %v2113_v48  ;;  %v2115_v43 = vmax.f32 %v2099_v54, 0.0  ;;  %3454 = vmatprep.subr.mxu0 %v2293_v47  ;;  %v2482_v32 = vld [vmem:[#allocation11 + $0x28] sm:$0xff]  ;;  %v2871_v48 = vld [vmem:[%s5188_s12] ss:$0 sm:$0xff] }
 0x3e1   : > { %v2058_v27 = vmul.f32 %v3694_v15, %v2010_v11  ;;  %3407 = vmatmul.mubr.f32.gmra.mxu1 %v2114_v8  ;;  %v2078_v26 = vmul.f32 %v4984_v16, %v2055_v0  ;;  %v2102_v10 = vadd.f32 %v4997_v34, %v2079_v62  ;;  %3455 = vmatpush3.msra.mxu0 %v2293_v47 }
 0x3e2   : > { %v3696_v50 = vpop.eup %3695  ;;  %3409 = vmatprep.mubr.f32.mxu1 %v2115_v43 }
 0x3e3   : > { %v2057_v13 = vmul.f32 %v3696_v50, %v2009_v31  ;;  %v2101_v18 = vadd.f32 %v4997_v34, %v2078_v26  ;;  %v2081_v22 = vmul.f32 %v4984_v16, %v2058_v27  ;;  %v2118_v25 = vmax.f32 %v2102_v10, 0.0 }
 0x3e4   : > { %v3698_v63 = vpop.eup %3697 }
 0x3e5   : > { %v2080_v20 = vmul.f32 %v4984_v16, %v2057_v13  ;;  %3410 = vmatmul.mubr.f32.gmra.mxu1 %v2116_v55  ;;  %v2117_v19 = vmax.f32 %v2101_v18, 0.0  ;;  %v2060_v1 = vmul.f32 %v3698_v63, %v2012_v39  ;;  %v2104_v3 = vadd.f32 %v4997_v34, %v2081_v22 }
 0x3e6   : > { %v3700_v23 = vpop.eup %3699 }
 0x3e7   : > { %v2103_v30 = vadd.f32 %v4997_v34, %v2080_v20  ;;  %3412 = vmatprep.mubr.f32.mxu1 %v2117_v19  ;;  %v2059_v28 = vmul.f32 %v3700_v23, %v2011_v17  ;;  %v2083_v58 = vmul.f32 %v4984_v16, %v2060_v1  ;;  %v2120_v5 = vmax.f32 %v2104_v3, 0.0 }
 0x3e8   : > { %v3702_v24 = vpop.eup %3701 }
 0x3e9   : > { %v2119_v9 = vmax.f32 %v2103_v30, 0.0  ;;  %v2062_v52 = vmul.f32 %v3702_v24, %v2014_v36  ;;  %3413 = vmatmul.mubr.f32.gmra.mxu1 %v2118_v25  ;;  %v2082_v6 = vmul.f32 %v4984_v16, %v2059_v28  ;;  %v2106_v60 = vadd.f32 %v4997_v34, %v2083_v58 }
 0x3ea   : > { %v3704_v56 = vpop.eup %3703 }
 0x3eb   : > { %3415 = vmatprep.mubr.f32.mxu1 %v2119_v9  ;;  %v2061_v51 = vmul.f32 %v3704_v56, %v2013_v12  ;;  %v2105_v37 = vadd.f32 %v4997_v34, %v2082_v6  ;;  %v2085_v46 = vmul.f32 %v4984_v16, %v2062_v52  ;;  %v2122_v61 = vmax.f32 %v2106_v60, 0.0  ;;  %v2480_v9 = vld [vmem:[#allocation11 + $0x18] sm:$0xff]  ;;  %v2479_v52 = vld [vmem:[#allocation11 + $0x10] sm:$0xff]  ;;  %v2478_v56 = vld [vmem:[#allocation11 + $0x8] sm:$0xff] }
 0x3ec   : > { %v2477_v6 = vld [vmem:[#allocation11] sm:$0xff] }
 0x3ed   : > { %v2084_v4 = vmul.f32 %v4984_v16, %v2061_v51  ;;  %3416 = vmatmul.mubr.f32.gmra.mxu1 %v2120_v5  ;;  %v2121_v35 = vmax.f32 %v2105_v37, 0.0  ;;  %v2108_v38 = vadd.f32 %v4997_v34, %v2085_v46  ;;  %v2492_v16 = vld [vmem:[#allocation11 + $0x78] sm:$0xff] }
 0x3ee   : > { %3480 = vmatprep.subr.mxu1 %v2492_v16  ;;  %v2872_v51 = vld [vmem:[%s5191_s15] ss:$0 sm:$0xff] }
 0x3ef   : > { %v2107_v2 = vadd.f32 %v4997_v34, %v2084_v4  ;;  %3418 = vmatprep.mubr.f32.mxu1 %v2121_v35  ;;  %v2124_v49 = vmax.f32 %v2108_v38, 0.0  ;;  %3481 = vmatpush3.msra.mxu1 %v2492_v16  ;;  %v2489_v34 = vld [vmem:[#allocation11 + $0x60] sm:$0xff] }
 0x3f0   : > { %3482 = vmatprep.subr.mxu1 %v2491_v33 }
 0x3f1   : > { %v2123_v57 = vmax.f32 %v2107_v2, 0.0  ;;  %3419 = vmatmul.mubr.f32.gmra.mxu1 %v2122_v61 }
 0x3f2   : > { %3483 = vmatpush3.msra.mxu1 %v2491_v33 }
 0x3f3   : > { %3421 = vmatprep.mubr.f32.mxu1 %v2123_v57  ;;  %3484 = vmatprep.subr.mxu1 %v2490_v7 }
 0x3f4   : > { %3485 = vmatpush3.msra.mxu1 %v2490_v7 }
 0x3f5   : > { %3422 = vmatmul.mubr.f32.gmra.mxu1 %v2124_v49  ;;  %3486 = vmatprep.subr.mxu1 %v2489_v34 }
 0x3f6   : > { %3487 = vmatpush3.msra.mxu1 %v2489_v34 }
 0x3f7   : > { %3488 = vmatprep.subr.mxu1 %v2488_v42 }
 0x3f8   : > { %3489 = vmatpush3.msra.mxu1 %v2488_v42 }
 0x3f9   : > { %3490 = vmatprep.subr.mxu1 %v2487_v14 }
 0x3fa   : > { %3491 = vmatpush3.msra.mxu1 %v2487_v14 }
 0x3fb   : > { %3492 = vmatprep.subr.mxu1 %v2486_v21 }
 0x3fc   : > { %3493 = vmatpush3.msra.mxu1 %v2486_v21 }
 0x3fd   : > { %3494 = vmatprep.subr.mxu1 %v2485_v44 }
 0x3fe   : > { %3495 = vmatpush3.msra.mxu1 %v2485_v44 }
 0x3ff   : > { %3496 = vmatprep.subr.mxu1 %v2484_v40 }
 0x400   : > { %3497 = vmatpush3.msra.mxu1 %v2484_v40 }
 0x401   : > { %3498 = vmatprep.subr.mxu1 %v2483_v29 }
 0x402   : > { %3499 = vmatpush3.msra.mxu1 %v2483_v29 }
 0x403   : > { %3500 = vmatprep.subr.mxu1 %v2482_v32 }
 0x404   : > { %3501 = vmatpush3.msra.mxu1 %v2482_v32 }
 0x405   : > { %3502 = vmatprep.subr.mxu1 %v2481_v59 }
 0x406   : > { %3503 = vmatpush3.msra.mxu1 %v2481_v59 }
 0x407   : > { %3504 = vmatprep.subr.mxu1 %v2480_v9 }
 0x408   : > { %3505 = vmatpush3.msra.mxu1 %v2480_v9 }
 0x409   : > { %3506 = vmatprep.subr.mxu1 %v2479_v52 }
 0x40a   : > { %3507 = vmatpush3.msra.mxu1 %v2479_v52 }
 0x40b   : > { %3508 = vmatprep.subr.mxu1 %v2478_v56 }
 0x40c   : > { %3509 = vmatpush3.msra.mxu1 %v2478_v56 }
 0x40d   : > { %3510 = vmatprep.subr.mxu1 %v2477_v6 }
 0x40e   : > { %3511 = vmatpush3.msra.mxu1 %v2477_v6 }
 0x493   : > { %v3402_v11 = vpop.f32.mrf.mxu1 }
 0x494   : > { %v2220_v54 = vadd.f32 %v3402_v11, %v2871_v48 }
 0x495   : > { %v2214_v8 = vpop.f32.mrf.mxu1 }
 0x496   : > { %v2215_v15 = vadd.f32 %v2871_v48, %v2214_v8 }
 0x498   : > { %3456 = vmatprep.mubr.f32.mxu0 %v2215_v15 }
 0x499   : > { %3457 = vmatmul.mubr.f32.vlgmr.msra.gmra.mxu0 %v2220_v54 }
 0x49b   : > { %v3405_v41 = vpop.f32.mrf.mxu1 }
 0x49c   : > { %v2230_v31 = vadd.f32 %v3405_v41, %v2871_v48 }
 0x49d   : > { %v2224_v0 = vpop.f32.mrf.mxu1 }
 0x49e   : > { %v2225_v62 = vadd.f32 %v2871_v48, %v2224_v0 }
 0x4a0   : > { %3459 = vmatprep.mubr.f32.mxu0 %v2225_v62 }
 0x4a1   : > { %v3408_v27 = vpop.f32.mrf.mxu1  ;;  %3460 = vmatmul.mubr.f32.gmra.mxu0 %v2230_v31 }
 0x4a2   : > { %v2240_v26 = vadd.f32 %v3408_v27, %v2871_v48 }
 0x4a3   : > { %v2234_v50 = vpop.f32.mrf.mxu1 }
 0x4a4   : > { %v2235_v43 = vadd.f32 %v2871_v48, %v2234_v50 }
 0x4a5   : > { %v3411_v39 = vpop.f32.mrf.mxu1 }
 0x4a6   : > { %3462 = vmatprep.mubr.f32.mxu0 %v2235_v43  ;;  %v2250_v18 = vadd.f32 %v3411_v39, %v2871_v48 }
 0x4a7   : > { %v2244_v13 = vpop.f32.mrf.mxu1  ;;  %3463 = vmatmul.mubr.f32.gmra.mxu0 %v2240_v26 }
 0x4a8   : > { %v2245_v55 = vadd.f32 %v2871_v48, %v2244_v13 }
 0x4a9   : > { %v3414_v10 = vpop.f32.mrf.mxu1 }
 0x4aa   : > { %3465 = vmatprep.mubr.f32.mxu0 %v2245_v55  ;;  %v2260_v20 = vadd.f32 %v3414_v10, %v2871_v48 }
 0x4ab   : > { %v2254_v22 = vpop.f32.mrf.mxu1  ;;  %3466 = vmatmul.mubr.f32.gmra.mxu0 %v2250_v18 }
 0x4ac   : > { %v2255_v63 = vadd.f32 %v2871_v48, %v2254_v22 }
 0x4ad   : > { %v3417_v17 = vpop.f32.mrf.mxu1 }
 0x4ae   : > { %3468 = vmatprep.mubr.f32.mxu0 %v2255_v63  ;;  %v2270_v23 = vadd.f32 %v3417_v17, %v2871_v48 }
 0x4af   : > { %v2264_v19 = vpop.f32.mrf.mxu1  ;;  %3469 = vmatmul.mubr.f32.gmra.mxu0 %v2260_v20 }
 0x4b0   : > { %v2265_v1 = vadd.f32 %v2871_v48, %v2264_v19  ;;  %v5087_v19 = vld [vmem:[%s5193_s17] ss:$0 sm:$0xff] }
 0x4b1   : > { %v3420_v36 = vpop.f32.mrf.mxu1 }
 0x4b2   : > { %3471 = vmatprep.mubr.f32.mxu0 %v2265_v1  ;;  %v2280_v25 = vadd.f32 %v3420_v36, %v2871_v48 }
 0x4b3   : > { %v2274_v30 = vpop.f32.mrf.mxu1  ;;  %3472 = vmatmul.mubr.f32.gmra.mxu0 %v2270_v23 }
 0x4b4   : > { %v2275_v24 = vadd.f32 %v2871_v48, %v2274_v30 }
 0x4b5   : > { %v3423_v3 = vpop.f32.mrf.mxu1 }
 0x4b6   : > { %3474 = vmatprep.mubr.f32.mxu0 %v2275_v24  ;;  %v2290_v12 = vadd.f32 %v3423_v3, %v2871_v48 }
 0x4b7   : > { %v2284_v28 = vpop.f32.mrf.mxu1  ;;  %3475 = vmatmul.mubr.f32.gmra.mxu0 %v2280_v25 }
 0x4b8   : > { %v2285_v58 = vadd.f32 %v2871_v48, %v2284_v28 }
 0x4ba   : > { %3477 = vmatprep.mubr.f32.mxu0 %v2285_v58 }
 0x4bb   : > { %3478 = vmatmul.mubr.f32.gmra.mxu0 %v2290_v12 }
 0x559   : > { %v3458_v5 = vpop.f32.mrf.mxu0 }
 0x55a   : > { %v2388_v37 = vadd.f32 %v3458_v5, %v2872_v51 }
 0x55b   : > { %v2382_v60 = vpop.f32.mrf.mxu0 }
 0x55c   : > { %v2383_v46 = vadd.f32 %v2872_v51, %v2382_v60  ;;  %v2462_v35 = vmax.f32 %v2388_v37, 0.0 }
 0x55e   : > { %v2461_v4 = vmax.f32 %v2383_v46, 0.0 }
 0x560   : > { %3512 = vmatprep.mubr.f32.mxu1 %v2461_v4 }
 0x561   : > { %v3461_v2 = vpop.f32.mrf.mxu0  ;;  %3513 = vmatmul.mubr.f32.vlgmr.msra.gmra.mxu1 %v2462_v35 }
 0x562   : > { %v2398_v61 = vadd.f32 %v3461_v2, %v2872_v51 }
 0x563   : > { %v2392_v38 = vpop.f32.mrf.mxu0 }
 0x564   : > { %v2393_v57 = vadd.f32 %v2872_v51, %v2392_v38  ;;  %v2464_v53 = vmax.f32 %v2398_v61, 0.0 }
 0x566   : > { %v2463_v49 = vmax.f32 %v2393_v57, 0.0 }
 0x567   : > { %v3464_v45 = vpop.f32.mrf.mxu0 }
 0x568   : > { %v2408_v47 = vadd.f32 %v3464_v45, %v2872_v51  ;;  %3515 = vmatprep.mubr.f32.mxu1 %v2463_v49 }
 0x569   : > { %v2402_v16 = vpop.f32.mrf.mxu0  ;;  %3516 = vmatmul.mubr.f32.gmra.mxu1 %v2464_v53 }
 0x56a   : > { %v2403_v33 = vadd.f32 %v2872_v51, %v2402_v16  ;;  %v2466_v42 = vmax.f32 %v2408_v47, 0.0 }
 0x56b   : > { %v3467_v7 = vpop.f32.mrf.mxu0 }
 0x56c   : > { %v2465_v34 = vmax.f32 %v2403_v33, 0.0  ;;  %v2418_v14 = vadd.f32 %v3467_v7, %v2872_v51 }
 0x56d   : > { %v2412_v21 = vpop.f32.mrf.mxu0 }
 0x56e   : > { %v2413_v44 = vadd.f32 %v2872_v51, %v2412_v21  ;;  %3518 = vmatprep.mubr.f32.mxu1 %v2465_v34  ;;  %v2468_v32 = vmax.f32 %v2418_v14, 0.0 }
 0x56f   : > { %v3470_v40 = vpop.f32.mrf.mxu0  ;;  %3519 = vmatmul.mubr.f32.gmra.mxu1 %v2466_v42 }
 0x570   : > { %v2467_v29 = vmax.f32 %v2413_v44, 0.0  ;;  %v2428_v59 = vadd.f32 %v3470_v40, %v2872_v51 }
 0x571   : > { %v2422_v11 = vpop.f32.mrf.mxu0 }
 0x572   : > { %v2423_v48 = vadd.f32 %v2872_v51, %v2422_v11  ;;  %3521 = vmatprep.mubr.f32.mxu1 %v2467_v29  ;;  %v2470_v54 = vmax.f32 %v2428_v59, 0.0 }
 0x573   : > { %v3473_v8 = vpop.f32.mrf.mxu0  ;;  %3522 = vmatmul.mubr.f32.gmra.mxu1 %v2468_v32 }
 0x574   : > { %v2469_v15 = vmax.f32 %v2423_v48, 0.0  ;;  %v2438_v41 = vadd.f32 %v3473_v8, %v2872_v51 }
 0x575   : > { %v2432_v0 = vpop.f32.mrf.mxu0 }
 0x576   : > { %v2433_v62 = vadd.f32 %v2872_v51, %v2432_v0  ;;  %3524 = vmatprep.mubr.f32.mxu1 %v2469_v15  ;;  %v2472_v50 = vmax.f32 %v2438_v41, 0.0 }
 0x577   : > { %v3476_v31 = vpop.f32.mrf.mxu0  ;;  %3525 = vmatmul.mubr.f32.gmra.mxu1 %v2470_v54 }
 0x578   : > { %v2471_v27 = vmax.f32 %v2433_v62, 0.0  ;;  %v2448_v43 = vadd.f32 %v3476_v31, %v2872_v51 }
 0x579   : > { %v2442_v26 = vpop.f32.mrf.mxu0 }
 0x57a   : > { %v2443_v39 = vadd.f32 %v2872_v51, %v2442_v26  ;;  %3527 = vmatprep.mubr.f32.mxu1 %v2471_v27  ;;  %v2474_v18 = vmax.f32 %v2448_v43, 0.0 }
 0x57b   : > { %v3479_v13 = vpop.f32.mrf.mxu0  ;;  %3528 = vmatmul.mubr.f32.gmra.mxu1 %v2472_v50 }
 0x57c   : > { %v2473_v55 = vmax.f32 %v2443_v39, 0.0  ;;  %v2458_v10 = vadd.f32 %v3479_v13, %v2872_v51 }
 0x57d   : > { %v2452_v22 = vpop.f32.mrf.mxu0 }
 0x57e   : > { %v2453_v63 = vadd.f32 %v2872_v51, %v2452_v22  ;;  %3530 = vmatprep.mubr.f32.mxu1 %v2473_v55  ;;  %v2476_v17 = vmax.f32 %v2458_v10, 0.0 }
 0x57f   : > { %3531 = vmatmul.mubr.f32.gmra.mxu1 %v2474_v18 }
 0x580   : > { %v2475_v20 = vmax.f32 %v2453_v63, 0.0 }
 0x582   : > { %3533 = vmatprep.mubr.f32.mxu1 %v2475_v20 }
 0x583   : > { %3534 = vmatmul.mubr.f32.gmra.mxu1 %v2476_v17 }
 0x621   : > { %v3514_v1 = vpop.f32.mrf.mxu1 }
 0x622   : > { %v2572_v23 = vadd.f32 %v3514_v1, %v5087_v19 }
 0x623   : > { %v2566_v36 = vpop.f32.mrf.mxu1 }
 0x624   : > { %v2646_v30 = vmax.f32 %v2572_v23, 0.0  ;;  %v2567_v24 = vadd.f32 %v5087_v19, %v2566_v36 }
 0x626   : > { %2662 = vst [vmem:[%s5093_s21 + $0x8] sm:$0xff] %v2646_v30  ;;  %v2645_v25 = vmax.f32 %v2567_v24, 0.0 }
 0x628   : > { %2661 = vst [vmem:[%s5093_s21] sm:$0xff] %v2645_v25 }
 0x629   : > { %v3517_v3 = vpop.f32.mrf.mxu1 }
 0x62a   : > { %v2582_v28 = vadd.f32 %v3517_v3, %v5087_v19 }
 0x62b   : > { %v2576_v58 = vpop.f32.mrf.mxu1 }
 0x62c   : > { %v2648_v12 = vmax.f32 %v2582_v28, 0.0  ;;  %v2577_v9 = vadd.f32 %v5087_v19, %v2576_v58 }
 0x62e   : > { %2664 = vst [vmem:[%s5093_s21 + $0x18] sm:$0xff] %v2648_v12  ;;  %v2647_v52 = vmax.f32 %v2577_v9, 0.0 }
 0x62f   : > { %v3520_v56 = vpop.f32.mrf.mxu1 }
 0x630   : > { %v2592_v6 = vadd.f32 %v3520_v56, %v5087_v19  ;;  %2663 = vst [vmem:[%s5093_s21 + $0x10] sm:$0xff] %v2647_v52 }
 0x631   : > { %v2586_v51 = vpop.f32.mrf.mxu1 }
 0x632   : > { %v2650_v5 = vmax.f32 %v2592_v6, 0.0  ;;  %v2587_v37 = vadd.f32 %v5087_v19, %v2586_v51 }
 0x633   : > { %v3523_v60 = vpop.f32.mrf.mxu1 }
 0x634   : > { %2666 = vst [vmem:[%s5093_s21 + $0x28] sm:$0xff] %v2650_v5  ;;  %v2649_v46 = vmax.f32 %v2587_v37, 0.0  ;;  %v2602_v4 = vadd.f32 %v3523_v60, %v5087_v19 }
 0x635   : > { %v2596_v35 = vpop.f32.mrf.mxu1 }
 0x636   : > { %2665 = vst [vmem:[%s5093_s21 + $0x20] sm:$0xff] %v2649_v46  ;;  %v2652_v2 = vmax.f32 %v2602_v4, 0.0  ;;  %v2597_v61 = vadd.f32 %v5087_v19, %v2596_v35 }
 0x637   : > { %v3526_v38 = vpop.f32.mrf.mxu1 }
 0x638   : > { %2668 = vst [vmem:[%s5093_s21 + $0x38] sm:$0xff] %v2652_v2  ;;  %v2651_v57 = vmax.f32 %v2597_v61, 0.0  ;;  %v2612_v49 = vadd.f32 %v3526_v38, %v5087_v19 }
 0x639   : > { %v2606_v45 = vpop.f32.mrf.mxu1 }
 0x63a   : > { %2667 = vst [vmem:[%s5093_s21 + $0x30] sm:$0xff] %v2651_v57  ;;  %v2654_v53 = vmax.f32 %v2612_v49, 0.0  ;;  %v2607_v47 = vadd.f32 %v5087_v19, %v2606_v45 }
 0x63b   : > { %v3529_v16 = vpop.f32.mrf.mxu1 }
 0x63c   : > { %2670 = vst [vmem:[%s5093_s21 + $0x48] sm:$0xff] %v2654_v53  ;;  %v2653_v33 = vmax.f32 %v2607_v47, 0.0  ;;  %v2622_v7 = vadd.f32 %v3529_v16, %v5087_v19 }
 0x63d   : > { %v2616_v34 = vpop.f32.mrf.mxu1 }
 0x63e   : > { %2669 = vst [vmem:[%s5093_s21 + $0x40] sm:$0xff] %v2653_v33  ;;  %v2656_v42 = vmax.f32 %v2622_v7, 0.0  ;;  %v2617_v14 = vadd.f32 %v5087_v19, %v2616_v34 }
 0x63f   : > { %v3532_v21 = vpop.f32.mrf.mxu1 }
 0x640   : > { %2672 = vst [vmem:[%s5093_s21 + $0x58] sm:$0xff] %v2656_v42  ;;  %v2655_v44 = vmax.f32 %v2617_v14, 0.0  ;;  %v2632_v40 = vadd.f32 %v3532_v21, %v5087_v19 }
 0x641   : > { %v2626_v29 = vpop.f32.mrf.mxu1 }
 0x642   : > { %2671 = vst [vmem:[%s5093_s21 + $0x50] sm:$0xff] %v2655_v44  ;;  %v2658_v32 = vmax.f32 %v2632_v40, 0.0  ;;  %v2627_v59 = vadd.f32 %v5087_v19, %v2626_v29 }
 0x643   : > { %v3535_v11 = vpop.f32.mrf.mxu1 }
 0x644   : > { %2674 = vst [vmem:[%s5093_s21 + $0x68] sm:$0xff] %v2658_v32  ;;  %v2657_v48 = vmax.f32 %v2627_v59, 0.0  ;;  %v2642_v8 = vadd.f32 %v3535_v11, %v5087_v19 }
 0x645   : > { %v2636_v15 = vpop.f32.mrf.mxu1 }
 0x646   : > { %2673 = vst [vmem:[%s5093_s21 + $0x60] sm:$0xff] %v2657_v48  ;;  %v2660_v54 = vmax.f32 %v2642_v8, 0.0  ;;  %v2637_v41 = vadd.f32 %v5087_v19, %v2636_v15 }
 0x648   : > { %2676 = vst [vmem:[%s5093_s21 + $0x78] sm:$0xff] %v2660_v54  ;;  %v2659_v0 = vmax.f32 %v2637_v41, 0.0 }
 0x64a   : > { %2675 = vst [vmem:[%s5093_s21 + $0x70] sm:$0xff] %v2659_v0 }
 0x64b   : > { %3874 = shalt.err (!%p3871_p11)
}
 0x64c   : > { %s3875_s2 = scalar_lea.hbm %s5128_s19, 2048  ;;  %s3879_s26 = scalar_lea.hbm %s5239_s24, 4096 }
 0x64d   : > { %p3876_p0 = scmp.ne.s32.totalorder %s5128_s19, %s3875_s2  ;;  %p3880_p1 = scmp.lt.s32.totalorder %s5128_s19, %s5239_s24 }
 0x64e   : > { %p3881_p3 = scmp.lt.s32.totalorder %s3879_s26, %s3875_s2 }
 0x64f   : > { %p3877_p12 = pnand %p3876_p0, %p4084_p5 }
 0x650   : > { %p3882_p2 = por %p3881_p3, %p3880_p1 }
 0x651   : > { %p3878_p10 = pneg %p3877_p12 }
 0x653   : > { %p3883_p4 = pnand %p3882_p2, %p3878_p10 }
 0x655   : > { %3886 = shalt.err (!%p3883_p4)
}
 0x656   : > { %s3949_s18 = smov 128   ;;  %s3950_s22 = smov 8  }
 0x657   : > { %3560 = dma.vmem_to_hbm [thread:$0]  (%p4084_p5), %s5130_s29, 2048, %s5128_s19, %s5136_s0, %s3949_s18, %s3949_s18, %s3950_s22  }
 0x658 PF: > { %s5240_s30 = sld [smem:[#allocation21_spill]] }
 0x659   : > { %s5241_s25 = sld [smem:[#allocation19_spill]] }
 0x65e   : > { %p3597_p9 = scmp.ge.s32.totalorder %s5240_s30, 2 }
 0x65f   : > { %s2706_s21 = sand.u32 1, %s5241_s25  }
 0x660   : > { %p3582_p13 = pnand %p3597_p9, %p4088_p6  ;;  %s2707_s2 = scalar_lea.sflag [#allocation4], %s2706_s21 }
 0x662   : > { %p3583_p7 = pneg %p3582_p13 }
 0x664   : > { %3920 = dma.done.wait (%p3583_p7), %s2707_s2, 2048  }
 0x665   : > { %3922 = vsyncadd (%p3583_p7), %s2707_s2, 4294965248  ;;  %s5243_s30 = sld [smem:[#allocation22_spill]]  ;;  %s5246_s27 = smov %s3929_s28 }
 0x666   : > { %s5244_s26 = sld [smem:[#allocation20_spill]] }
 0x667   : > { %s5245_s29 = sld [smem:[#allocation23_spill]] }
 0x66b   : > { %p32_p8 = scmp.ge.s32.totalorder %s5243_s30, 4  }
 0x66c   : > { %s5247_s28 = smov %s5244_s26 }
 0x66d   :  { %34 = sbr.rel (!%p32_p8) target bundleno = 12 (0xc), region = 152 }
 0x672   :  { %2712 = vsyncpa [#allocation3], 1 }
 0x673   :  { %2714 = vsyncpa [#allocation3 + $0x1], 1 }
 0x674   :  { %2715 = vsyncpa [#allocation6], 1 }
 0x675   :  { %2716 = vsyncpa [#allocation9], 1 }
 0x676   :  { %2717 = vsyncpa [#allocation12], 1 }
 0x677   :  { %2718 = vsyncpa [#allocation4], 1 }
 0x678   :  { %2720 = vsyncpa [#allocation4 + $0x1], 1 }

// kernel: tpu_custom_call.1
= control target key start
LH: loop header
LB: loop body
LE: loop exit
PB: predicated region body
PF: predicated region fallthrough
CT: control target
= control target key end

     0   :  { %s5176_s0 = inlined_call_operand.vmem [shape: f32[256,64], index: 0, kind: input, shape index: {}]   ;;  %s5177_s1 = inlined_call_operand.hbm [shape: f32[1,128], index: 1, kind: input, shape index: {}]   ;;  %s5178_s2 = inlined_call_operand.hbm [shape: f32[1,128], index: 2, kind: input, shape index: {}]   ;;  %s5179_s3 = inlined_call_operand.hbm [shape: f32[64,64], index: 3, kind: input, shape index: {}]   ;;  %s5180_s4 = inlined_call_operand.vmem [shape: f32[1,64], index: 4, kind: input, shape index: {}]   ;;  %s5181_s5 = inlined_call_operand.hbm [shape: f32[64,128], index: 5, kind: input, shape index: {}]   ;;  %s5182_s6 = inlined_call_operand.vmem [shape: f32[1,128], index: 6, kind: input, shape index: {}]   ;;  %s5183_s7 = inlined_call_operand.vmem [shape: f32[128,128], index: 7, kind: input, shape index: {}]   ;;  %s5184_s8 = inlined_call_operand.vmem [shape: f32[1,128], index: 8, kind: input, shape index: {}]   ;;  %s5185_s9 = inlined_call_operand.vmem [shape: f32[1,128], index: 9, kind: input, shape index: {}]   ;;  %s5186_s10 = inlined_call_operand.vmem [shape: f32[1,128], index: 10, kind: input, shape index: {}]   ;;  %s5187_s11 = inlined_call_operand.vmem [shape: f32[128,128], index: 11, kind: input, shape index: {}]   ;;  %s5188_s12 = inlined_call_operand.vmem [shape: f32[1,128], index: 12, kind: input, shape index: {}]   ;;  %s5189_s13 = inlined_call_operand.vmem [shape: f32[128,128], index: 13, kind: input, shape index: {}]   ;;  %s5190_s14 = inlined_call_operand.hbm [shape: f32[128,128], index: 14, kind: input, shape index: {}]   ;;  %s5191_s15 = inlined_call_operand.vmem [shape: f32[1,128], index: 15, kind: input, shape index: {}]   ;;  %s5192_s16 = inlined_call_operand.hbm [shape: f32[128,128], index: 16, kind: input, shape index: {}]   ;;  %s5193_s17 = inlined_call_operand.vmem [shape: f32[1,128], index: 17, kind: input, shape index: {}]   ;;  %s5194_s18 = inlined_call_operand.hbm [shape: f32[256,128], index: 18, kind: output, shape index: {}]  }
   0x1   :  { %5209 = sst [smem:[#allocation26_spill]] %s5176_s0 }
   0x2   :  { %5210 = sst [smem:[#allocation27_spill]] %s5177_s1 }
   0x3   :  { %5211 = sst [smem:[#allocation28_spill]] %s5178_s2 }
   0x4   :  { %5212 = sst [smem:[#allocation29_spill]] %s5194_s18 }
   0x5   :  { %23 = vsyncpa [#allocation3], 0 }
   0x6   :  { %24 = vsyncpa [#allocation6], 0 }
   0x7   :  { %25 = vsyncpa [#allocation9], 0 }
   0x8   :  { %26 = vsyncpa [#allocation12], 0 }
   0x9   :  { %27 = vsyncpa [#allocation4], 0 }
   0xa   :  { %29 = vsyncpa [#allocation4 + $0x1], 0  ;;  %s4046_s27 = smov 0   ;;  %s4048_s28 = smov 0  }
   0xb   :  { %s4050_s29 = smov 0   ;;  %s4052_s30 = smov 0  }
   0xc LB: > { %5213 = sst [smem:[#allocation19_spill]] %s3925_s27  ;;  %s4067_s0 = sadd.s32 4294967295, %s3937_s30   ;;  %s3937_s30 = sphi %s4052_s30, %s5243_s30   ;;  %s3933_s29 = sphi %s4050_s29, %s5245_s29   ;;  %s3929_s28 = sphi %s4048_s28, %s5247_s28   ;;  %s3925_s27 = sphi %s4046_s27, %s5246_s27  }
   0xd   : > { %5214 = sst [smem:[#allocation20_spill]] %s3933_s29  ;;  %s2813_s19 = sadd.s32 4294967294, %s3937_s30  }
   0xe   : > { %5215 = sst [smem:[#allocation21_spill]] %s3937_s30  ;;  %s4071_s1 = sadd.s32 1, %s3937_s30  }
   0xf   : > { %5216 = sst [smem:[#allocation22_spill]] %s4071_s1  ;;  %s425_s20 = sadd.s32 1, %s3933_s29 }
  0x10   : > { %s422_s21 = ssub.s32 %s3937_s30, %s4071_s1  ;;  %p435_p0 = scmp.ne.s32.totalorder %s3933_s29, %s3929_s28 }
  0x11   : > { %p423_p1 = scmp.eq.s32.totalorder %s422_s21, 0  ;;  %p436_p2 = scmp.eq.s32.totalorder %s4067_s0, 1 }
  0x12   : > { %p441_p3 = scmp.ne.s32.totalorder %s3929_s28, %s3925_s27  ;;  %p442_p4 = scmp.eq.s32.totalorder %s2813_s19, 1 }
  0x13   : > { %s4082_s22 = scalar_select %p423_p1, %s3933_s29, %s425_s20  }
  0x14   : > { %p4084_p5 = por %p436_p2, %p435_p0  ;;  %p4088_p6 = por %p442_p4, %p441_p3 }
  0x15   : > { %5217 = sst [smem:[#allocation23_spill]] %s4082_s22  ;;  %p2814_p7 = scmp.ge.s32.totalorder %s3937_s30, 1 }
  0x16   : > { %s5218_s2 = scalar_select %p4084_p5, 1, 0 }
  0x17   : > { %s5220_s23 = scalar_select %p4088_p6, 1, 0 }
  0x18   : > { %5219 = sst [smem:[#allocation24_spill]] %s5218_s2  ;;  %p449_p8 = scmp.lt.s32.totalorder %s3937_s30, 3 }
  0x19   : > { %5221 = sst [smem:[#allocation25_spill]] %s5220_s23  ;;  %p5201_p9 = scmp.eq.s32.totalorder %s4067_s0, 0 }
  0x1a   : > { %p4095_p10 = pnand %p2814_p7, %p449_p8  ;;  %s3939_s25 = smov [#allocation5]  }
  0x1b   : > { %s473_s26 = sshll.u32 %s3939_s25, 4  ;;  %s3940_s20 = smov [#allocation8]   ;;  %s474_s26 = int_to_ptr.vmem [resolvable:$true] %s473_s26 }
  0x1c   : > { %p3562_p11 = pneg %p4095_p10  ;;  %s499_s21 = sshll.u32 %s3940_s20, 4  ;;  %s4107_s21 = int_to_ptr.vmem [resolvable:$true] %s499_s21 }
  0x1d   : > { %s3941_s22 = smov [#allocation2]   ;;  %s3716_s25 = scalar_lea.vmem %s474_s26, 16 }
  0x1e   : > { %p4103_p12 = pnand %p5201_p9, %p3562_p11  ;;  %s462_s29 = sshll.u32 %s3941_s22, 4  ;;  %s463_s29 = int_to_ptr.vmem [resolvable:$true] %s462_s29 }
  0x1f   : > { %p3717_p0 = scmp.ne.s32.totalorder %s474_s26, %s3716_s25  ;;  %s3723_s23 = scalar_lea.vmem %s474_s26, 32 }
  0x20   : > { %p4111_p13 = pneg %p4103_p12  ;;  %p3724_p3 = scmp.lt.s32.totalorder %s474_s26, %s474_s26 }
  0x21   : > { %p3725_p4 = scmp.lt.s32.totalorder %s3723_s23, %s3716_s25 }
  0x22   : > { %p3719_p1 = pnand %p3717_p0, %p4111_p13 }
  0x23   : > { %p3726_p7 = por %p3725_p4, %p3724_p3 }
  0x24   : > { %p3720_p2 = pneg %p3719_p1 }
  0x26   : > { %p3727_p8 = pnand %p3726_p7, %p3720_p2 }
  0x28   : > { %3730 = shalt.err (!%p3727_p8)
}
  0x29   : > { %s5225_s27 = sld [smem:[#allocation28_spill]]  ;;  %s3742_s30 = scalar_lea.vmem %s4107_s21, 1024 }
  0x2a   : > { %p3743_p11 = scmp.ne.s32.totalorder %s4107_s21, %s3742_s30  ;;  %p3750_p9 = scmp.lt.s32.totalorder %s4107_s21, %s4107_s21 }
  0x2b   : > { %p3751_p3 = scmp.lt.s32.totalorder %s3742_s30, %s3742_s30 }
  0x2c   : > { %p3745_p0 = pnand %p3743_p11, %p4111_p13 }
  0x2d   : > { %p3752_p2 = por %p3751_p3, %p3750_p9 }
  0x2e   : > { %p3746_p1 = pneg %p3745_p0 }
  0x2f   : > { %3568 = dma.hbm_to_vmem [thread:$0]  (!%p4103_p12), %s5225_s27, 16, %s474_s26, [#allocation6]  }
  0x30   : > { %p3753_p4 = pnand %p3752_p2, %p3746_p1 }
  0x32   : > { %3756 = shalt.err (!%p3753_p4)
}
  0x33   : > { %s5205_s23 = smov 128   ;;  %s5207_s25 = smov 8  }
  0x34   : > { %3574 = dma.hbm_to_vmem [thread:$0]  (!%p4103_p12), %s5181_s5, 1024, %s4107_s21, [#allocation9], %s5205_s23, %s5205_s23, %s5207_s25  }
  0x35   : > { %s3768_s22 = scalar_lea.vmem %s463_s29, 16  ;;  %s3775_s30 = scalar_lea.vmem %s463_s29, 32 }
  0x36   : > { %p3769_p7 = scmp.ne.s32.totalorder %s463_s29, %s3768_s22  ;;  %p3776_p11 = scmp.lt.s32.totalorder %s463_s29, %s463_s29 }
  0x37   : > { %p3777_p0 = scmp.lt.s32.totalorder %s3775_s30, %s3768_s22 }
  0x38   : > { %p3771_p9 = pnand %p3769_p7, %p4111_p13 }
  0x39   : > { %p3778_p1 = por %p3777_p0, %p3776_p11 }
  0x3a   : > { %p3772_p8 = pneg %p3771_p9 }
  0x3c   : > { %p3779_p3 = pnand %p3778_p1, %p3772_p8 }
  0x3e   : > { %3782 = shalt.err (!%p3779_p3)
}
  0x3f   : > { %s5226_s2 = sld [smem:[#allocation27_spill]]  ;;  %s3944_s21 = smov [#allocation7]  }
  0x40   : > { %s483_s27 = sshll.u32 %s3944_s21, 4  ;;  %s3945_s26 = smov [#allocation10]   ;;  %s484_s27 = int_to_ptr.vmem [resolvable:$true] %s483_s27 }
  0x41   : > { %s536_s23 = sshll.u32 %s3945_s26, 4  ;;  %s3794_s25 = scalar_lea.vmem %s484_s27, 1024  ;;  %s537_s23 = int_to_ptr.vmem [resolvable:$true] %s536_s23 }
  0x42   : > { %p3795_p2 = scmp.ne.s32.totalorder %s484_s27, %s3794_s25  ;;  %p3802_p9 = scmp.lt.s32.totalorder %s484_s27, %s484_s27 }
  0x43   : > { %p3803_p8 = scmp.lt.s32.totalorder %s3794_s25, %s3794_s25 }
  0x44   : > { %p3797_p4 = pnand %p3795_p2, %p4111_p13 }
  0x45   : > { %3565 = dma.hbm_to_vmem [thread:$0]  (!%p4103_p12), %s5226_s2, 16, %s463_s29, [#allocation3]  }
  0x46   : > { %p3798_p7 = pneg %p3797_p4  ;;  %p3804_p11 = por %p3803_p8, %p3802_p9 }
  0x48   : > { %p3805_p0 = pnand %p3804_p11, %p3798_p7 }
  0x4a   : > { %3808 = shalt.err (!%p3805_p0)
}
  0x4b   : > { %s5227_s18 = smov 8   ;;  %s5228_s22 = smov 128  }
  0x4c   : > { %3571 = dma.hbm_to_vmem [thread:$0]  (!%p4103_p12), %s5179_s3, 1024, %s484_s27, [#allocation6], %s5228_s22, %s5228_s22, %s5227_s18  }
  0x4d   : > { %s3820_s30 = scalar_lea.vmem %s537_s23, 2048  ;;  %p3828_p4 = scmp.lt.s32.totalorder %s537_s23, %s537_s23 }
  0x4e   : > { %p3821_p1 = scmp.ne.s32.totalorder %s537_s23, %s3820_s30  ;;  %p3829_p9 = scmp.lt.s32.totalorder %s3820_s30, %s3820_s30 }
  0x50   : > { %p3823_p3 = pnand %p3821_p1, %p4111_p13  ;;  %p3830_p7 = por %p3829_p9, %p3828_p4 }
  0x52   : > { %p3824_p2 = pneg %p3823_p3 }
  0x54   : > { %p3831_p8 = pnand %p3830_p7, %p3824_p2 }
  0x56   : > { %3834 = shalt.err (!%p3831_p8)
}
  0x57   : > { %3577 = dma.hbm_to_vmem [thread:$0]  (!%p4103_p12), %s5190_s14, 2048, %s537_s23, [#allocation9], %s5228_s22, %s5228_s22, %s5227_s18  }
  0x58   : > { %s3946_s21 = smov [#allocation11]  }
  0x59   : > { %s552_s27 = sshll.u32 %s3946_s21, 4  ;;  %s553_s27 = int_to_ptr.vmem [resolvable:$true] %s552_s27 }
  0x5a   : > { %s3846_s26 = scalar_lea.vmem %s553_s27, 2048  ;;  %p3854_p3 = scmp.lt.s32.totalorder %s553_s27, %s553_s27 }
  0x5b   : > { %p3847_p11 = scmp.ne.s32.totalorder %s553_s27, %s3846_s26  ;;  %p3855_p2 = scmp.lt.s32.totalorder %s3846_s26, %s3846_s26 }
  0x5d   : > { %p3849_p0 = pnand %p3847_p11, %p4111_p13  ;;  %p3856_p4 = por %p3855_p2, %p3854_p3 }
  0x5f   : > { %p3850_p1 = pneg %p3849_p0 }
  0x61   : > { %p3857_p9 = pnand %p3856_p4, %p3850_p1 }
  0x63   : > { %3860 = shalt.err (!%p3857_p9)
}
  0x64   : > { %3580 = dma.hbm_to_vmem [thread:$0]  (!%p4103_p12), %s5192_s16, 2048, %s553_s27, [#allocation12], %s5228_s22, %s5228_s22, %s5227_s18  }
  0x65   : > { %580 = sbr.rel (%p4095_p10) target bundleno = 1624 (0x658), region = 92  ;;  %p5229_p13 = scmp.eq.s32.totalorder (!%p4095_p10), %s4067_s0, 0 }
  0x6a   : > { %3904 = dma.done.wait (%p5229_p13), [#allocation3], 16   ;;  %p5230_p7 = pmov %p5229_p13 }
  0x6c   : > { %3906 = vsyncadd (%p5230_p7), [#allocation3], 4294967280  ;;  %p5231_p8 = pmov %p5230_p7 }
  0x6d   : > { %p5232_p11 = pmov %p5230_p7 }
  0x6e   : > { %3908 = dma.done.wait (%p5231_p8), [#allocation6], 1040  }
  0x6f   : > { %3910 = vsyncadd (%p5232_p11), [#allocation6], 4294966256  ;;  %p5233_p0 = pmov %p5230_p7 }
  0x71   : > { %3912 = dma.done.wait (%p5233_p0), [#allocation9], 3072   ;;  %p5234_p12 = pmov %p5233_p0 }
  0x72   : > { %p5235_p10 = pmov %p5233_p0 }
  0x73   : > { %3914 = vsyncadd (%p5234_p12), [#allocation9], 4294964224 }
  0x74   : > { %3916 = dma.done.wait (%p5235_p10), [#allocation12], 2048   ;;  %p5236_p1 = pmov %p5233_p0 }
  0x75   : > { %s2830_s1 = sshll.u32 %s4067_s0, 4  ;;  %vm677_vm0 = vcmask 523264   ;;  %s5237_s22 = sld [smem:[#allocation26_spill]]  ;;  %v1020_v6 = vld [vmem:[#allocation7 + $0x38] sm:$0xff]  ;;  %v1019_v7 = vld [vmem:[#allocation7 + $0x30] sm:$0xff]  ;;  %v1018_v12 = vld [vmem:[#allocation7 + $0x28] sm:$0xff] }
  0x76   : > { %3918 = vsyncadd (%p5236_p1), [#allocation12], 4294965248  ;;  %p655_p3 = scmp.lt.s32.totalorder %s2830_s1, 31  ;;  %3120 = vmatprep.subr.mxu0 %v1020_v6  ;;  %v1017_v16 = vld [vmem:[#allocation7 + $0x20] sm:$0xff]  ;;  %v1016_v18 = vld [vmem:[#allocation7 + $0x18] sm:$0xff]  ;;  %s3947_s29 = smov 64  }
  0x77   : > { %3121 = vmatpush3.msra.mxu0 %v1020_v6  ;;  %v1015_v23 = vld [vmem:[#allocation7 + $0x10] sm:$0xff]  ;;  %v1014_v27 = vld [vmem:[#allocation7 + $0x8] sm:$0xff]  ;;  %v1013_v29 = vld [vmem:[#allocation7] sm:$0xff]  ;;  %s2879_s26 = sshll.u32 %s4067_s0, 11 }
  0x78   : > { %s5249_s1 = smov (!%p655_p3, %s2830_s1), 31  ;;  %3122 = vmatprep.subr.mxu0 %v1019_v7  ;;  %v1244_v40 = vld [vmem:[#allocation8 + $0x38] sm:$0xff]  ;;  %v1243_v41 = vld [vmem:[#allocation8 + $0x30] sm:$0xff]  ;;  %v1242_v42 = vld [vmem:[#allocation8 + $0x28] sm:$0xff] }
  0x79   : > { %s2831_s24 = sshll.u32 %s5249_s1, 3  ;;  %3123 = vmatpush3.msra.mxu0 %v1019_v7  ;;  %3160 = vmatprep.subr.mxu1 %v1244_v40  ;;  %v1241_v43 = vld [vmem:[#allocation8 + $0x20] sm:$0xff]  ;;  %v1240_v44 = vld [vmem:[#allocation8 + $0x18] sm:$0xff]  ;;  %v1239_v45 = vld [vmem:[#allocation8 + $0x10] sm:$0xff] }
  0x7a   : > { %3124 = vmatprep.subr.mxu0 %v1018_v12  ;;  %3161 = vmatpush3.msra.mxu1 %v1244_v40  ;;  %v1238_v46 = vld [vmem:[#allocation8 + $0x8] sm:$0xff]  ;;  %v1237_v47 = vld [vmem:[#allocation8] sm:$0xff] }
  0x7b   : > { %s4196_s2 = scalar_lea.vmem %s5237_s22, %s2831_s24  ;;  %3125 = vmatpush3.msra.mxu0 %v1018_v12  ;;  %3162 = vmatprep.subr.mxu1 %v1243_v41  ;;  %s5239_s24 = sld [smem:[#allocation29_spill]] }
  0x7c   : > { %v4199_v0 = vld [vmem:[%s4196_s2] sm:$0xff]  ;;  %v4202_v1 = vld [vmem:[%s4196_s2 + $0x10] sm:$0xff]  ;;  %v4205_v2 = vld [vmem:[%s4196_s2 + $0x8] sm:$0xff]  ;;  %3126 = vmatprep.subr.mxu0 %v1017_v16  ;;  %3163 = vmatpush3.msra.mxu1 %v1243_v41  ;;  %s3948_s22 = smov [#allocation13]  }
  0x7d   : > { %v678_v3 = vsel %vm677_vm0, %v4199_v0, 0.0  ;;  %v684_v4 = vsel %vm677_vm0, %v4202_v1, 0.0  ;;  %v4212_v5 = vld [vmem:[%s4196_s2 + $0x18] sm:$0xff]  ;;  %3136 = vmatprep.mubr.msk.f32.mxu0 %vm677_vm0, %v4199_v0  ;;  %v681_v8 = vsel %vm677_vm0, %v4205_v2, 0.0  ;;  %v4221_v10 = vld [vmem:[%s4196_s2 + $0x20] sm:$0xff]  ;;  %v4224_v11 = vld [vmem:[%s4196_s2 + $0x28] sm:$0xff]  ;;  %3127 = vmatpush3.msra.mxu0 %v1017_v16 }
  0x7e   : > { %679 = vadd.xlane.f32.xlu0 %v678_v3  ;;  %685 = vadd.xlane.f32.xlu1 %v684_v4  ;;  %v687_v9 = vsel %vm677_vm0, %v4212_v5, 0.0  ;;  %v690_v13 = vsel %vm677_vm0, %v4221_v10, 0.0  ;;  %v693_v14 = vsel %vm677_vm0, %v4224_v11, 0.0  ;;  %v4231_v15 = vld [vmem:[%s4196_s2 + $0x30] sm:$0xff]  ;;  %v4234_v17 = vld [vmem:[%s4196_s2 + $0x38] sm:$0xff]  ;;  %v4241_v21 = vld [vmem:[%s4196_s2 + $0x40] sm:$0xff] }
  0x7f   : > { %v696_v19 = vsel %vm677_vm0, %v4231_v15, 0.0  ;;  %v699_v20 = vsel %vm677_vm0, %v4234_v17, 0.0  ;;  %v4244_v22 = vld [vmem:[%s4196_s2 + $0x48] sm:$0xff]  ;;  %3128 = vmatprep.subr.mxu0 %v1016_v18  ;;  %v702_v24 = vsel %vm677_vm0, %v4241_v21, 0.0  ;;  %v4251_v26 = vld [vmem:[%s4196_s2 + $0x50] sm:$0xff]  ;;  %v4254_v28 = vld [vmem:[%s4196_s2 + $0x58] sm:$0xff]  ;;  %3164 = vmatprep.subr.mxu1 %v1242_v42 }
  0x80   : > { %3129 = vmatpush3.msra.mxu0 %v1016_v18  ;;  %v705_v25 = vsel %vm677_vm0, %v4244_v22, 0.0  ;;  %v708_v30 = vsel %vm677_vm0, %v4251_v26, 0.0  ;;  %v711_v31 = vsel %vm677_vm0, %v4254_v28, 0.0  ;;  %v4261_v32 = vld [vmem:[%s4196_s2 + $0x60] sm:$0xff]  ;;  %v4264_v33 = vld [vmem:[%s4196_s2 + $0x68] sm:$0xff]  ;;  %v4273_v36 = vld [vmem:[%s4196_s2 + $0x70] sm:$0xff]  ;;  %3165 = vmatpush3.msra.mxu1 %v1242_v42 }
  0x81   : > { %3130 = vmatprep.subr.mxu0 %v1015_v23  ;;  %v714_v34 = vsel %vm677_vm0, %v4261_v32, 0.0  ;;  %v717_v35 = vsel %vm677_vm0, %v4264_v33, 0.0  ;;  %v4276_v37 = vld [vmem:[%s4196_s2 + $0x78] sm:$0xff]  ;;  %v720_v38 = vsel %vm677_vm0, %v4273_v36, 0.0  ;;  %3166 = vmatprep.subr.mxu1 %v1241_v43  ;;  %s651_s2 = sand.u32 1, %s3929_s28   ;;  %s5128_s19 = scalar_lea.hbm %s5239_s24, %s2879_s26 }
  0x82   : > { %682 = vadd.xlane.f32.xlu0 %v681_v8  ;;  %688 = vadd.xlane.f32.xlu1 %v687_v9  ;;  %v723_v39 = vsel %vm677_vm0, %v4276_v37, 0.0  ;;  %s2829_s20 = sshll.u32 %s651_s2, 7  ;;  %s5136_s0 = scalar_lea.sflag [#allocation4], %s651_s2 }
  0x83   : > { %3131 = vmatpush3.msra.mxu0 %v1015_v23  ;;  %3167 = vmatpush3.msra.mxu1 %v1241_v43  ;;  %s5093_s21 = scalar_lea.vmem [#allocation13], %s2829_s20  ;;  %s3865_s30 = sshll.u32 %s3948_s22, 4  ;;  %s3866_s30 = int_to_ptr.vmem [resolvable:$false] %s3865_s30 }
  0x84   : > { %3132 = vmatprep.subr.mxu0 %v1014_v27  ;;  %3168 = vmatprep.subr.mxu1 %v1240_v44  ;;  %s3867_s25 = scalar_lea.vmem %s3866_s30, 4096 }
  0x85   : > { %3133 = vmatpush3.msra.mxu0 %v1014_v27  ;;  %3169 = vmatpush3.msra.mxu1 %v1240_v44 }
  0x86   : > { %691 = vadd.xlane.f32.xlu0 %v690_v13  ;;  %694 = vadd.xlane.f32.xlu1 %v693_v14 }
  0x87   : > { %3134 = vmatprep.subr.mxu0 %v1013_v29  ;;  %3170 = vmatprep.subr.mxu1 %v1239_v45 }
  0x88   : > { %3135 = vmatpush3.msra.mxu0 %v1013_v29  ;;  %3171 = vmatpush3.msra.mxu1 %v1239_v45 }
  0x89   : > { %3137 = vmatmul.mubr.msk.f32.vlgmr.msra.gmra.mxu0 %vm677_vm0, %v4205_v2  ;;  %3172 = vmatprep.subr.mxu1 %v1238_v46 }
  0x8a   : > { %697 = vadd.xlane.f32.xlu0 %v696_v19  ;;  %700 = vadd.xlane.f32.xlu1 %v699_v20 }
  0x8b   : > { %3139 = vmatprep.mubr.msk.f32.mxu0 %vm677_vm0, %v4202_v1  ;;  %3173 = vmatpush3.msra.mxu1 %v1238_v46 }
  0x8c   : > { %3174 = vmatprep.subr.mxu1 %v1237_v47 }
  0x8d   : > { %3140 = vmatmul.mubr.msk.f32.gmra.mxu0 %vm677_vm0, %v4212_v5  ;;  %3175 = vmatpush3.msra.mxu1 %v1237_v47 }
  0x8e   : > { %703 = vadd.xlane.f32.xlu0 %v702_v24  ;;  %706 = vadd.xlane.f32.xlu1 %v705_v25 }
  0x8f   : > { %3142 = vmatprep.mubr.msk.f32.mxu0 %vm677_vm0, %v4221_v10 }
  0x91   : > { %3143 = vmatmul.mubr.msk.f32.gmra.mxu0 %vm677_vm0, %v4224_v11 }
  0x92   : > { %709 = vadd.xlane.f32.xlu0 %v708_v30  ;;  %712 = vadd.xlane.f32.xlu1 %v711_v31 }
  0x93   : > { %3145 = vmatprep.mubr.msk.f32.mxu0 %vm677_vm0, %v4231_v15 }
  0x95   : > { %3146 = vmatmul.mubr.msk.f32.gmra.mxu0 %vm677_vm0, %v4234_v17 }
  0x96   : > { %715 = vadd.xlane.f32.xlu0 %v714_v34  ;;  %718 = vadd.xlane.f32.xlu1 %v717_v35 }
  0x97   : > { %3148 = vmatprep.mubr.msk.f32.mxu0 %vm677_vm0, %v4241_v21 }
  0x99   : > { %3149 = vmatmul.mubr.msk.f32.gmra.mxu0 %vm677_vm0, %v4244_v22 }
  0x9a   : > { %721 = vadd.xlane.f32.xlu0 %v720_v38  ;;  %724 = vadd.xlane.f32.xlu1 %v723_v39 }
  0x9b   : > { %3151 = vmatprep.mubr.msk.f32.mxu0 %vm677_vm0, %v4251_v26 }
  0x9d   : > { %3152 = vmatmul.mubr.msk.f32.gmra.mxu0 %vm677_vm0, %v4254_v28 }
  0x9e   : > { %3154 = vmatprep.mubr.msk.f32.mxu0 %vm677_vm0, %v4261_v32 }
  0xa1   : > { %3155 = vmatmul.mubr.msk.f32.gmra.mxu0 %vm677_vm0, %v4264_v33 }
  0xa2   : > { %3157 = vmatprep.mubr.msk.f32.mxu0 %vm677_vm0, %v4273_v36 }
  0xa5   : > { %3158 = vmatmul.mubr.msk.f32.gmra.mxu0 %vm677_vm0, %v4276_v37 }
 0x107   : > { %v680_v48 = vpop.xlane.xlu0 %679  ;;  %v686_v49 = vpop.xlane.xlu1 %685 }
 0x108   : > { %v727_v50 = vmul.f32 0.015625, %v680_v48  ;;  %v729_v51 = vmul.f32 0.015625, %v686_v49 }
 0x10a   : > { %v4311_v52 = vsub.f32 %v4199_v0, %v727_v50  ;;  %v4314_v53 = vsub.f32 %v4202_v1, %v729_v51 }
 0x10b   : > { %v683_v54 = vpop.xlane.xlu0 %682  ;;  %v689_v55 = vpop.xlane.xlu1 %688 }
 0x10c   : > { %v728_v56 = vmul.f32 0.015625, %v683_v54  ;;  %v730_v57 = vmul.f32 0.015625, %v689_v55  ;;  %v759_v58 = vmul.f32 %v4311_v52, %v4311_v52  ;;  %v761_v59 = vmul.f32 %v4314_v53, %v4314_v53 }
 0x10e   : > { %v4321_v60 = vsub.f32 %v4205_v2, %v728_v56  ;;  %v4324_v61 = vsub.f32 %v4212_v5, %v730_v57  ;;  %v775_v62 = vsel %vm677_vm0, %v759_v58, 0.0  ;;  %v781_v1 = vsel %vm677_vm0, %v761_v59, 0.0 }
 0x10f   : > { %776 = vadd.xlane.f32.xlu0 %v775_v62  ;;  %v692_v63 = vpop.xlane.xlu0 %691  ;;  %v695_v0 = vpop.xlane.xlu1 %694 }
 0x110   : > { %v731_v3 = vmul.f32 0.015625, %v692_v63  ;;  %v732_v4 = vmul.f32 0.015625, %v695_v0  ;;  %v760_v6 = vmul.f32 %v4321_v60, %v4321_v60  ;;  %v762_v7 = vmul.f32 %v4324_v61, %v4324_v61 }
 0x112   : > { %v4333_v2 = vsub.f32 %v4221_v10, %v731_v3  ;;  %v4336_v5 = vsub.f32 %v4224_v11, %v732_v4  ;;  %v778_v8 = vsel %vm677_vm0, %v760_v6, 0.0  ;;  %v784_v13 = vsel %vm677_vm0, %v762_v7, 0.0  ;;  %v1475_v7 = vld [vmem:[%s5183_s7 + $0x70] sm:$0xff] }
 0x113   : > { %782 = vadd.xlane.f32.xlu0 %v781_v1  ;;  %779 = vadd.xlane.f32.xlu1 %v778_v8  ;;  %v698_v9 = vpop.xlane.xlu0 %697  ;;  %v701_v12 = vpop.xlane.xlu1 %700  ;;  %v4415_v8 = vld [vmem:[%s5180_s4] ss:$0 sm:$0xff] }
 0x114   : > { %v733_v14 = vmul.f32 0.015625, %v698_v9  ;;  %v734_v16 = vmul.f32 0.015625, %v701_v12  ;;  %v763_v18 = vmul.f32 %v4333_v2, %v4333_v2  ;;  %v764_v10 = vmul.f32 %v4336_v5, %v4336_v5  ;;  %v1474_v9 = vld [vmem:[%s5183_s7 + $0x68] sm:$0xff] }
 0x116   : > { %v4345_v19 = vsub.f32 %v4231_v15, %v733_v14  ;;  %v4348_v11 = vsub.f32 %v4234_v17, %v734_v16  ;;  %v787_v20 = vsel %vm677_vm0, %v763_v18, 0.0  ;;  %v790_v25 = vsel %vm677_vm0, %v764_v10, 0.0  ;;  %v1473_v14 = vld [vmem:[%s5183_s7 + $0x60] sm:$0xff]  ;;  %v1472_v10 = vld [vmem:[%s5183_s7 + $0x58] sm:$0xff] }
 0x117   : > { %785 = vadd.xlane.f32.xlu1 %v784_v13  ;;  %788 = vadd.xlane.f32.xlu0 %v787_v20  ;;  %v704_v23 = vpop.xlane.xlu0 %703  ;;  %v707_v24 = vpop.xlane.xlu1 %706 }
 0x118   : > { %v735_v27 = vmul.f32 0.015625, %v704_v23  ;;  %v736_v29 = vmul.f32 0.015625, %v707_v24  ;;  %v765_v30 = vmul.f32 %v4345_v19, %v4345_v19  ;;  %v766_v15 = vmul.f32 %v4348_v11, %v4348_v11 }
 0x11a   : > { %v4357_v31 = vsub.f32 %v4241_v21, %v735_v27  ;;  %v4360_v17 = vsub.f32 %v4244_v22, %v736_v29  ;;  %v793_v34 = vsel %vm677_vm0, %v765_v30, 0.0  ;;  %v796_v39 = vsel %vm677_vm0, %v766_v15, 0.0  ;;  %v1471_v27 = vld [vmem:[%s5183_s7 + $0x50] sm:$0xff]  ;;  %v1470_v15 = vld [vmem:[%s5183_s7 + $0x48] sm:$0xff] }
 0x11b   : > { %791 = vadd.xlane.f32.xlu1 %v790_v25  ;;  %794 = vadd.xlane.f32.xlu0 %v793_v34  ;;  %v710_v35 = vpop.xlane.xlu0 %709  ;;  %v713_v38 = vpop.xlane.xlu1 %712 }
 0x11c   : > { %v737_v40 = vmul.f32 0.015625, %v710_v35  ;;  %v738_v41 = vmul.f32 0.015625, %v713_v38  ;;  %v767_v42 = vmul.f32 %v4357_v31, %v4357_v31  ;;  %v768_v21 = vmul.f32 %v4360_v17, %v4360_v17 }
 0x11e   : > { %v4369_v43 = vsub.f32 %v4251_v26, %v737_v40  ;;  %v4372_v22 = vsub.f32 %v4254_v28, %v738_v41  ;;  %v799_v44 = vsel %vm677_vm0, %v767_v42, 0.0  ;;  %v802_v47 = vsel %vm677_vm0, %v768_v21, 0.0  ;;  %v1469_v40 = vld [vmem:[%s5183_s7 + $0x40] sm:$0xff]  ;;  %v1468_v21 = vld [vmem:[%s5183_s7 + $0x38] sm:$0xff] }
 0x11f   : > { %797 = vadd.xlane.f32.xlu1 %v796_v39  ;;  %800 = vadd.xlane.f32.xlu0 %v799_v44  ;;  %v716_v45 = vpop.xlane.xlu0 %715  ;;  %v719_v46 = vpop.xlane.xlu1 %718 }
 0x120   : > { %v739_v48 = vmul.f32 0.015625, %v716_v45  ;;  %v740_v49 = vmul.f32 0.015625, %v719_v46  ;;  %v769_v50 = vmul.f32 %v4369_v43, %v4369_v43  ;;  %v770_v26 = vmul.f32 %v4372_v22, %v4372_v22 }
 0x122   : > { %v4381_v51 = vsub.f32 %v4261_v32, %v739_v48  ;;  %v4384_v28 = vsub.f32 %v4264_v33, %v740_v49  ;;  %v805_v54 = vsel %vm677_vm0, %v769_v50, 0.0  ;;  %v808_v57 = vsel %vm677_vm0, %v770_v26, 0.0  ;;  %v1467_v48 = vld [vmem:[%s5183_s7 + $0x30] sm:$0xff]  ;;  %v1466_v26 = vld [vmem:[%s5183_s7 + $0x28] sm:$0xff] }
 0x123   : > { %803 = vadd.xlane.f32.xlu1 %v802_v47  ;;  %806 = vadd.xlane.f32.xlu0 %v805_v54  ;;  %v722_v55 = vpop.xlane.xlu0 %721  ;;  %v725_v56 = vpop.xlane.xlu1 %724 }
 0x124   : > { %v741_v58 = vmul.f32 0.015625, %v722_v55  ;;  %v742_v59 = vmul.f32 0.015625, %v725_v56  ;;  %v771_v62 = vmul.f32 %v4381_v51, %v4381_v51  ;;  %v772_v32 = vmul.f32 %v4384_v28, %v4384_v28 }
 0x126   : > { %v4393_v63 = vsub.f32 %v4273_v36, %v741_v58  ;;  %v4396_v33 = vsub.f32 %v4276_v37, %v742_v59  ;;  %v811_v0 = vsel %vm677_vm0, %v771_v62, 0.0  ;;  %v814_v1 = vsel %vm677_vm0, %v772_v32, 0.0  ;;  %v1476_v37 = vld [vmem:[%s5183_s7 + $0x78] sm:$0xff] }
 0x127   : > { %809 = vadd.xlane.f32.xlu1 %v808_v57  ;;  %812 = vadd.xlane.f32.xlu0 %v811_v0 }
 0x128   : > { %v773_v3 = vmul.f32 %v4393_v63, %v4393_v63  ;;  %v774_v4 = vmul.f32 %v4396_v33, %v4396_v33  ;;  %3200 = vmatprep.subr.mxu0 %v1476_v37 }
 0x129   : > { %3201 = vmatpush3.msra.mxu0 %v1476_v37 }
 0x12a   : > { %v817_v6 = vsel %vm677_vm0, %v773_v3, 0.0  ;;  %v820_v36 = vsel %vm677_vm0, %v774_v4, 0.0  ;;  %3202 = vmatprep.subr.mxu0 %v1475_v7 }
 0x12b   : > { %815 = vadd.xlane.f32.xlu1 %v814_v1  ;;  %818 = vadd.xlane.f32.xlu0 %v817_v6 }
 0x12c   : > { %3203 = vmatpush3.msra.mxu0 %v1475_v7 }
 0x12d   : > { %3204 = vmatprep.subr.mxu0 %v1474_v9 }
 0x12e   : > { %3205 = vmatpush3.msra.mxu0 %v1474_v9 }
 0x12f   : > { %821 = vadd.xlane.f32.xlu1 %v820_v36  ;;  %3206 = vmatprep.subr.mxu0 %v1473_v14 }
 0x130   : > { %3207 = vmatpush3.msra.mxu0 %v1473_v14 }
 0x131   : > { %3208 = vmatprep.subr.mxu0 %v1472_v10 }
 0x132   : > { %3209 = vmatpush3.msra.mxu0 %v1472_v10 }
 0x133   : > { %3210 = vmatprep.subr.mxu0 %v1471_v27 }
 0x134   : > { %3211 = vmatpush3.msra.mxu0 %v1471_v27 }
 0x135   : > { %3212 = vmatprep.subr.mxu0 %v1470_v15 }
 0x136   : > { %3213 = vmatpush3.msra.mxu0 %v1470_v15 }
 0x137   : > { %3214 = vmatprep.subr.mxu0 %v1469_v40 }
 0x138   : > { %3215 = vmatpush3.msra.mxu0 %v1469_v40 }
 0x139   : > { %3216 = vmatprep.subr.mxu0 %v1468_v21 }
 0x13a   : > { %3217 = vmatpush3.msra.mxu0 %v1468_v21  ;;  %v1465_v21 = vld [vmem:[%s5183_s7 + $0x20] sm:$0xff] }
 0x13b   : > { %3218 = vmatprep.subr.mxu0 %v1467_v48 }
 0x13c   : > { %3219 = vmatpush3.msra.mxu0 %v1467_v48 }
 0x13d   : > { %3220 = vmatprep.subr.mxu0 %v1466_v26 }
 0x13e   : > { %3221 = vmatpush3.msra.mxu0 %v1466_v26  ;;  %v1463_v26 = vld [vmem:[%s5183_s7 + $0x10] sm:$0xff] }
 0x13f   : > { %3222 = vmatprep.subr.mxu0 %v1465_v21 }
 0x140   : > { %3223 = vmatpush3.msra.mxu0 %v1465_v21 }
 0x149   : > { %v3138_v12 = vpop.f32.mrf.mxu0 }
 0x14a   : > { %v1148_v13 = vadd.f32 %v3138_v12, %v4415_v8 }
 0x14b   : > { %v1142_v16 = vpop.f32.mrf.mxu0 }
 0x14c   : > { %v1143_v18 = vadd.f32 %v4415_v8, %v1142_v16  ;;  %v1222_v20 = vmax.f32 %v1148_v13, 0.0 }
 0x14d   : > { %v3141_v23 = vpop.f32.mrf.mxu0 }
 0x14e   : > { %v1221_v24 = vmax.f32 %v1143_v18, 0.0  ;;  %v1158_v25 = vadd.f32 %v3141_v23, %v4415_v8 }
 0x14f   : > { %v1152_v29 = vpop.f32.mrf.mxu0 }
 0x150   : > { %v1153_v30 = vadd.f32 %v4415_v8, %v1152_v29  ;;  %3176 = vmatprep.mubr.msk.f32.mxu1 %vm677_vm0, %v1221_v24  ;;  %v1224_v34 = vmax.f32 %v1158_v25, 0.0 }
 0x151   : > { %v3144_v35 = vpop.f32.mrf.mxu0  ;;  %3177 = vmatmul.mubr.msk.f32.vlgmr.msra.gmra.mxu1 %vm677_vm0, %v1222_v20 }
 0x152   : > { %v1223_v38 = vmax.f32 %v1153_v30, 0.0  ;;  %v1168_v39 = vadd.f32 %v3144_v35, %v4415_v8 }
 0x153   : > { %v1162_v41 = vpop.f32.mrf.mxu0 }
 0x154   : > { %v1163_v42 = vadd.f32 %v4415_v8, %v1162_v41  ;;  %3179 = vmatprep.mubr.msk.f32.mxu1 %vm677_vm0, %v1223_v38  ;;  %v1226_v44 = vmax.f32 %v1168_v39, 0.0 }
 0x155   : > { %v3147_v45 = vpop.f32.mrf.mxu0  ;;  %3180 = vmatmul.mubr.msk.f32.gmra.mxu1 %vm677_vm0, %v1224_v34 }
 0x156   : > { %v1225_v46 = vmax.f32 %v1163_v42, 0.0  ;;  %v1178_v47 = vadd.f32 %v3147_v45, %v4415_v8 }
 0x157   : > { %v1172_v49 = vpop.f32.mrf.mxu0 }
 0x158   : > { %v1173_v50 = vadd.f32 %v4415_v8, %v1172_v49  ;;  %3182 = vmatprep.mubr.msk.f32.mxu1 %vm677_vm0, %v1225_v46  ;;  %v1228_v54 = vmax.f32 %v1178_v47, 0.0  ;;  %v1464_v46 = vld [vmem:[%s5183_s7 + $0x18] sm:$0xff] }
 0x159   : > { %v3150_v55 = vpop.f32.mrf.mxu0  ;;  %3183 = vmatmul.mubr.msk.f32.gmra.mxu1 %vm677_vm0, %v1226_v44  ;;  %3224 = vmatprep.subr.mxu0 %v1464_v46 }
 0x15a   : > { %v1227_v56 = vmax.f32 %v1173_v50, 0.0  ;;  %v1188_v57 = vadd.f32 %v3150_v55, %v4415_v8  ;;  %3225 = vmatpush3.msra.mxu0 %v1464_v46 }
 0x15b   : > { %v1182_v58 = vpop.f32.mrf.mxu0  ;;  %3226 = vmatprep.subr.mxu0 %v1463_v26 }
 0x15c   : > { %v1183_v59 = vadd.f32 %v4415_v8, %v1182_v58  ;;  %3185 = vmatprep.mubr.msk.f32.mxu1 %vm677_vm0, %v1227_v56  ;;  %v1230_v62 = vmax.f32 %v1188_v57, 0.0  ;;  %3227 = vmatpush3.msra.mxu0 %v1463_v26  ;;  %v1462_v56 = vld [vmem:[%s5183_s7 + $0x8] sm:$0xff] }
 0x15d   : > { %v3153_v32 = vpop.f32.mrf.mxu0  ;;  %3186 = vmatmul.mubr.msk.f32.gmra.mxu1 %vm677_vm0, %v1228_v54  ;;  %3228 = vmatprep.subr.mxu0 %v1462_v56 }
 0x15e   : > { %v1229_v0 = vmax.f32 %v1183_v59, 0.0  ;;  %v1198_v1 = vadd.f32 %v3153_v32, %v4415_v8  ;;  %3229 = vmatpush3.msra.mxu0 %v1462_v56  ;;  %v1461_v32 = vld [vmem:[%s5183_s7] sm:$0xff] }
 0x15f   : > { %v1192_v3 = vpop.f32.mrf.mxu0  ;;  %3230 = vmatprep.subr.mxu0 %v1461_v32 }
 0x160   : > { %v1193_v4 = vadd.f32 %v4415_v8, %v1192_v3  ;;  %3188 = vmatprep.mubr.msk.f32.mxu1 %vm677_vm0, %v1229_v0  ;;  %v1232_v6 = vmax.f32 %v1198_v1, 0.0  ;;  %3231 = vmatpush3.msra.mxu0 %v1461_v32  ;;  %v4629_v32 = vld [vmem:[%s5189_s13 + $0x38] sm:$0xff] }
 0x161   : > { %v3156_v36 = vpop.f32.mrf.mxu0  ;;  %3189 = vmatmul.mubr.msk.f32.gmra.mxu1 %vm677_vm0, %v1230_v62 }
 0x162   : > { %v1231_v37 = vmax.f32 %v1193_v4, 0.0  ;;  %v1208_v7 = vadd.f32 %v3156_v36, %v4415_v8 }
 0x163   : > { %v1202_v9 = vpop.f32.mrf.mxu0 }
 0x164   : > { %v1203_v12 = vadd.f32 %v4415_v8, %v1202_v9  ;;  %3191 = vmatprep.mubr.msk.f32.mxu1 %vm677_vm0, %v1231_v37  ;;  %v1234_v13 = vmax.f32 %v1208_v7, 0.0 }
 0x165   : > { %v3159_v14 = vpop.f32.mrf.mxu0  ;;  %3192 = vmatmul.mubr.msk.f32.gmra.mxu1 %vm677_vm0, %v1232_v6 }
 0x166   : > { %v1233_v16 = vmax.f32 %v1203_v12, 0.0  ;;  %v1218_v18 = vadd.f32 %v3159_v14, %v4415_v8 }
 0x167   : > { %v1212_v10 = vpop.f32.mrf.mxu0 }
 0x168   : > { %v1213_v20 = vadd.f32 %v4415_v8, %v1212_v10  ;;  %3194 = vmatprep.mubr.msk.f32.mxu1 %vm677_vm0, %v1233_v16  ;;  %v1236_v23 = vmax.f32 %v1218_v18, 0.0 }
 0x169   : > { %3195 = vmatmul.mubr.msk.f32.gmra.mxu1 %vm677_vm0, %v1234_v13 }
 0x16a   : > { %v1235_v24 = vmax.f32 %v1213_v20, 0.0 }
 0x16c   : > { %3197 = vmatprep.mubr.msk.f32.mxu1 %vm677_vm0, %v1235_v24 }
 0x16d   : > { %3198 = vmatmul.mubr.msk.f32.gmra.mxu1 %vm677_vm0, %v1236_v23 }
 0x198   : > { %v777_v25 = vpop.xlane.xlu0 %776 }
 0x199   : > { %v823_v27 = vmul.f32 0.015625, %v777_v25 }
 0x19b   : > { %v839_v29 = vadd.f32 1e-05, %v823_v27 }
 0x19c   : > { %v780_v30 = vpop.xlane.xlu1 %779  ;;  %v783_v15 = vpop.xlane.xlu0 %782 }
 0x19d   : > { %3641 = vrsqrt.f32 %v839_v29  ;;  %v824_v34 = vmul.f32 0.015625, %v780_v30  ;;  %v825_v35 = vmul.f32 0.015625, %v783_v15 }
 0x19f   : > { %v840_v38 = vadd.f32 1e-05, %v824_v34  ;;  %v841_v8 = vadd.f32 1e-05, %v825_v35 }
 0x1a0   : > { %v786_v39 = vpop.xlane.xlu1 %785  ;;  %v789_v40 = vpop.xlane.xlu0 %788 }
 0x1a1   : > { %3643 = vrsqrt.f32 %v840_v38  ;;  %v826_v41 = vmul.f32 0.015625, %v786_v39  ;;  %v827_v42 = vmul.f32 0.015625, %v789_v40 }
 0x1a2   : > { %3645 = vrsqrt.f32 %v841_v8 }
 0x1a3   : > { %v842_v44 = vadd.f32 1e-05, %v826_v41  ;;  %v843_v45 = vadd.f32 1e-05, %v827_v42 }
 0x1a4   : > { %v792_v47 = vpop.xlane.xlu1 %791  ;;  %v795_v48 = vpop.xlane.xlu0 %794 }
 0x1a5   : > { %v828_v49 = vmul.f32 0.015625, %v792_v47  ;;  %v829_v50 = vmul.f32 0.015625, %v795_v48  ;;  %3647 = vrsqrt.f32 %v843_v45 }
 0x1a6   : > { %3649 = vrsqrt.f32 %v842_v44 }
 0x1a7   : > { %v844_v54 = vadd.f32 1e-05, %v828_v49  ;;  %v845_v55 = vadd.f32 1e-05, %v829_v50 }
 0x1a8   : > { %v798_v57 = vpop.xlane.xlu1 %797  ;;  %v801_v58 = vpop.xlane.xlu0 %800 }
 0x1a9   : > { %v830_v59 = vmul.f32 0.015625, %v798_v57  ;;  %v831_v62 = vmul.f32 0.015625, %v801_v58  ;;  %3651 = vrsqrt.f32 %v845_v55  ;;  %v4592_v57 = vld [vmem:[%s5189_s13 + $0x60] sm:$0xff]  ;;  %v4601_v58 = vld [vmem:[%s5189_s13 + $0x58] sm:$0xff] }
 0x1aa   : > { %v3642_v0 = vpop.eup %3641  ;;  %3653 = vrsqrt.f32 %v844_v54 }
 0x1ab   : > { %v846_v1 = vadd.f32 1e-05, %v830_v59  ;;  %v847_v3 = vadd.f32 1e-05, %v831_v62  ;;  %v4492_v4 = vmul.f32 %v3642_v0, %v4311_v52  ;;  %v4615_v59 = vld [vmem:[%s5189_s13 + $0x48] sm:$0xff]  ;;  %v4622_v62 = vld [vmem:[%s5189_s13 + $0x40] sm:$0xff] }
 0x1ac   : > { %v804_v6 = vpop.xlane.xlu1 %803  ;;  %v807_v36 = vpop.xlane.xlu0 %806  ;;  %v4636_v0 = vld [vmem:[%s5189_s13 + $0x30] sm:$0xff] }
 0x1ad   : > { %v832_v37 = vmul.f32 0.015625, %v804_v6  ;;  %v833_v7 = vmul.f32 0.015625, %v807_v36  ;;  %903 = vrot.lane.b32.xlu0 %v4492_v4, %s3947_s29  ;;  %3655 = vrsqrt.f32 %v847_v3  ;;  %v4650_v3 = vld [vmem:[%s5189_s13 + $0x20] sm:$0xff]  ;;  %v4657_v6 = vld [vmem:[%s5189_s13 + $0x18] sm:$0xff] }
 0x1ae   : > { %v3644_v9 = vpop.eup %3643  ;;  %3657 = vrsqrt.f32 %v846_v1  ;;  %v4643_v1 = vld [vmem:[%s5189_s13 + $0x28] sm:$0xff] }
 0x1af   : > { %v848_v12 = vadd.f32 1e-05, %v832_v37  ;;  %v849_v13 = vadd.f32 1e-05, %v833_v7  ;;  %v4497_v14 = vmul.f32 %v3644_v9, %v4321_v60  ;;  %v3646_v16 = vpop.eup %3645  ;;  %v4663_v37 = vld [vmem:[#allocation2] ss:$0 sm:$0xff] }
 0x1b0   : > { %v810_v52 = vpop.xlane.xlu1 %809  ;;  %v813_v18 = vpop.xlane.xlu0 %812  ;;  %v4502_v27 = vmul.f32 %v3646_v16, %v4314_v53  ;;  %v4668_v7 = vld [vmem:[%s5182_s6] ss:$0 sm:$0xff]  ;;  %v4672_v16 = vld [vmem:[#allocation5] ss:$0 sm:$0xff] }
 0x1b1   : > { %v834_v10 = vmul.f32 0.015625, %v810_v52  ;;  %v835_v20 = vmul.f32 0.015625, %v813_v18  ;;  %905 = vrot.lane.b32.xlu1 %v4497_v14, %s3947_s29  ;;  %3659 = vrsqrt.f32 %v849_v13 }
 0x1b2   : > { %v3648_v23 = vpop.eup %3647  ;;  %3661 = vrsqrt.f32 %v848_v12 }
 0x1b3   : > { %v850_v24 = vadd.f32 1e-05, %v834_v10  ;;  %v851_v25 = vadd.f32 1e-05, %v835_v20  ;;  %v3650_v29 = vpop.eup %3649  ;;  %v4505_v15 = vmul.f32 %v3648_v23, %v4333_v2 }
 0x1b4   : > { %v816_v30 = vpop.xlane.xlu1 %815  ;;  %v819_v60 = vpop.xlane.xlu0 %818  ;;  %v4512_v39 = vmul.f32 %v3650_v29, %v4324_v61 }
 0x1b5   : > { %v836_v34 = vmul.f32 0.015625, %v816_v30  ;;  %v837_v35 = vmul.f32 0.015625, %v819_v60  ;;  %907 = vrot.lane.b32.xlu1 %v4502_v27, %s3947_s29  ;;  %3663 = vrsqrt.f32 %v851_v25  ;;  %911 = vrot.lane.b32.xlu0 %v4505_v15, %s3947_s29 }
 0x1b6   : > { %v3652_v38 = vpop.eup %3651  ;;  %3665 = vrsqrt.f32 %v850_v24 }
 0x1b7   : > { %v852_v8 = vadd.f32 1e-05, %v836_v34  ;;  %v853_v53 = vadd.f32 1e-05, %v837_v35  ;;  %v3654_v40 = vpop.eup %3653  ;;  %v4515_v2 = vmul.f32 %v3652_v38, %v4345_v19 }
 0x1b8   : > { %v822_v41 = vpop.xlane.xlu1 %821  ;;  %v4522_v45 = vmul.f32 %v3654_v40, %v4336_v5 }
 0x1b9   : > { %v838_v42 = vmul.f32 0.015625, %v822_v41  ;;  %909 = vrot.lane.b32.xlu1 %v4512_v39, %s3947_s29  ;;  %3667 = vrsqrt.f32 %v853_v53  ;;  %915 = vrot.lane.b32.xlu0 %v4515_v2, %s3947_s29 }
 0x1ba   : > { %v3656_v21 = vpop.eup %3655  ;;  %3669 = vrsqrt.f32 %v852_v8 }
 0x1bb   : > { %v854_v44 = vadd.f32 1e-05, %v838_v42  ;;  %v3658_v61 = vpop.eup %3657  ;;  %v4525_v46 = vmul.f32 %v3656_v21, %v4357_v31 }
 0x1bc   : > { %v4532_v47 = vmul.f32 %v3658_v61, %v4348_v11 }
 0x1bd   : > { %913 = vrot.lane.b32.xlu1 %v4522_v45, %s3947_s29  ;;  %919 = vrot.lane.b32.xlu0 %v4525_v46, %s3947_s29  ;;  %3671 = vrsqrt.f32 %v854_v44 }
 0x1be   : > { %v3660_v19 = vpop.eup %3659 }
 0x1bf   : > { %v3662_v48 = vpop.eup %3661  ;;  %v4535_v49 = vmul.f32 %v3660_v19, %v4369_v43 }
 0x1c0   : > { %v4542_v31 = vmul.f32 %v3662_v48, %v4360_v17 }
 0x1c1   : > { %917 = vrot.lane.b32.xlu1 %v4532_v47, %s3947_s29  ;;  %923 = vrot.lane.b32.xlu0 %v4535_v49, %s3947_s29 }
 0x1c2   : > { %v3664_v5 = vpop.eup %3663 }
 0x1c3   : > { %v3666_v50 = vpop.eup %3665  ;;  %v4545_v26 = vmul.f32 %v3664_v5, %v4381_v51  ;;  %v4567_v51 = vld [vmem:[%s5189_s13 + $0x78] sm:$0xff] }
 0x1c4   : > { %v4552_v43 = vmul.f32 %v3666_v50, %v4372_v22  ;;  %v4572_v22 = vld [vmem:[%s5189_s13 + $0x70] sm:$0xff]  ;;  %3256 = vmatprep.subr.mxu1 %v4567_v51  ;;  %3312 = vmatprep.subr.mxu0 %v4567_v51 }
 0x1c5   : > { %921 = vrot.lane.b32.xlu1 %v4542_v31, %s3947_s29  ;;  %927 = vrot.lane.b32.xlu0 %v4545_v26, %s3947_s29 }
 0x1c6   : > { %v3668_v11 = vpop.eup %3667  ;;  %3257 = vmatpush3.msra.mxu1 %v4567_v51 }
 0x1c7   : > { %v3670_v54 = vpop.eup %3669  ;;  %v4555_v55 = vmul.f32 %v3668_v11, %v4393_v63  ;;  %3258 = vmatprep.subr.mxu1 %v4572_v22 }
 0x1c8   : > { %v4562_v17 = vmul.f32 %v3670_v54, %v4384_v28  ;;  %v4582_v28 = vld [vmem:[%s5189_s13 + $0x68] sm:$0xff]  ;;  %3259 = vmatpush3.msra.mxu1 %v4572_v22 }
 0x1c9   : > { %925 = vrot.lane.b32.xlu1 %v4552_v43, %s3947_s29  ;;  %931 = vrot.lane.b32.xlu0 %v4555_v55, %s3947_s29 }
 0x1ca   : > { %v3672_v63 = vpop.eup %3671  ;;  %3260 = vmatprep.subr.mxu1 %v4582_v28 }
 0x1cb   : > { %v4586_v56 = vmul.f32 %v3672_v63, %v4396_v33  ;;  %3261 = vmatpush3.msra.mxu1 %v4582_v28  ;;  %v4608_v33 = vld [vmem:[%s5189_s13 + $0x50] sm:$0xff] }
 0x1cc   : > { %3262 = vmatprep.subr.mxu1 %v4592_v57 }
 0x1cd   : > { %929 = vrot.lane.b32.xlu1 %v4562_v17, %s3947_s29  ;;  %3263 = vmatpush3.msra.mxu1 %v4592_v57 }
 0x1ce   : > { %3264 = vmatprep.subr.mxu1 %v4601_v58 }
 0x1cf   : > { %3265 = vmatpush3.msra.mxu1 %v4601_v58 }
 0x1d0   : > { %3266 = vmatprep.subr.mxu1 %v4608_v33 }
 0x1d1   : > { %933 = vrot.lane.b32.xlu1 %v4586_v56, %s3947_s29  ;;  %3267 = vmatpush3.msra.mxu1 %v4608_v33  ;;  %s2691_s29 = sshll.u32 %s5093_s21, 4  ;;  %s5130_s29 = int_to_ptr.vmem [resolvable:$true] %s2691_s29 }
 0x1d2   : > { %3268 = vmatprep.subr.mxu1 %v4615_v59  ;;  %s3861_s18 = scalar_lea.vmem %s5130_s29, 2048  ;;  %p3868_p13 = scmp.lt.s32.totalorder %s5130_s29, %s3866_s30 }
 0x1d3   : > { %3269 = vmatpush3.msra.mxu1 %v4615_v59  ;;  %p3862_p2 = scmp.ne.s32.totalorder %s5130_s29, %s3861_s18  ;;  %p3869_p7 = scmp.lt.s32.totalorder %s3867_s25, %s3861_s18 }
 0x1d4   : > { %3270 = vmatprep.subr.mxu1 %v4622_v62 }
 0x1d5   : > { %3271 = vmatpush3.msra.mxu1 %v4622_v62  ;;  %p3863_p4 = pnand %p3862_p2, %p4084_p5  ;;  %p3870_p8 = por %p3869_p7, %p3868_p13 }
 0x1d6   : > { %3272 = vmatprep.subr.mxu1 %v4629_v32 }
 0x1d7   : > { %3273 = vmatpush3.msra.mxu1 %v4629_v32  ;;  %p3864_p9 = pneg %p3863_p4 }
 0x1d8   : > { %3274 = vmatprep.subr.mxu1 %v4636_v0 }
 0x1d9   : > { %3275 = vmatpush3.msra.mxu1 %v4636_v0  ;;  %p3871_p11 = pnand %p3870_p8, %p3864_p9 }
 0x1da   : > { %3276 = vmatprep.subr.mxu1 %v4643_v1 }
 0x1db   : > { %3277 = vmatpush3.msra.mxu1 %v4643_v1 }
 0x1dc   : > { %3278 = vmatprep.subr.mxu1 %v4650_v3 }
 0x1dd   : > { %3279 = vmatpush3.msra.mxu1 %v4650_v3 }
 0x1de   : > { %3280 = vmatprep.subr.mxu1 %v4657_v6 }
 0x1df   : > { %3281 = vmatpush3.msra.mxu1 %v4657_v6 }
 0x211   : > { %v3178_v36 = vpop.f32.mrf.mxu1 }
 0x213   : > { %v1366_v9 = vpop.f32.mrf.mxu1 }
 0x214   : > { %v1367_v10 = vadd.f32 %v4668_v7, %v1366_v9 }
 0x215   : > { %v3181_v52 = vpop.f32.mrf.mxu1 }
 0x217   : > { %v1376_v20 = vpop.f32.mrf.mxu1 }
 0x218   : > { %v1377_v61 = vadd.f32 %v4668_v7, %v1376_v20 }
 0x219   : > { %v3184_v29 = vpop.f32.mrf.mxu1 }
 0x21b   : > { %v1386_v34 = vpop.f32.mrf.mxu1 }
 0x21d   : > { %v3187_v40 = vpop.f32.mrf.mxu1 }
 0x21f   : > { %v904_v12 = vpop.permute.xlu0 %903  ;;  %v1396_v44 = vpop.f32.mrf.mxu1 }
 0x220   : > { %v951_v13 = vsel %vm677_vm0, %v4492_v4, %v904_v12  ;;  %v1372_v4 = vadd.f32 %v3178_v36, %v4668_v7  ;;  %v1387_v36 = vadd.f32 %v4668_v7, %v1386_v34  ;;  %v1382_v12 = vadd.f32 %v3181_v52, %v4668_v7 }
 0x221   : > { %v974_v18 = vmul.f32 %v4663_v37, %v951_v13  ;;  %v4692_v50 = vpop.f32.mrf.mxu1 }
 0x223   : > { %v997_v23 = vadd.f32 %v4672_v16, %v974_v18  ;;  %v906_v24 = vpop.permute.xlu1 %905 }
 0x224   : > { %v952_v25 = vsel %vm677_vm0, %v4497_v14, %v906_v24 }
 0x225   : > { %v1445_v30 = vmul.f32 %v1367_v10, %v997_v23  ;;  %v975_v60 = vmul.f32 %v4663_v37, %v952_v25  ;;  %v1397_v25 = vadd.f32 %v4668_v7, %v1396_v44 }
 0x227   : > { %v998_v35 = vadd.f32 %v4672_v16, %v975_v60  ;;  %v908_v38 = vpop.permute.xlu1 %907  ;;  %3232 = vmatprep.mubr.f32.mxu0 %v1445_v30  ;;  %v912_v53 = vpop.permute.xlu0 %911 }
 0x228   : > { %v953_v8 = vsel %vm677_vm0, %v4502_v27, %v908_v38  ;;  %v955_v14 = vsel %vm677_vm0, %v4505_v15, %v912_v53 }
 0x229   : > { %v1446_v41 = vmul.f32 %v1372_v4, %v998_v35  ;;  %v976_v42 = vmul.f32 %v4663_v37, %v953_v8  ;;  %v978_v21 = vmul.f32 %v4663_v37, %v955_v14 }
 0x22b   : > { %v999_v19 = vadd.f32 %v4672_v16, %v976_v42  ;;  %v910_v48 = vpop.permute.xlu1 %909  ;;  %3233 = vmatmul.mubr.f32.vlgmr.msra.gmra.mxu0 %v1446_v41  ;;  %v916_v5 = vpop.permute.xlu0 %915  ;;  %v1001_v63 = vadd.f32 %v4672_v16, %v978_v21  ;;  %v1402_v42 = vadd.f32 %v3187_v40, %v4668_v7 }
 0x22c   : > { %v954_v27 = vsel %vm677_vm0, %v4512_v39, %v910_v48  ;;  %3313 = vmatpush3.msra.mxu0 %v4567_v51  ;;  %v957_v15 = vsel %vm677_vm0, %v4515_v2, %v916_v5  ;;  %v1406_v39 = vpop.f32.mrf.mxu1 }
 0x22d   : > { %v977_v11 = vmul.f32 %v4663_v37, %v954_v27  ;;  %v1447_v54 = vmul.f32 %v1377_v61, %v999_v19  ;;  %3314 = vmatprep.subr.mxu0 %v4572_v22  ;;  %v980_v9 = vmul.f32 %v4663_v37, %v957_v15  ;;  %v1449_v23 = vmul.f32 %v1387_v36, %v1001_v63 }
 0x22e   : > { %3315 = vmatpush3.msra.mxu0 %v4572_v22  ;;  %v4708_v10 = vpop.f32.mrf.mxu1  ;;  %v1407_v41 = vadd.f32 %v4668_v7, %v1406_v39 }
 0x22f   : > { %v1000_v51 = vadd.f32 %v4672_v16, %v977_v11  ;;  %v914_v13 = vpop.permute.xlu1 %913  ;;  %3235 = vmatprep.mubr.f32.mxu0 %v1447_v54  ;;  %3316 = vmatprep.subr.mxu0 %v4582_v28  ;;  %v920_v18 = vpop.permute.xlu0 %919  ;;  %v1003_v24 = vadd.f32 %v4672_v16, %v980_v9 }
 0x230   : > { %v956_v2 = vsel %vm677_vm0, %v4522_v45, %v914_v13  ;;  %3317 = vmatpush3.msra.mxu0 %v4582_v28  ;;  %v959_v22 = vsel %vm677_vm0, %v4525_v46, %v920_v18  ;;  %v1416_v30 = vpop.f32.mrf.mxu1  ;;  %v1392_v28 = vadd.f32 %v3184_v29, %v4668_v7 }
 0x231   : > { %v979_v20 = vmul.f32 %v4663_v37, %v956_v2  ;;  %v1448_v52 = vmul.f32 %v1382_v12, %v1000_v51  ;;  %3318 = vmatprep.subr.mxu0 %v4592_v57  ;;  %v982_v45 = vmul.f32 %v4663_v37, %v959_v22  ;;  %v1451_v8 = vmul.f32 %v1397_v25, %v1003_v24 }
 0x232   : > { %3319 = vmatpush3.msra.mxu0 %v4592_v57  ;;  %v4724_v35 = vpop.f32.mrf.mxu1  ;;  %v1417_v27 = vadd.f32 %v4668_v7, %v1416_v30 }
 0x233   : > { %v1002_v60 = vadd.f32 %v4672_v16, %v979_v20  ;;  %v918_v34 = vpop.permute.xlu1 %917  ;;  %3236 = vmatmul.mubr.f32.gmra.mxu0 %v1448_v52  ;;  %3320 = vmatprep.subr.mxu0 %v4601_v58  ;;  %v924_v4 = vpop.permute.xlu0 %923  ;;  %v1005_v53 = vadd.f32 %v4672_v16, %v982_v45  ;;  %v1432_v22 = vadd.f32 %v4724_v35, %v4668_v7 }
 0x234   : > { %v958_v46 = vsel %vm677_vm0, %v4532_v47, %v918_v34  ;;  %3238 = vmatprep.mubr.f32.mxu0 %v1449_v23  ;;  %3321 = vmatpush3.msra.mxu0 %v4601_v58  ;;  %v961_v57 = vsel %vm677_vm0, %v4535_v49, %v924_v4  ;;  %v1426_v21 = vpop.f32.mrf.mxu1 }
 0x235   : > { %v981_v38 = vmul.f32 %v4663_v37, %v958_v46  ;;  %v1450_v29 = vmul.f32 %v1392_v28, %v1002_v60  ;;  %3322 = vmatprep.subr.mxu0 %v4608_v33  ;;  %v984_v47 = vmul.f32 %v4663_v37, %v961_v57  ;;  %v1453_v19 = vmul.f32 %v1407_v41, %v1005_v53  ;;  %v1631_v28 = vld [vmem:[%s5189_s13 + $0x10] sm:$0xff] }
 0x236   : > { %3323 = vmatpush3.msra.mxu0 %v4608_v33  ;;  %v1427_v39 = vadd.f32 %v4668_v7, %v1426_v21  ;;  %3282 = vmatprep.subr.mxu1 %v1631_v28 }
 0x237   : > { %v1004_v58 = vadd.f32 %v4672_v16, %v981_v38  ;;  %v922_v14 = vpop.permute.xlu1 %921  ;;  %3239 = vmatmul.mubr.f32.gmra.mxu0 %v1450_v29  ;;  %3324 = vmatprep.subr.mxu0 %v4615_v59  ;;  %v928_v44 = vpop.permute.xlu0 %927  ;;  %v1007_v48 = vadd.f32 %v4672_v16, %v984_v47 }
 0x238   : > { %v960_v49 = vsel %vm677_vm0, %v4542_v31, %v922_v14  ;;  %3241 = vmatprep.mubr.f32.mxu0 %v1451_v8  ;;  %3325 = vmatpush3.msra.mxu0 %v4615_v59  ;;  %v963_v33 = vsel %vm677_vm0, %v4545_v26, %v928_v44  ;;  %v1412_v31 = vadd.f32 %v4692_v50, %v4668_v7  ;;  %v3199_v26 = vpop.f32.mrf.mxu1 }
 0x239   : > { %v983_v61 = vmul.f32 %v4663_v37, %v960_v49  ;;  %v1452_v40 = vmul.f32 %v1402_v42, %v1004_v58  ;;  %3326 = vmatprep.subr.mxu0 %v4622_v62  ;;  %v986_v5 = vmul.f32 %v4663_v37, %v963_v33  ;;  %v1455_v36 = vmul.f32 %v1417_v27, %v1007_v48 }
 0x23a   : > { %3327 = vmatpush3.msra.mxu0 %v4622_v62  ;;  %v1436_v51 = vpop.f32.mrf.mxu1  ;;  %3283 = vmatpush3.msra.mxu1 %v1631_v28 }
 0x23b   : > { %v1006_v59 = vadd.f32 %v4672_v16, %v983_v61  ;;  %v926_v11 = vpop.permute.xlu1 %925  ;;  %3242 = vmatmul.mubr.f32.gmra.mxu0 %v1452_v40  ;;  %3328 = vmatprep.subr.mxu0 %v4629_v32  ;;  %v932_v54 = vpop.permute.xlu0 %931  ;;  %v1009_v9 = vadd.f32 %v4672_v16, %v986_v5  ;;  %v1437_v20 = vadd.f32 %v4668_v7, %v1436_v51 }
 0x23c   : > { %v962_v15 = vsel %vm677_vm0, %v4552_v43, %v926_v11  ;;  %3244 = vmatprep.mubr.f32.mxu0 %v1453_v19  ;;  %3329 = vmatpush3.msra.mxu0 %v4629_v32  ;;  %v965_v62 = vsel %vm677_vm0, %v4555_v55, %v932_v54  ;;  %v1422_v43 = vadd.f32 %v4708_v10, %v4668_v7 }
 0x23d   : > { %v985_v63 = vmul.f32 %v4663_v37, %v962_v15  ;;  %v1454_v50 = vmul.f32 %v1412_v31, %v1006_v59  ;;  %3330 = vmatprep.subr.mxu0 %v4636_v0  ;;  %v988_v12 = vmul.f32 %v4663_v37, %v965_v62 }
 0x23e   : > { %3331 = vmatpush3.msra.mxu0 %v4636_v0  ;;  %v1457_v0 = vmul.f32 %v1427_v39, %v1009_v9 }
 0x23f   : > { %v1008_v32 = vadd.f32 %v4672_v16, %v985_v63  ;;  %v930_v13 = vpop.permute.xlu1 %929  ;;  %3245 = vmatmul.mubr.f32.gmra.mxu0 %v1454_v50  ;;  %3332 = vmatprep.subr.mxu0 %v4643_v1  ;;  %v1011_v10 = vadd.f32 %v4672_v16, %v988_v12 }
 0x240   : > { %v964_v55 = vsel %vm677_vm0, %v4562_v17, %v930_v13  ;;  %3247 = vmatprep.mubr.f32.mxu0 %v1455_v36  ;;  %3333 = vmatpush3.msra.mxu0 %v4643_v1 }
 0x241   : > { %v987_v2 = vmul.f32 %v4663_v37, %v964_v55  ;;  %v1456_v18 = vmul.f32 %v1422_v43, %v1008_v32  ;;  %3334 = vmatprep.subr.mxu0 %v4650_v3  ;;  %v1459_v25 = vmul.f32 %v1437_v20, %v1011_v10  ;;  %v2140_v10 = vld [vmem:[%s5187_s11 + $0x78] sm:$0xff]  ;;  %v2139_v20 = vld [vmem:[%s5187_s11 + $0x70] sm:$0xff] }
 0x242   : > { %3335 = vmatpush3.msra.mxu0 %v4650_v3  ;;  %v1442_v3 = vadd.f32 %v3199_v26, %v4668_v7 }
 0x243   : > { %v1010_v17 = vadd.f32 %v4672_v16, %v987_v2  ;;  %v934_v52 = vpop.permute.xlu1 %933  ;;  %3248 = vmatmul.mubr.f32.gmra.mxu0 %v1456_v18  ;;  %3336 = vmatprep.subr.mxu0 %v4657_v6 }
 0x244   : > { %v966_v1 = vsel %vm677_vm0, %v4586_v56, %v934_v52  ;;  %3250 = vmatprep.mubr.f32.mxu0 %v1457_v0  ;;  %3337 = vmatpush3.msra.mxu0 %v4657_v6  ;;  %v1630_v56 = vld [vmem:[%s5189_s13 + $0x8] sm:$0xff]  ;;  %v1629_v6 = vld [vmem:[%s5189_s13] sm:$0xff]  ;;  %v2136_v52 = vld [vmem:[%s5187_s11 + $0x58] sm:$0xff] }
 0x245   : > { %v989_v23 = vmul.f32 %v4663_v37, %v966_v1  ;;  %v1458_v24 = vmul.f32 %v1432_v22, %v1010_v17  ;;  %3338 = vmatprep.subr.mxu0 %v1631_v28  ;;  %3284 = vmatprep.subr.mxu1 %v1630_v56  ;;  %v4798_v37 = vld [vmem:[%s5184_s8] ss:$0 sm:$0xff]  ;;  %v2138_v22 = vld [vmem:[%s5187_s11 + $0x68] sm:$0xff]  ;;  %v2135_v1 = vld [vmem:[%s5187_s11 + $0x50] sm:$0xff] }
 0x246   : > { %3339 = vmatpush3.msra.mxu0 %v1631_v28  ;;  %3285 = vmatpush3.msra.mxu1 %v1630_v56  ;;  %v2137_v17 = vld [vmem:[%s5187_s11 + $0x60] sm:$0xff]  ;;  %v2128_v28 = vld [vmem:[%s5187_s11 + $0x18] sm:$0xff] }
 0x247   : > { %v1012_v45 = vadd.f32 %v4672_v16, %v989_v23  ;;  %3251 = vmatmul.mubr.f32.gmra.mxu0 %v1458_v24  ;;  %3340 = vmatprep.subr.mxu0 %v1630_v56  ;;  %v2134_v23 = vld [vmem:[%s5187_s11 + $0x48] sm:$0xff]  ;;  %v2133_v24 = vld [vmem:[%s5187_s11 + $0x40] sm:$0xff] }
 0x248   : > { %3253 = vmatprep.mubr.f32.mxu0 %v1459_v25  ;;  %3341 = vmatpush3.msra.mxu0 %v1630_v56  ;;  %v2132_v25 = vld [vmem:[%s5187_s11 + $0x38] sm:$0xff]  ;;  %v2127_v56 = vld [vmem:[%s5187_s11 + $0x10] sm:$0xff] }
 0x249   : > { %v1460_v30 = vmul.f32 %v1442_v3, %v1012_v45  ;;  %3286 = vmatprep.subr.mxu1 %v1629_v6  ;;  %3342 = vmatprep.subr.mxu0 %v1629_v6  ;;  %v2131_v3 = vld [vmem:[%s5187_s11 + $0x30] sm:$0xff]  ;;  %v2130_v45 = vld [vmem:[%s5187_s11 + $0x28] sm:$0xff] }
 0x24a   : > { %3287 = vmatpush3.msra.mxu1 %v1629_v6  ;;  %3343 = vmatpush3.msra.mxu0 %v1629_v6  ;;  %v2126_v6 = vld [vmem:[%s5187_s11 + $0x8] sm:$0xff] }
 0x24b   : > { %3254 = vmatmul.mubr.f32.gmra.mxu0 %v1460_v30  ;;  %3368 = vmatprep.subr.mxu1 %v2140_v10  ;;  %v2129_v30 = vld [vmem:[%s5187_s11 + $0x20] sm:$0xff] }
 0x2eb   : > { %v3234_v7 = vpop.f32.mrf.mxu0 }
 0x2ec   : > { %v4801_v16 = vadd.f32 %v3234_v7, %v4798_v37  ;;  %v2308_v7 = vld [vmem:[#allocation10 + $0x78] sm:$0xff] }
 0x2ed   : > { %v1550_v60 = vpop.f32.mrf.mxu0  ;;  %3424 = vmatprep.subr.mxu0 %v2308_v7 }
 0x2ee   : > { %v4804_v34 = vadd.f32 %v4798_v37, %v1550_v60  ;;  %v1791_v4 = vmul.f32 %v4801_v16, %v4801_v16  ;;  %v2307_v60 = vld [vmem:[#allocation10 + $0x70] sm:$0xff] }
 0x2f0   : > { %3288 = vmatprep.mubr.f32.mxu1 %v4804_v34  ;;  %v1790_v46 = vmul.f32 %v4804_v34, %v4804_v34 }
 0x2f1   : > { %3289 = vmatmul.mubr.f32.vlgmr.msra.gmra.mxu1 %v4801_v16 }
 0x2f2   : > { %3344 = vmatprep.mubr.f32.mxu0 %v1790_v46  ;;  %3369 = vmatpush3.msra.mxu1 %v2140_v10  ;;  %v2306_v46 = vld [vmem:[#allocation10 + $0x68] sm:$0xff] }
 0x2f3   : > { %v3237_v35 = vpop.f32.mrf.mxu0  ;;  %3345 = vmatmul.mubr.f32.vlgmr.msra.gmra.mxu0 %v1791_v4  ;;  %3370 = vmatprep.subr.mxu1 %v2139_v20  ;;  %v2305_v4 = vld [vmem:[#allocation10 + $0x60] sm:$0xff] }
 0x2f4   : > { %v4813_v38 = vadd.f32 %v3237_v35, %v4798_v37  ;;  %3371 = vmatpush3.msra.mxu1 %v2139_v20  ;;  %3425 = vmatpush3.msra.mxu0 %v2308_v7  ;;  %v2304_v35 = vld [vmem:[#allocation10 + $0x58] sm:$0xff] }
 0x2f5   : > { %v1560_v57 = vpop.f32.mrf.mxu0  ;;  %3372 = vmatprep.subr.mxu1 %v2138_v22  ;;  %3426 = vmatprep.subr.mxu0 %v2307_v60 }
 0x2f6   : > { %v4816_v29 = vadd.f32 %v4798_v37, %v1560_v57  ;;  %v1793_v42 = vmul.f32 %v4813_v38, %v4813_v38  ;;  %3373 = vmatpush3.msra.mxu1 %v2138_v22  ;;  %3427 = vmatpush3.msra.mxu0 %v2307_v60  ;;  %v2303_v57 = vld [vmem:[#allocation10 + $0x50] sm:$0xff] }
 0x2f7   : > { %v3240_v8 = vpop.f32.mrf.mxu0  ;;  %3374 = vmatprep.subr.mxu1 %v2137_v17  ;;  %3428 = vmatprep.subr.mxu0 %v2306_v46 }
 0x2f8   : > { %3291 = vmatprep.mubr.f32.mxu1 %v4816_v29  ;;  %v1792_v53 = vmul.f32 %v4816_v29, %v4816_v29  ;;  %v4822_v41 = vadd.f32 %v3240_v8, %v4798_v37  ;;  %3375 = vmatpush3.msra.mxu1 %v2137_v17  ;;  %v2302_v8 = vld [vmem:[#allocation10 + $0x48] sm:$0xff] }
 0x2f9   : > { %v1570_v47 = vpop.f32.mrf.mxu0  ;;  %3292 = vmatmul.mubr.f32.gmra.mxu1 %v4813_v38  ;;  %3376 = vmatprep.subr.mxu1 %v2136_v52 }
 0x2fa   : > { %v4828_v58 = vadd.f32 %v4798_v37, %v1570_v47  ;;  %3347 = vmatprep.mubr.f32.mxu0 %v1792_v53  ;;  %v1795_v61 = vmul.f32 %v4822_v41, %v4822_v41  ;;  %3377 = vmatpush3.msra.mxu1 %v2136_v52  ;;  %v2301_v53 = vld [vmem:[#allocation10 + $0x40] sm:$0xff]  ;;  %v2300_v47 = vld [vmem:[#allocation10 + $0x38] sm:$0xff] }
 0x2fb   : > { %v3243_v14 = vpop.f32.mrf.mxu0  ;;  %3348 = vmatmul.mubr.f32.gmra.mxu0 %v1793_v42  ;;  %3378 = vmatprep.subr.mxu1 %v2135_v1  ;;  %v2299_v42 = vld [vmem:[#allocation10 + $0x30] sm:$0xff] }
 0x2fc   : > { %3294 = vmatprep.mubr.f32.mxu1 %v4828_v58  ;;  %v1794_v21 = vmul.f32 %v4828_v58, %v4828_v58  ;;  %v4834_v49 = vadd.f32 %v3243_v14, %v4798_v37  ;;  %3379 = vmatpush3.msra.mxu1 %v2135_v1  ;;  %v2298_v14 = vld [vmem:[#allocation10 + $0x28] sm:$0xff] }
 0x2fd   : > { %v1580_v44 = vpop.f32.mrf.mxu0  ;;  %3295 = vmatmul.mubr.f32.gmra.mxu1 %v4822_v41  ;;  %3380 = vmatprep.subr.mxu1 %v2134_v23 }
 0x2fe   : > { %v4840_v33 = vadd.f32 %v4798_v37, %v1580_v44  ;;  %3350 = vmatprep.mubr.f32.mxu0 %v1794_v21  ;;  %v1797_v5 = vmul.f32 %v4834_v49, %v4834_v49  ;;  %3381 = vmatpush3.msra.mxu1 %v2134_v23  ;;  %v2297_v21 = vld [vmem:[#allocation10 + $0x20] sm:$0xff]  ;;  %v2296_v44 = vld [vmem:[#allocation10 + $0x18] sm:$0xff] }
 0x2ff   : > { %v3246_v40 = vpop.f32.mrf.mxu0  ;;  %3351 = vmatmul.mubr.f32.gmra.mxu0 %v1795_v61  ;;  %3382 = vmatprep.subr.mxu1 %v2133_v24 }
 0x300   : > { %3297 = vmatprep.mubr.f32.mxu1 %v4840_v33  ;;  %v1796_v19 = vmul.f32 %v4840_v33, %v4840_v33  ;;  %v4846_v48 = vadd.f32 %v3246_v40, %v4798_v37  ;;  %3383 = vmatpush3.msra.mxu1 %v2133_v24 }
 0x301   : > { %v1590_v27 = vpop.f32.mrf.mxu0  ;;  %3298 = vmatmul.mubr.f32.gmra.mxu1 %v4834_v49  ;;  %3384 = vmatprep.subr.mxu1 %v2132_v25 }
 0x302   : > { %v4852_v31 = vadd.f32 %v4798_v37, %v1590_v27  ;;  %3353 = vmatprep.mubr.f32.mxu0 %v1796_v19  ;;  %v1799_v54 = vmul.f32 %v4846_v48, %v4846_v48  ;;  %3385 = vmatpush3.msra.mxu1 %v2132_v25 }
 0x303   : > { %v3249_v59 = vpop.f32.mrf.mxu0  ;;  %3354 = vmatmul.mubr.f32.gmra.mxu0 %v1797_v5  ;;  %3386 = vmatprep.subr.mxu1 %v2131_v3 }
 0x304   : > { %3300 = vmatprep.mubr.f32.mxu1 %v4852_v31  ;;  %v1798_v11 = vmul.f32 %v4852_v31, %v4852_v31  ;;  %v4858_v26 = vadd.f32 %v3249_v59, %v4798_v37  ;;  %3387 = vmatpush3.msra.mxu1 %v2131_v3 }
 0x305   : > { %v1600_v15 = vpop.f32.mrf.mxu0  ;;  %3301 = vmatmul.mubr.f32.gmra.mxu1 %v4846_v48  ;;  %3388 = vmatprep.subr.mxu1 %v2130_v45 }
 0x306   : > { %v4864_v63 = vadd.f32 %v4798_v37, %v1600_v15  ;;  %3356 = vmatprep.mubr.f32.mxu0 %v1798_v11  ;;  %v1801_v39 = vmul.f32 %v4858_v26, %v4858_v26  ;;  %3389 = vmatpush3.msra.mxu1 %v2130_v45 }
 0x307   : > { %v3252_v62 = vpop.f32.mrf.mxu0  ;;  %3357 = vmatmul.mubr.f32.gmra.mxu0 %v1799_v54  ;;  %3390 = vmatprep.subr.mxu1 %v2129_v30 }
 0x308   : > { %3303 = vmatprep.mubr.f32.mxu1 %v4864_v63  ;;  %v1800_v50 = vmul.f32 %v4864_v63, %v4864_v63  ;;  %v4870_v36 = vadd.f32 %v3252_v62, %v4798_v37  ;;  %3391 = vmatpush3.msra.mxu1 %v2129_v30 }
 0x309   : > { %v1610_v9 = vpop.f32.mrf.mxu0  ;;  %3304 = vmatmul.mubr.f32.gmra.mxu1 %v4858_v26  ;;  %3392 = vmatprep.subr.mxu1 %v2128_v28 }
 0x30a   : > { %v4876_v12 = vadd.f32 %v4798_v37, %v1610_v9  ;;  %3359 = vmatprep.mubr.f32.mxu0 %v1800_v50  ;;  %v1803_v55 = vmul.f32 %v4870_v36, %v4870_v36  ;;  %3393 = vmatpush3.msra.mxu1 %v2128_v28 }
 0x30b   : > { %v3255_v43 = vpop.f32.mrf.mxu0  ;;  %3360 = vmatmul.mubr.f32.gmra.mxu0 %v1801_v39  ;;  %3394 = vmatprep.subr.mxu1 %v2127_v56 }
 0x30c   : > { %3306 = vmatprep.mubr.f32.mxu1 %v4876_v12  ;;  %v1802_v32 = vmul.f32 %v4876_v12, %v4876_v12  ;;  %v4882_v51 = vadd.f32 %v3255_v43, %v4798_v37  ;;  %3395 = vmatpush3.msra.mxu1 %v2127_v56 }
 0x30d   : > { %v1620_v13 = vpop.f32.mrf.mxu0  ;;  %3307 = vmatmul.mubr.f32.gmra.mxu1 %v4870_v36  ;;  %3396 = vmatprep.subr.mxu1 %v2126_v6 }
 0x30e   : > { %v4888_v2 = vadd.f32 %v4798_v37, %v1620_v13  ;;  %3362 = vmatprep.mubr.f32.mxu0 %v1802_v32  ;;  %v1805_v0 = vmul.f32 %v4882_v51, %v4882_v51  ;;  %3397 = vmatpush3.msra.mxu1 %v2126_v6  ;;  %v2125_v37 = vld [vmem:[%s5187_s11] sm:$0xff] }
 0x30f   : > { %3363 = vmatmul.mubr.f32.gmra.mxu0 %v1803_v55  ;;  %3398 = vmatprep.subr.mxu1 %v2125_v37 }
 0x310   : > { %3309 = vmatprep.mubr.f32.mxu1 %v4888_v2  ;;  %v1804_v18 = vmul.f32 %v4888_v2, %v4888_v2  ;;  %3399 = vmatpush3.msra.mxu1 %v2125_v37 }
 0x311   : > { %3310 = vmatmul.mubr.f32.gmra.mxu1 %v4882_v51  ;;  %3429 = vmatpush3.msra.mxu0 %v2306_v46 }
 0x312   : > { %3365 = vmatprep.mubr.f32.mxu0 %v1804_v18  ;;  %3430 = vmatprep.subr.mxu0 %v2305_v4 }
 0x313   : > { %3366 = vmatmul.mubr.f32.gmra.mxu0 %v1805_v0 }
 0x314   : > { %3431 = vmatpush3.msra.mxu0 %v2305_v4 }
 0x315   : > { %3432 = vmatprep.subr.mxu0 %v2304_v35 }
 0x316   : > { %3433 = vmatpush3.msra.mxu0 %v2304_v35 }
 0x317   : > { %3434 = vmatprep.subr.mxu0 %v2303_v57 }
 0x318   : > { %3435 = vmatpush3.msra.mxu0 %v2303_v57 }
 0x319   : > { %3436 = vmatprep.subr.mxu0 %v2302_v8 }
 0x31a   : > { %3437 = vmatpush3.msra.mxu0 %v2302_v8 }
 0x31b   : > { %3438 = vmatprep.subr.mxu0 %v2301_v53 }
 0x31c   : > { %3439 = vmatpush3.msra.mxu0 %v2301_v53 }
 0x31d   : > { %3440 = vmatprep.subr.mxu0 %v2300_v47 }
 0x31e   : > { %3441 = vmatpush3.msra.mxu0 %v2300_v47 }
 0x31f   : > { %3442 = vmatprep.subr.mxu0 %v2299_v42 }
 0x320   : > { %3443 = vmatpush3.msra.mxu0 %v2299_v42 }
 0x321   : > { %3444 = vmatprep.subr.mxu0 %v2298_v14 }
 0x322   : > { %3445 = vmatpush3.msra.mxu0 %v2298_v14 }
 0x323   : > { %3446 = vmatprep.subr.mxu0 %v2297_v21 }
 0x324   : > { %3447 = vmatpush3.msra.mxu0 %v2297_v21 }
 0x325   : > { %3448 = vmatprep.subr.mxu0 %v2296_v44 }
 0x326   : > { %3449 = vmatpush3.msra.mxu0 %v2296_v44 }
 0x3b1   : > { %v3290_v61 = vpop.f32.mrf.mxu1 }
 0x3b2   : > { %v1952_v40 = vmul.f32 %v3290_v61, %v3290_v61  ;;  %v2000_v47 = vsub.f32 %v4801_v16, %v3290_v61  ;;  %v4984_v16 = vld [vmem:[%s5185_s9] ss:$0 sm:$0xff] }
 0x3b3   : > { %v4944_v19 = vpop.f32.mrf.mxu1  ;;  %v3346_v27 = vpop.f32.mrf.mxu0 }
 0x3b4   : > { %v1951_v5 = vmul.f32 %v4944_v19, %v4944_v19  ;;  %v1968_v59 = vsub.f32 %v3346_v27, %v1952_v40 }
 0x3b5   : > { %v1872_v11 = vpop.f32.mrf.mxu0 }
 0x3b6   : > { %v1984_v15 = vmax.f32 %v1968_v59, 0.0  ;;  %v1967_v54 = vsub.f32 %v1872_v11, %v1951_v5 }
 0x3b8   : > { %v2016_v62 = vadd.f32 1e-05, %v1984_v15  ;;  %v1983_v50 = vmax.f32 %v1967_v54, 0.0 }
 0x3b9   : > { %v4948_v9 = vpop.f32.mrf.mxu1 }
 0x3ba   : > { %3673 = vrsqrt.f32 %v2016_v62  ;;  %v2015_v39 = vadd.f32 1e-05, %v1983_v50  ;;  %v1954_v43 = vmul.f32 %v4948_v9, %v4948_v9  ;;  %v1999_v62 = vsub.f32 %v4804_v34, %v4944_v19  ;;  %v4997_v34 = vld [vmem:[%s5186_s10] ss:$0 sm:$0xff] }
 0x3bb   : > { %v4952_v32 = vpop.f32.mrf.mxu1  ;;  %v3349_v13 = vpop.f32.mrf.mxu0 }
 0x3bc   : > { %3675 = vrsqrt.f32 %v2015_v39  ;;  %v1953_v55 = vmul.f32 %v4952_v32, %v4952_v32  ;;  %v1970_v18 = vsub.f32 %v3349_v13, %v1954_v43 }
 0x3bd   : > { %v4956_v0 = vpop.f32.mrf.mxu1  ;;  %v1882_v10 = vpop.f32.mrf.mxu0 }
 0x3be   : > { %v1986_v20 = vmax.f32 %v1970_v18, 0.0  ;;  %v1956_v22 = vmul.f32 %v4956_v0, %v4956_v0  ;;  %v1969_v17 = vsub.f32 %v1882_v10, %v1953_v55 }
 0x3bf   : > { %v4960_v52 = vpop.f32.mrf.mxu1  ;;  %v3352_v1 = vpop.f32.mrf.mxu0 }
 0x3c0   : > { %v2018_v23 = vadd.f32 1e-05, %v1986_v20  ;;  %v1985_v24 = vmax.f32 %v1969_v17, 0.0  ;;  %v1955_v25 = vmul.f32 %v4960_v52, %v4960_v52  ;;  %v1972_v3 = vsub.f32 %v3352_v1, %v1956_v22 }
 0x3c1   : > { %v4964_v45 = vpop.f32.mrf.mxu1  ;;  %v1892_v30 = vpop.f32.mrf.mxu0 }
 0x3c2   : > { %3677 = vrsqrt.f32 %v2018_v23  ;;  %v2017_v28 = vadd.f32 1e-05, %v1985_v24  ;;  %v1958_v56 = vmul.f32 %v4964_v45, %v4964_v45  ;;  %v1988_v6 = vmax.f32 %v1972_v3, 0.0 }
 0x3c3   : > { %v1971_v37 = vsub.f32 %v1892_v30, %v1955_v25  ;;  %v4968_v7 = vpop.f32.mrf.mxu1  ;;  %v3355_v60 = vpop.f32.mrf.mxu0  ;;  %v2002_v24 = vsub.f32 %v4813_v38, %v4948_v9 }
 0x3c4   : > { %3679 = vrsqrt.f32 %v2017_v28  ;;  %v1957_v46 = vmul.f32 %v4968_v7, %v4968_v7  ;;  %v1974_v4 = vsub.f32 %v3355_v60, %v1958_v56  ;;  %v2020_v35 = vadd.f32 1e-05, %v1988_v6 }
 0x3c5   : > { %v1987_v57 = vmax.f32 %v1971_v37, 0.0  ;;  %v4972_v8 = vpop.f32.mrf.mxu1  ;;  %v1902_v53 = vpop.f32.mrf.mxu0 }
 0x3c6   : > { %v1990_v42 = vmax.f32 %v1974_v4, 0.0  ;;  %v1960_v14 = vmul.f32 %v4972_v8, %v4972_v8  ;;  %v1973_v21 = vsub.f32 %v1902_v53, %v1957_v46  ;;  %3681 = vrsqrt.f32 %v2020_v35 }
 0x3c7   : > { %v3674_v44 = vpop.eup %3673  ;;  %v2019_v40 = vadd.f32 1e-05, %v1987_v57  ;;  %v4977_v27 = vpop.f32.mrf.mxu1  ;;  %v2001_v35 = vsub.f32 %v4816_v29, %v4952_v32 }
 0x3c8   : > { %v3358_v5 = vpop.f32.mrf.mxu0  ;;  %v2048_v59 = vmul.f32 %v3674_v44, %v2000_v47  ;;  %v2022_v11 = vadd.f32 1e-05, %v1990_v42  ;;  %v1989_v15 = vmax.f32 %v1973_v21, 0.0  ;;  %v1959_v54 = vmul.f32 %v4977_v27, %v4977_v27 }
 0x3c9   : > { %v3676_v61 = vpop.eup %3675  ;;  %3683 = vrsqrt.f32 %v2019_v40  ;;  %v1976_v50 = vsub.f32 %v3358_v5, %v1960_v14  ;;  %v4988_v39 = vpop.f32.mrf.mxu1  ;;  %v2004_v47 = vsub.f32 %v4822_v41, %v4956_v0 }
 0x3ca   : > { %v1912_v43 = vpop.f32.mrf.mxu0  ;;  %3685 = vrsqrt.f32 %v2022_v11  ;;  %v2021_v13 = vadd.f32 1e-05, %v1989_v15  ;;  %v1962_v55 = vmul.f32 %v4988_v39, %v4988_v39  ;;  %v2047_v17 = vmul.f32 %v3676_v61, %v1999_v62 }
 0x3cb   : > { %v1992_v18 = vmax.f32 %v1976_v50, 0.0  ;;  %v1975_v10 = vsub.f32 %v1912_v43, %v1959_v54  ;;  %v4992_v20 = vpop.f32.mrf.mxu1  ;;  %v2071_v19 = vmul.f32 %v4984_v16, %v2048_v59 }
 0x3cc   : > { %v3361_v22 = vpop.f32.mrf.mxu0  ;;  %3687 = vrsqrt.f32 %v2021_v13  ;;  %v1961_v1 = vmul.f32 %v4992_v20, %v4992_v20  ;;  %v2070_v56 = vmul.f32 %v4984_v16, %v2047_v17 }
 0x3cd   : > { %v1978_v23 = vsub.f32 %v3361_v22, %v1962_v55  ;;  %v2024_v25 = vadd.f32 1e-05, %v1992_v18  ;;  %v1991_v3 = vmax.f32 %v1975_v10, 0.0  ;;  %v5004_v30 = vpop.f32.mrf.mxu1  ;;  %v2094_v46 = vadd.f32 %v4997_v34, %v2071_v19 }
 0x3ce   : > { %v1922_v28 = vpop.f32.mrf.mxu0  ;;  %v1964_v37 = vmul.f32 %v5004_v30, %v5004_v30  ;;  %v2093_v53 = vadd.f32 %v4997_v34, %v2070_v56  ;;  %v2003_v55 = vsub.f32 %v4828_v58, %v4960_v52  ;;  %v2005_v56 = vsub.f32 %v4840_v33, %v4968_v7 }
 0x3cf   : > { %v1994_v6 = vmax.f32 %v1978_v23, 0.0  ;;  %v1977_v60 = vsub.f32 %v1922_v28, %v1961_v1  ;;  %v3678_v4 = vpop.eup %3677  ;;  %3689 = vrsqrt.f32 %v2024_v25  ;;  %v2023_v38 = vadd.f32 1e-05, %v1991_v3  ;;  %v5012_v9 = vpop.f32.mrf.mxu1 }
 0x3d0   : > { %v3364_v57 = vpop.f32.mrf.mxu0  ;;  %v1963_v21 = vmul.f32 %v5012_v9, %v5012_v9  ;;  %v2109_v32 = vmax.f32 %v2093_v53, 0.0  ;;  %v2050_v59 = vmul.f32 %v3678_v4, %v2002_v24  ;;  %v2110_v54 = vmax.f32 %v2094_v46, 0.0 }
 0x3d1   : > { %v2026_v42 = vadd.f32 1e-05, %v1994_v6  ;;  %v1993_v14 = vmax.f32 %v1977_v60, 0.0  ;;  %v3680_v44 = vpop.eup %3679  ;;  %3691 = vrsqrt.f32 %v2023_v38  ;;  %v1980_v40 = vsub.f32 %v3364_v57, %v1964_v37  ;;  %v5019_v5 = vpop.f32.mrf.mxu1 }
 0x3d2   : > { %v1932_v29 = vpop.f32.mrf.mxu0  ;;  %v1966_v15 = vmul.f32 %v5019_v5, %v5019_v5  ;;  %3400 = vmatprep.mubr.f32.mxu1 %v2109_v32  ;;  %v2049_v50 = vmul.f32 %v3680_v44, %v2001_v35  ;;  %v2073_v43 = vmul.f32 %v4984_v16, %v2050_v59  ;;  %v2006_v25 = vsub.f32 %v4834_v49, %v4964_v45 }
 0x3d3   : > { %3693 = vrsqrt.f32 %v2026_v42  ;;  %v2025_v11 = vadd.f32 1e-05, %v1993_v14  ;;  %v1996_v41 = vmax.f32 %v1980_v40, 0.0  ;;  %v1979_v0 = vsub.f32 %v1932_v29, %v1963_v21  ;;  %v5023_v61 = vpop.f32.mrf.mxu1  ;;  %v3682_v13 = vpop.eup %3681  ;;  %3401 = vmatmul.mubr.f32.vlgmr.msra.gmra.mxu1 %v2110_v54 }
 0x3d4   : > { %v3367_v62 = vpop.f32.mrf.mxu0  ;;  %v1965_v18 = vmul.f32 %v5023_v61, %v5023_v61  ;;  %v2072_v1 = vmul.f32 %v4984_v16, %v2049_v50  ;;  %v2096_v23 = vadd.f32 %v4997_v34, %v2073_v43  ;;  %v2052_v58 = vmul.f32 %v3682_v13, %v2004_v47 }
 0x3d5   : > { %3695 = vrsqrt.f32 %v2025_v11  ;;  %v1982_v10 = vsub.f32 %v3367_v62, %v1966_v15  ;;  %v2028_v22 = vadd.f32 1e-05, %v1996_v41  ;;  %v1995_v17 = vmax.f32 %v1979_v0, 0.0 }
 0x3d6   : > { %v1942_v19 = vpop.f32.mrf.mxu0  ;;  %v3684_v24 = vpop.eup %3683  ;;  %v2095_v37 = vadd.f32 %v4997_v34, %v2072_v1  ;;  %v2075_v35 = vmul.f32 %v4984_v16, %v2052_v58  ;;  %v2112_v49 = vmax.f32 %v2096_v23, 0.0  ;;  %v2008_v7 = vsub.f32 %v4846_v48, %v4972_v8 }
 0x3d7   : > { %v1998_v3 = vmax.f32 %v1982_v10, 0.0  ;;  %v1981_v28 = vsub.f32 %v1942_v19, %v1965_v18  ;;  %v3686_v52 = vpop.eup %3685  ;;  %3697 = vrsqrt.f32 %v2028_v22  ;;  %v2027_v6 = vadd.f32 1e-05, %v1995_v17 }
 0x3d8   : > { %v2051_v4 = vmul.f32 %v3684_v24, %v2003_v55  ;;  %v2111_v57 = vmax.f32 %v2095_v37, 0.0  ;;  %v2054_v45 = vmul.f32 %v3686_v52, %v2006_v25  ;;  %v2098_v33 = vadd.f32 %v4997_v34, %v2075_v35 }
 0x3d9   : > { %v2030_v60 = vadd.f32 1e-05, %v1998_v3  ;;  %v1997_v46 = vmax.f32 %v1981_v28, 0.0  ;;  %v3688_v38 = vpop.eup %3687  ;;  %3699 = vrsqrt.f32 %v2027_v6  ;;  %v2007_v40 = vsub.f32 %v4852_v31, %v4977_v27 }
 0x3da   : > { %v2074_v47 = vmul.f32 %v4984_v16, %v2051_v4  ;;  %3403 = vmatprep.mubr.f32.mxu1 %v2111_v57  ;;  %v2053_v42 = vmul.f32 %v3688_v38, %v2005_v56  ;;  %v2077_v14 = vmul.f32 %v4984_v16, %v2054_v45  ;;  %v2010_v11 = vsub.f32 %v4858_v26, %v4988_v39  ;;  %v2295_v45 = vld [vmem:[#allocation10 + $0x10] sm:$0xff] }
 0x3db   : > { %3701 = vrsqrt.f32 %v2030_v60  ;;  %v2029_v53 = vadd.f32 1e-05, %v1997_v46  ;;  %3404 = vmatmul.mubr.f32.gmra.mxu1 %v2112_v49  ;;  %v2114_v8 = vmax.f32 %v2098_v33, 0.0  ;;  %v2009_v31 = vsub.f32 %v4864_v63, %v4992_v20  ;;  %3450 = vmatprep.subr.mxu0 %v2295_v45  ;;  %v2491_v33 = vld [vmem:[#allocation11 + $0x70] sm:$0xff] }
 0x3dc   : > { %v3690_v21 = vpop.eup %3689  ;;  %v2097_v44 = vadd.f32 %v4997_v34, %v2074_v47  ;;  %v2076_v29 = vmul.f32 %v4984_v16, %v2053_v42  ;;  %v2100_v41 = vadd.f32 %v4997_v34, %v2077_v14  ;;  %v2012_v39 = vsub.f32 %v4870_v36, %v5004_v30  ;;  %3451 = vmatpush3.msra.mxu0 %v2295_v45  ;;  %v2293_v47 = vld [vmem:[#allocation10] sm:$0xff]  ;;  %v2488_v42 = vld [vmem:[#allocation11 + $0x58] sm:$0xff]  ;;  %v2487_v14 = vld [vmem:[#allocation11 + $0x50] sm:$0xff] }
 0x3dd   : > { %3703 = vrsqrt.f32 %v2029_v53  ;;  %v2056_v32 = vmul.f32 %v3690_v21, %v2008_v7  ;;  %v2011_v17 = vsub.f32 %v4876_v12, %v5012_v9  ;;  %v2014_v36 = vsub.f32 %v4882_v51, %v5019_v5  ;;  %v2294_v53 = vld [vmem:[#allocation10 + $0x8] sm:$0xff] }
 0x3de   : > { %v3692_v59 = vpop.eup %3691  ;;  %v2113_v48 = vmax.f32 %v2097_v44, 0.0  ;;  %v2099_v54 = vadd.f32 %v4997_v34, %v2076_v29  ;;  %v2116_v55 = vmax.f32 %v2100_v41, 0.0  ;;  %v2013_v12 = vsub.f32 %v4888_v2, %v5023_v61  ;;  %3452 = vmatprep.subr.mxu0 %v2294_v53  ;;  %v2490_v7 = vld [vmem:[#allocation11 + $0x68] sm:$0xff]  ;;  %v2485_v44 = vld [vmem:[#allocation11 + $0x40] sm:$0xff]  ;;  %v2483_v29 = vld [vmem:[#allocation11 + $0x30] sm:$0xff] }
 0x3df   : > { %v2055_v0 = vmul.f32 %v3692_v59, %v2007_v40  ;;  %v2079_v62 = vmul.f32 %v4984_v16, %v2056_v32  ;;  %3453 = vmatpush3.msra.mxu0 %v2294_v53  ;;  %v2486_v21 = vld [vmem:[#allocation11 + $0x48] sm:$0xff]  ;;  %v2484_v40 = vld [vmem:[#allocation11 + $0x38] sm:$0xff]  ;;  %v2481_v59 = vld [vmem:[#allocation11 + $0x20] sm:$0xff] }
 0x3e0   : > { %v3694_v15 = vpop.eup %3693  ;;  %3406 = vmatprep.mubr.f32.mxu1 %v2113_v48  ;;  %v2115_v43 = vmax.f32 %v2099_v54, 0.0  ;;  %3454 = vmatprep.subr.mxu0 %v2293_v47  ;;  %v2482_v32 = vld [vmem:[#allocation11 + $0x28] sm:$0xff]  ;;  %v2871_v48 = vld [vmem:[%s5188_s12] ss:$0 sm:$0xff] }
 0x3e1   : > { %v2058_v27 = vmul.f32 %v3694_v15, %v2010_v11  ;;  %3407 = vmatmul.mubr.f32.gmra.mxu1 %v2114_v8  ;;  %v2078_v26 = vmul.f32 %v4984_v16, %v2055_v0  ;;  %v2102_v10 = vadd.f32 %v4997_v34, %v2079_v62  ;;  %3455 = vmatpush3.msra.mxu0 %v2293_v47 }
 0x3e2   : > { %v3696_v50 = vpop.eup %3695  ;;  %3409 = vmatprep.mubr.f32.mxu1 %v2115_v43 }
 0x3e3   : > { %v2057_v13 = vmul.f32 %v3696_v50, %v2009_v31  ;;  %v2101_v18 = vadd.f32 %v4997_v34, %v2078_v26  ;;  %v2081_v22 = vmul.f32 %v4984_v16, %v2058_v27  ;;  %v2118_v25 = vmax.f32 %v2102_v10, 0.0 }
 0x3e4   : > { %v3698_v63 = vpop.eup %3697 }
 0x3e5   : > { %v2080_v20 = vmul.f32 %v4984_v16, %v2057_v13  ;;  %3410 = vmatmul.mubr.f32.gmra.mxu1 %v2116_v55  ;;  %v2117_v19 = vmax.f32 %v2101_v18, 0.0  ;;  %v2060_v1 = vmul.f32 %v3698_v63, %v2012_v39  ;;  %v2104_v3 = vadd.f32 %v4997_v34, %v2081_v22 }
 0x3e6   : > { %v3700_v23 = vpop.eup %3699 }
 0x3e7   : > { %v2103_v30 = vadd.f32 %v4997_v34, %v2080_v20  ;;  %3412 = vmatprep.mubr.f32.mxu1 %v2117_v19  ;;  %v2059_v28 = vmul.f32 %v3700_v23, %v2011_v17  ;;  %v2083_v58 = vmul.f32 %v4984_v16, %v2060_v1  ;;  %v2120_v5 = vmax.f32 %v2104_v3, 0.0 }
 0x3e8   : > { %v3702_v24 = vpop.eup %3701 }
 0x3e9   : > { %v2119_v9 = vmax.f32 %v2103_v30, 0.0  ;;  %v2062_v52 = vmul.f32 %v3702_v24, %v2014_v36  ;;  %3413 = vmatmul.mubr.f32.gmra.mxu1 %v2118_v25  ;;  %v2082_v6 = vmul.f32 %v4984_v16, %v2059_v28  ;;  %v2106_v60 = vadd.f32 %v4997_v34, %v2083_v58 }
 0x3ea   : > { %v3704_v56 = vpop.eup %3703 }
 0x3eb   : > { %3415 = vmatprep.mubr.f32.mxu1 %v2119_v9  ;;  %v2061_v51 = vmul.f32 %v3704_v56, %v2013_v12  ;;  %v2105_v37 = vadd.f32 %v4997_v34, %v2082_v6  ;;  %v2085_v46 = vmul.f32 %v4984_v16, %v2062_v52  ;;  %v2122_v61 = vmax.f32 %v2106_v60, 0.0  ;;  %v2480_v9 = vld [vmem:[#allocation11 + $0x18] sm:$0xff]  ;;  %v2479_v52 = vld [vmem:[#allocation11 + $0x10] sm:$0xff]  ;;  %v2478_v56 = vld [vmem:[#allocation11 + $0x8] sm:$0xff] }
 0x3ec   : > { %v2477_v6 = vld [vmem:[#allocation11] sm:$0xff] }
 0x3ed   : > { %v2084_v4 = vmul.f32 %v4984_v16, %v2061_v51  ;;  %3416 = vmatmul.mubr.f32.gmra.mxu1 %v2120_v5  ;;  %v2121_v35 = vmax.f32 %v2105_v37, 0.0  ;;  %v2108_v38 = vadd.f32 %v4997_v34, %v2085_v46  ;;  %v2492_v16 = vld [vmem:[#allocation11 + $0x78] sm:$0xff] }
 0x3ee   : > { %3480 = vmatprep.subr.mxu1 %v2492_v16  ;;  %v2872_v51 = vld [vmem:[%s5191_s15] ss:$0 sm:$0xff] }
 0x3ef   : > { %v2107_v2 = vadd.f32 %v4997_v34, %v2084_v4  ;;  %3418 = vmatprep.mubr.f32.mxu1 %v2121_v35  ;;  %v2124_v49 = vmax.f32 %v2108_v38, 0.0  ;;  %3481 = vmatpush3.msra.mxu1 %v2492_v16  ;;  %v2489_v34 = vld [vmem:[#allocation11 + $0x60] sm:$0xff] }
 0x3f0   : > { %3482 = vmatprep.subr.mxu1 %v2491_v33 }
 0x3f1   : > { %v2123_v57 = vmax.f32 %v2107_v2, 0.0  ;;  %3419 = vmatmul.mubr.f32.gmra.mxu1 %v2122_v61 }
 0x3f2   : > { %3483 = vmatpush3.msra.mxu1 %v2491_v33 }
 0x3f3   : > { %3421 = vmatprep.mubr.f32.mxu1 %v2123_v57  ;;  %3484 = vmatprep.subr.mxu1 %v2490_v7 }
 0x3f4   : > { %3485 = vmatpush3.msra.mxu1 %v2490_v7 }
 0x3f5   : > { %3422 = vmatmul.mubr.f32.gmra.mxu1 %v2124_v49  ;;  %3486 = vmatprep.subr.mxu1 %v2489_v34 }
 0x3f6   : > { %3487 = vmatpush3.msra.mxu1 %v2489_v34 }
 0x3f7   : > { %3488 = vmatprep.subr.mxu1 %v2488_v42 }
 0x3f8   : > { %3489 = vmatpush3.msra.mxu1 %v2488_v42 }
 0x3f9   : > { %3490 = vmatprep.subr.mxu1 %v2487_v14 }
 0x3fa   : > { %3491 = vmatpush3.msra.mxu1 %v2487_v14 }
 0x3fb   : > { %3492 = vmatprep.subr.mxu1 %v2486_v21 }
 0x3fc   : > { %3493 = vmatpush3.msra.mxu1 %v2486_v21 }
 0x3fd   : > { %3494 = vmatprep.subr.mxu1 %v2485_v44 }
 0x3fe   : > { %3495 = vmatpush3.msra.mxu1 %v2485_v44 }
 0x3ff   : > { %3496 = vmatprep.subr.mxu1 %v2484_v40 }
 0x400   : > { %3497 = vmatpush3.msra.mxu1 %v2484_v40 }
 0x401   : > { %3498 = vmatprep.subr.mxu1 %v2483_v29 }
 0x402   : > { %3499 = vmatpush3.msra.mxu1 %v2483_v29 }
 0x403   : > { %3500 = vmatprep.subr.mxu1 %v2482_v32 }
 0x404   : > { %3501 = vmatpush3.msra.mxu1 %v2482_v32 }
 0x405   : > { %3502 = vmatprep.subr.mxu1 %v2481_v59 }
 0x406   : > { %3503 = vmatpush3.msra.mxu1 %v2481_v59 }
 0x407   : > { %3504 = vmatprep.subr.mxu1 %v2480_v9 }
 0x408   : > { %3505 = vmatpush3.msra.mxu1 %v2480_v9 }
 0x409   : > { %3506 = vmatprep.subr.mxu1 %v2479_v52 }
 0x40a   : > { %3507 = vmatpush3.msra.mxu1 %v2479_v52 }
 0x40b   : > { %3508 = vmatprep.subr.mxu1 %v2478_v56 }
 0x40c   : > { %3509 = vmatpush3.msra.mxu1 %v2478_v56 }
 0x40d   : > { %3510 = vmatprep.subr.mxu1 %v2477_v6 }
 0x40e   : > { %3511 = vmatpush3.msra.mxu1 %v2477_v6 }
 0x493   : > { %v3402_v11 = vpop.f32.mrf.mxu1 }
 0x494   : > { %v2220_v54 = vadd.f32 %v3402_v11, %v2871_v48 }
 0x495   : > { %v2214_v8 = vpop.f32.mrf.mxu1 }
 0x496   : > { %v2215_v15 = vadd.f32 %v2871_v48, %v2214_v8 }
 0x498   : > { %3456 = vmatprep.mubr.f32.mxu0 %v2215_v15 }
 0x499   : > { %3457 = vmatmul.mubr.f32.vlgmr.msra.gmra.mxu0 %v2220_v54 }
 0x49b   : > { %v3405_v41 = vpop.f32.mrf.mxu1 }
 0x49c   : > { %v2230_v31 = vadd.f32 %v3405_v41, %v2871_v48 }
 0x49d   : > { %v2224_v0 = vpop.f32.mrf.mxu1 }
 0x49e   : > { %v2225_v62 = vadd.f32 %v2871_v48, %v2224_v0 }
 0x4a0   : > { %3459 = vmatprep.mubr.f32.mxu0 %v2225_v62 }
 0x4a1   : > { %v3408_v27 = vpop.f32.mrf.mxu1  ;;  %3460 = vmatmul.mubr.f32.gmra.mxu0 %v2230_v31 }
 0x4a2   : > { %v2240_v26 = vadd.f32 %v3408_v27, %v2871_v48 }
 0x4a3   : > { %v2234_v50 = vpop.f32.mrf.mxu1 }
 0x4a4   : > { %v2235_v43 = vadd.f32 %v2871_v48, %v2234_v50 }
 0x4a5   : > { %v3411_v39 = vpop.f32.mrf.mxu1 }
 0x4a6   : > { %3462 = vmatprep.mubr.f32.mxu0 %v2235_v43  ;;  %v2250_v18 = vadd.f32 %v3411_v39, %v2871_v48 }
 0x4a7   : > { %v2244_v13 = vpop.f32.mrf.mxu1  ;;  %3463 = vmatmul.mubr.f32.gmra.mxu0 %v2240_v26 }
 0x4a8   : > { %v2245_v55 = vadd.f32 %v2871_v48, %v2244_v13 }
 0x4a9   : > { %v3414_v10 = vpop.f32.mrf.mxu1 }
 0x4aa   : > { %3465 = vmatprep.mubr.f32.mxu0 %v2245_v55  ;;  %v2260_v20 = vadd.f32 %v3414_v10, %v2871_v48 }
 0x4ab   : > { %v2254_v22 = vpop.f32.mrf.mxu1  ;;  %3466 = vmatmul.mubr.f32.gmra.mxu0 %v2250_v18 }
 0x4ac   : > { %v2255_v63 = vadd.f32 %v2871_v48, %v2254_v22 }
 0x4ad   : > { %v3417_v17 = vpop.f32.mrf.mxu1 }
 0x4ae   : > { %3468 = vmatprep.mubr.f32.mxu0 %v2255_v63  ;;  %v2270_v23 = vadd.f32 %v3417_v17, %v2871_v48 }
 0x4af   : > { %v2264_v19 = vpop.f32.mrf.mxu1  ;;  %3469 = vmatmul.mubr.f32.gmra.mxu0 %v2260_v20 }
 0x4b0   : > { %v2265_v1 = vadd.f32 %v2871_v48, %v2264_v19  ;;  %v5087_v19 = vld [vmem:[%s5193_s17] ss:$0 sm:$0xff] }
 0x4b1   : > { %v3420_v36 = vpop.f32.mrf.mxu1 }
 0x4b2   : > { %3471 = vmatprep.mubr.f32.mxu0 %v2265_v1  ;;  %v2280_v25 = vadd.f32 %v3420_v36, %v2871_v48 }
 0x4b3   : > { %v2274_v30 = vpop.f32.mrf.mxu1  ;;  %3472 = vmatmul.mubr.f32.gmra.mxu0 %v2270_v23 }
 0x4b4   : > { %v2275_v24 = vadd.f32 %v2871_v48, %v2274_v30 }
 0x4b5   : > { %v3423_v3 = vpop.f32.mrf.mxu1 }
 0x4b6   : > { %3474 = vmatprep.mubr.f32.mxu0 %v2275_v24  ;;  %v2290_v12 = vadd.f32 %v3423_v3, %v2871_v48 }
 0x4b7   : > { %v2284_v28 = vpop.f32.mrf.mxu1  ;;  %3475 = vmatmul.mubr.f32.gmra.mxu0 %v2280_v25 }
 0x4b8   : > { %v2285_v58 = vadd.f32 %v2871_v48, %v2284_v28 }
 0x4ba   : > { %3477 = vmatprep.mubr.f32.mxu0 %v2285_v58 }
 0x4bb   : > { %3478 = vmatmul.mubr.f32.gmra.mxu0 %v2290_v12 }
 0x559   : > { %v3458_v5 = vpop.f32.mrf.mxu0 }
 0x55a   : > { %v2388_v37 = vadd.f32 %v3458_v5, %v2872_v51 }
 0x55b   : > { %v2382_v60 = vpop.f32.mrf.mxu0 }
 0x55c   : > { %v2383_v46 = vadd.f32 %v2872_v51, %v2382_v60  ;;  %v2462_v35 = vmax.f32 %v2388_v37, 0.0 }
 0x55e   : > { %v2461_v4 = vmax.f32 %v2383_v46, 0.0 }
 0x560   : > { %3512 = vmatprep.mubr.f32.mxu1 %v2461_v4 }
 0x561   : > { %v3461_v2 = vpop.f32.mrf.mxu0  ;;  %3513 = vmatmul.mubr.f32.vlgmr.msra.gmra.mxu1 %v2462_v35 }
 0x562   : > { %v2398_v61 = vadd.f32 %v3461_v2, %v2872_v51 }
 0x563   : > { %v2392_v38 = vpop.f32.mrf.mxu0 }
 0x564   : > { %v2393_v57 = vadd.f32 %v2872_v51, %v2392_v38  ;;  %v2464_v53 = vmax.f32 %v2398_v61, 0.0 }
 0x566   : > { %v2463_v49 = vmax.f32 %v2393_v57, 0.0 }
 0x567   : > { %v3464_v45 = vpop.f32.mrf.mxu0 }
 0x568   : > { %v2408_v47 = vadd.f32 %v3464_v45, %v2872_v51  ;;  %3515 = vmatprep.mubr.f32.mxu1 %v2463_v49 }
 0x569   : > { %v2402_v16 = vpop.f32.mrf.mxu0  ;;  %3516 = vmatmul.mubr.f32.gmra.mxu1 %v2464_v53 }
 0x56a   : > { %v2403_v33 = vadd.f32 %v2872_v51, %v2402_v16  ;;  %v2466_v42 = vmax.f32 %v2408_v47, 0.0 }
 0x56b   : > { %v3467_v7 = vpop.f32.mrf.mxu0 }
 0x56c   : > { %v2465_v34 = vmax.f32 %v2403_v33, 0.0  ;;  %v2418_v14 = vadd.f32 %v3467_v7, %v2872_v51 }
 0x56d   : > { %v2412_v21 = vpop.f32.mrf.mxu0 }
 0x56e   : > { %v2413_v44 = vadd.f32 %v2872_v51, %v2412_v21  ;;  %3518 = vmatprep.mubr.f32.mxu1 %v2465_v34  ;;  %v2468_v32 = vmax.f32 %v2418_v14, 0.0 }
 0x56f   : > { %v3470_v40 = vpop.f32.mrf.mxu0  ;;  %3519 = vmatmul.mubr.f32.gmra.mxu1 %v2466_v42 }
 0x570   : > { %v2467_v29 = vmax.f32 %v2413_v44, 0.0  ;;  %v2428_v59 = vadd.f32 %v3470_v40, %v2872_v51 }
 0x571   : > { %v2422_v11 = vpop.f32.mrf.mxu0 }
 0x572   : > { %v2423_v48 = vadd.f32 %v2872_v51, %v2422_v11  ;;  %3521 = vmatprep.mubr.f32.mxu1 %v2467_v29  ;;  %v2470_v54 = vmax.f32 %v2428_v59, 0.0 }
 0x573   : > { %v3473_v8 = vpop.f32.mrf.mxu0  ;;  %3522 = vmatmul.mubr.f32.gmra.mxu1 %v2468_v32 }
 0x574   : > { %v2469_v15 = vmax.f32 %v2423_v48, 0.0  ;;  %v2438_v41 = vadd.f32 %v3473_v8, %v2872_v51 }
 0x575   : > { %v2432_v0 = vpop.f32.mrf.mxu0 }
 0x576   : > { %v2433_v62 = vadd.f32 %v2872_v51, %v2432_v0  ;;  %3524 = vmatprep.mubr.f32.mxu1 %v2469_v15  ;;  %v2472_v50 = vmax.f32 %v2438_v41, 0.0 }
 0x577   : > { %v3476_v31 = vpop.f32.mrf.mxu0  ;;  %3525 = vmatmul.mubr.f32.gmra.mxu1 %v2470_v54 }
 0x578   : > { %v2471_v27 = vmax.f32 %v2433_v62, 0.0  ;;  %v2448_v43 = vadd.f32 %v3476_v31, %v2872_v51 }
 0x579   : > { %v2442_v26 = vpop.f32.mrf.mxu0 }
 0x57a   : > { %v2443_v39 = vadd.f32 %v2872_v51, %v2442_v26  ;;  %3527 = vmatprep.mubr.f32.mxu1 %v2471_v27  ;;  %v2474_v18 = vmax.f32 %v2448_v43, 0.0 }
 0x57b   : > { %v3479_v13 = vpop.f32.mrf.mxu0  ;;  %3528 = vmatmul.mubr.f32.gmra.mxu1 %v2472_v50 }
 0x57c   : > { %v2473_v55 = vmax.f32 %v2443_v39, 0.0  ;;  %v2458_v10 = vadd.f32 %v3479_v13, %v2872_v51 }
 0x57d   : > { %v2452_v22 = vpop.f32.mrf.mxu0 }
 0x57e   : > { %v2453_v63 = vadd.f32 %v2872_v51, %v2452_v22  ;;  %3530 = vmatprep.mubr.f32.mxu1 %v2473_v55  ;;  %v2476_v17 = vmax.f32 %v2458_v10, 0.0 }
 0x57f   : > { %3531 = vmatmul.mubr.f32.gmra.mxu1 %v2474_v18 }
 0x580   : > { %v2475_v20 = vmax.f32 %v2453_v63, 0.0 }
 0x582   : > { %3533 = vmatprep.mubr.f32.mxu1 %v2475_v20 }
 0x583   : > { %3534 = vmatmul.mubr.f32.gmra.mxu1 %v2476_v17 }
 0x621   : > { %v3514_v1 = vpop.f32.mrf.mxu1 }
 0x622   : > { %v2572_v23 = vadd.f32 %v3514_v1, %v5087_v19 }
 0x623   : > { %v2566_v36 = vpop.f32.mrf.mxu1 }
 0x624   : > { %v2646_v30 = vmax.f32 %v2572_v23, 0.0  ;;  %v2567_v24 = vadd.f32 %v5087_v19, %v2566_v36 }
 0x626   : > { %2662 = vst [vmem:[%s5093_s21 + $0x8] sm:$0xff] %v2646_v30  ;;  %v2645_v25 = vmax.f32 %v2567_v24, 0.0 }
 0x628   : > { %2661 = vst [vmem:[%s5093_s21] sm:$0xff] %v2645_v25 }
 0x629   : > { %v3517_v3 = vpop.f32.mrf.mxu1 }
 0x62a   : > { %v2582_v28 = vadd.f32 %v3517_v3, %v5087_v19 }
 0x62b   : > { %v2576_v58 = vpop.f32.mrf.mxu1 }
 0x62c   : > { %v2648_v12 = vmax.f32 %v2582_v28, 0.0  ;;  %v2577_v9 = vadd.f32 %v5087_v19, %v2576_v58 }
 0x62e   : > { %2664 = vst [vmem:[%s5093_s21 + $0x18] sm:$0xff] %v2648_v12  ;;  %v2647_v52 = vmax.f32 %v2577_v9, 0.0 }
 0x62f   : > { %v3520_v56 = vpop.f32.mrf.mxu1 }
 0x630   : > { %v2592_v6 = vadd.f32 %v3520_v56, %v5087_v19  ;;  %2663 = vst [vmem:[%s5093_s21 + $0x10] sm:$0xff] %v2647_v52 }
 0x631   : > { %v2586_v51 = vpop.f32.mrf.mxu1 }
 0x632   : > { %v2650_v5 = vmax.f32 %v2592_v6, 0.0  ;;  %v2587_v37 = vadd.f32 %v5087_v19, %v2586_v51 }
 0x633   : > { %v3523_v60 = vpop.f32.mrf.mxu1 }
 0x634   : > { %2666 = vst [vmem:[%s5093_s21 + $0x28] sm:$0xff] %v2650_v5  ;;  %v2649_v46 = vmax.f32 %v2587_v37, 0.0  ;;  %v2602_v4 = vadd.f32 %v3523_v60, %v5087_v19 }
 0x635   : > { %v2596_v35 = vpop.f32.mrf.mxu1 }
 0x636   : > { %2665 = vst [vmem:[%s5093_s21 + $0x20] sm:$0xff] %v2649_v46  ;;  %v2652_v2 = vmax.f32 %v2602_v4, 0.0  ;;  %v2597_v61 = vadd.f32 %v5087_v19, %v2596_v35 }
 0x637   : > { %v3526_v38 = vpop.f32.mrf.mxu1 }
 0x638   : > { %2668 = vst [vmem:[%s5093_s21 + $0x38] sm:$0xff] %v2652_v2  ;;  %v2651_v57 = vmax.f32 %v2597_v61, 0.0  ;;  %v2612_v49 = vadd.f32 %v3526_v38, %v5087_v19 }
 0x639   : > { %v2606_v45 = vpop.f32.mrf.mxu1 }
 0x63a   : > { %2667 = vst [vmem:[%s5093_s21 + $0x30] sm:$0xff] %v2651_v57  ;;  %v2654_v53 = vmax.f32 %v2612_v49, 0.0  ;;  %v2607_v47 = vadd.f32 %v5087_v19, %v2606_v45 }
 0x63b   : > { %v3529_v16 = vpop.f32.mrf.mxu1 }
 0x63c   : > { %2670 = vst [vmem:[%s5093_s21 + $0x48] sm:$0xff] %v2654_v53  ;;  %v2653_v33 = vmax.f32 %v2607_v47, 0.0  ;;  %v2622_v7 = vadd.f32 %v3529_v16, %v5087_v19 }
 0x63d   : > { %v2616_v34 = vpop.f32.mrf.mxu1 }
 0x63e   : > { %2669 = vst [vmem:[%s5093_s21 + $0x40] sm:$0xff] %v2653_v33  ;;  %v2656_v42 = vmax.f32 %v2622_v7, 0.0  ;;  %v2617_v14 = vadd.f32 %v5087_v19, %v2616_v34 }
 0x63f   : > { %v3532_v21 = vpop.f32.mrf.mxu1 }
 0x640   : > { %2672 = vst [vmem:[%s5093_s21 + $0x58] sm:$0xff] %v2656_v42  ;;  %v2655_v44 = vmax.f32 %v2617_v14, 0.0  ;;  %v2632_v40 = vadd.f32 %v3532_v21, %v5087_v19 }
 0x641   : > { %v2626_v29 = vpop.f32.mrf.mxu1 }
 0x642   : > { %2671 = vst [vmem:[%s5093_s21 + $0x50] sm:$0xff] %v2655_v44  ;;  %v2658_v32 = vmax.f32 %v2632_v40, 0.0  ;;  %v2627_v59 = vadd.f32 %v5087_v19, %v2626_v29 }
 0x643   : > { %v3535_v11 = vpop.f32.mrf.mxu1 }
 0x644   : > { %2674 = vst [vmem:[%s5093_s21 + $0x68] sm:$0xff] %v2658_v32  ;;  %v2657_v48 = vmax.f32 %v2627_v59, 0.0  ;;  %v2642_v8 = vadd.f32 %v3535_v11, %v5087_v19 }
 0x645   : > { %v2636_v15 = vpop.f32.mrf.mxu1 }
 0x646   : > { %2673 = vst [vmem:[%s5093_s21 + $0x60] sm:$0xff] %v2657_v48  ;;  %v2660_v54 = vmax.f32 %v2642_v8, 0.0  ;;  %v2637_v41 = vadd.f32 %v5087_v19, %v2636_v15 }
 0x648   : > { %2676 = vst [vmem:[%s5093_s21 + $0x78] sm:$0xff] %v2660_v54  ;;  %v2659_v0 = vmax.f32 %v2637_v41, 0.0 }
 0x64a   : > { %2675 = vst [vmem:[%s5093_s21 + $0x70] sm:$0xff] %v2659_v0 }
 0x64b   : > { %3874 = shalt.err (!%p3871_p11)
}
 0x64c   : > { %s3875_s2 = scalar_lea.hbm %s5128_s19, 2048  ;;  %s3879_s26 = scalar_lea.hbm %s5239_s24, 4096 }
 0x64d   : > { %p3876_p0 = scmp.ne.s32.totalorder %s5128_s19, %s3875_s2  ;;  %p3880_p1 = scmp.lt.s32.totalorder %s5128_s19, %s5239_s24 }
 0x64e   : > { %p3881_p3 = scmp.lt.s32.totalorder %s3879_s26, %s3875_s2 }
 0x64f   : > { %p3877_p12 = pnand %p3876_p0, %p4084_p5 }
 0x650   : > { %p3882_p2 = por %p3881_p3, %p3880_p1 }
 0x651   : > { %p3878_p10 = pneg %p3877_p12 }
 0x653   : > { %p3883_p4 = pnand %p3882_p2, %p3878_p10 }
 0x655   : > { %3886 = shalt.err (!%p3883_p4)
}
 0x656   : > { %s3949_s18 = smov 128   ;;  %s3950_s22 = smov 8  }
 0x657   : > { %3560 = dma.vmem_to_hbm [thread:$0]  (%p4084_p5), %s5130_s29, 2048, %s5128_s19, %s5136_s0, %s3949_s18, %s3949_s18, %s3950_s22  }
 0x658 PF: > { %s5240_s30 = sld [smem:[#allocation21_spill]] }
 0x659   : > { %s5241_s25 = sld [smem:[#allocation19_spill]] }
 0x65e   : > { %p3597_p9 = scmp.ge.s32.totalorder %s5240_s30, 2 }
 0x65f   : > { %s2706_s21 = sand.u32 1, %s5241_s25  }
 0x660   : > { %p3582_p13 = pnand %p3597_p9, %p4088_p6  ;;  %s2707_s2 = scalar_lea.sflag [#allocation4], %s2706_s21 }
 0x662   : > { %p3583_p7 = pneg %p3582_p13 }
 0x664   : > { %3920 = dma.done.wait (%p3583_p7), %s2707_s2, 2048  }
 0x665   : > { %3922 = vsyncadd (%p3583_p7), %s2707_s2, 4294965248  ;;  %s5243_s30 = sld [smem:[#allocation22_spill]]  ;;  %s5246_s27 = smov %s3929_s28 }
 0x666   : > { %s5244_s26 = sld [smem:[#allocation20_spill]] }
 0x667   : > { %s5245_s29 = sld [smem:[#allocation23_spill]] }
 0x66b   : > { %p32_p8 = scmp.ge.s32.totalorder %s5243_s30, 4  }
 0x66c   : > { %s5247_s28 = smov %s5244_s26 }
 0x66d   :  { %34 = sbr.rel (!%p32_p8) target bundleno = 12 (0xc), region = 152 }
 0x672   :  { %2712 = vsyncpa [#allocation3], 1 }
 0x673   :  { %2714 = vsyncpa [#allocation3 + $0x1], 1 }
 0x674   :  { %2715 = vsyncpa [#allocation6], 1 }
 0x675   :  { %2716 = vsyncpa [#allocation9], 1 }
 0x676   :  { %2717 = vsyncpa [#allocation12], 1 }
 0x677   :  { %2718 = vsyncpa [#allocation4], 1 }
 0x678   :  { %2720 = vsyncpa [#allocation4 + $0x1], 1 }

</bundles_post_ra>
